<compile_context>
chip_gen: v6e
topology: v6e:2x2x1
jax: 0.10.0
libtpu: 0.0.40
codegen_flags: <defaults>
</compile_context>

<pallas_src>
import math
from functools import partial

import jax
import jax.numpy as jnp
from jax import lax
from jax.experimental import pallas as pl
from jax.experimental.pallas import tpu as pltpu

# ----------------------------- small model configuration -----------------------------
BATCH = 2
L_IN = 64
CH_H0 = 8            # channels_H
MAX_H = 32           # max_H
ENC_LAYERS = 3       # encoder_n_layers
KSIZE = 4            # kernel_size
STRIDE = 2           # stride
N_MAMBA = 2          # tsfm_n_layers
N_HEAD = 4           # tsfm_n_head
D_MODEL = 16         # tsfm_d_model
D_INNER = 32         # tsfm_d_inner (expand = 2)
D_STATE = D_MODEL // N_HEAD   # ssm_cfg['d_state']
D_CONV = 4           # ssm_cfg['d_conv']
DT_RANK = max(1, math.ceil(D_MODEL / 16))
LN_EPS = 1e-5

assert KSIZE % STRIDE == 0   # required by the in-kernel ConvTranspose1d overlap-add


# --------------------------------- in-kernel helpers ----------------------------------
def _sigmoid(x):
    return 1.0 / (1.0 + jnp.exp(-x))


def _softplus(x):
    return jnp.maximum(x, 0.0) + jnp.log(1.0 + jnp.exp(-jnp.abs(x)))


def _layer_norm(x, w, b, eps=LN_EPS):
    mean = jnp.mean(x, axis=-1, keepdims=True)
    xc = x - mean
    var = jnp.mean(xc * xc, axis=-1, keepdims=True)
    return xc * lax.rsqrt(var + eps) * w + b


def _dot(a, b):
    # bf16 MXU matmul, f32 accumulation.
    return jnp.dot(a.astype(jnp.bfloat16), b.astype(jnp.bfloat16),
                   preferred_element_type=jnp.float32)


def _parallel(n):
    return pltpu.CompilerParams(dimension_semantics=("parallel",) * n)


# --------------------------------- encoder block --------------------------------------
def _encoder_kernel(x_ref, w1_ref, b1_ref, wv_ref, bv_ref, wg_ref, bg_ref, o_ref):
    x = x_ref[0]                                       # (Lout, K*Cin)
    h = jnp.maximum(_dot(x, w1_ref[...]) + b1_ref[...], 0.0)     # strided conv + ReLU
    val = _dot(h, wv_ref[...]) + bv_ref[...]                     # 1x1 conv (value half)
    gate = _dot(h, wg_ref[...]) + bg_ref[...]                    # 1x1 conv (gate half)
    o_ref[0] = val * _sigmoid(gate)                              # GLU


def encoder_block(x, ep):
    """x: (B, L, Cin) -> (B, Lout, H); one fused Pallas call."""
    bsz, L, cin = x.shape
    k, s = KSIZE, STRIDE
    lout = (L - k) // s + 1
    h_ch = ep["w1"].shape[1]
    kc = k * cin
    # TODO(synk): im2col gather for the strided Conv1d stays in plain JAX glue; the
    # fused conv-as-matmul + ReLU + 1x1 conv + GLU run inside the kernel.
    idx = jnp.arange(lout)[:, None] * s + jnp.arange(k)[None, :]
    patches = x[:, idx, :].reshape(bsz, lout, kc)
    return pl.pallas_call(
        _encoder_kernel,
        out_shape=jax.ShapeDtypeStruct((bsz, lout, h_ch), jnp.float32),
        grid=(bsz,),
        in_specs=[
            pl.BlockSpec((1, lout, kc), lambda b: (b, 0, 0)),
            pl.BlockSpec((kc, h_ch), lambda b: (0, 0)),
            pl.BlockSpec((1, h_ch), lambda b: (0, 0)),
            pl.BlockSpec((h_ch, h_ch), lambda b: (0, 0)),
            pl.BlockSpec((1, h_ch), lambda b: (0, 0)),
            pl.BlockSpec((h_ch, h_ch), lambda b: (0, 0)),
            pl.BlockSpec((1, h_ch), lambda b: (0, 0)),
        ],
        out_specs=pl.BlockSpec((1, lout, h_ch), lambda b: (b, 0, 0)),
        compiler_params=_parallel(1),
    )(patches, ep["w1"], ep["b1"], ep["wv"], ep["bv"], ep["wg"], ep["bg"])


# --------------------------------- decoder block --------------------------------------
def _decoder_kernel(x_ref, skip_ref, wv_ref, bv_ref, wg_ref, bg_ref, wt_ref, bt_ref,
                    *o_refs, stride, last):
    L = x_ref.shape[1]
    wt = wt_ref[...]                                   # (K, H, Cout)
    ksz = wt.shape[0]
    cout = wt.shape[2]
    lp = L - 1 + ksz // stride                         # outputs per parity

    xb = x_ref[0] + skip_ref[0]                        # skip-add fused in
    val = _dot(xb, wv_ref[...]) + bv_ref[...]
    gate = _dot(xb, wg_ref[...]) + bg_ref[...]
    h = val * _sigmoid(gate)                           # GLU, (L, H)

    z = [_dot(h, wt[k]) for k in range(ksz)]           # K x (L, Cout)
    for p in range(stride):                            # ConvTranspose1d overlap-add
        acc = None
        for j, k in enumerate(range(p, ksz, stride)):
            pieces = []
            if j > 0:
                pieces.append(jnp.zeros((j, cout), jnp.float32))
            pieces.append(z[k])
            tail = lp - L - j
            if tail > 0:
                pieces.append(jnp.zeros((tail, cout), jnp.float32))
            shifted = pieces[0] if len(pieces) == 1 else jnp.concatenate(pieces, axis=0)
            acc = shifted if acc is None else acc + shifted
        out = acc + bt_ref[...]
        if not last:
            out = jnp.maximum(out, 0.0)
        o_refs[p][0] = out                             # one output per parity


def decoder_block(x, skip, dp, last):
    """x, skip: (B, L, H) -> (B, (L-1)*S+K, Cout); one fused Pallas call."""
    bsz, L, h_ch = x.shape
    k, s = KSIZE, STRIDE
    cout = dp["bt"].shape[1]
    lout = (L - 1) * s + k
    lp = lout // s
    xspec = pl.BlockSpec((1, L, h_ch), lambda b: (b, 0, 0))
    ospec = pl.BlockSpec((1, lp, cout), lambda b: (b, 0, 0))
    parts = pl.pallas_call(
        partial(_decoder_kernel, stride=s, last=last),
        out_shape=tuple(jax.ShapeDtypeStruct((bsz, lp, cout), jnp.float32)
                        for _ in range(s)),
        grid=(bsz,),
        in_specs=[
            xspec, xspec,
            pl.BlockSpec((h_ch, h_ch), lambda b: (0, 0)),
            pl.BlockSpec((1, h_ch), lambda b: (0, 0)),
            pl.BlockSpec((h_ch, h_ch), lambda b: (0, 0)),
            pl.BlockSpec((1, h_ch), lambda b: (0, 0)),
            pl.BlockSpec((k, h_ch, cout), lambda b: (0, 0, 0)),
            pl.BlockSpec((1, cout), lambda b: (0, 0)),
        ],
        out_specs=tuple(ospec for _ in range(s)),
        compiler_params=_parallel(1),
    )(x, skip, dp["wv"], dp["bv"], dp["wg"], dp["bg"], dp["wt"], dp["bt"])
    # TODO(synk): parity interleave of the ConvTranspose output kept as plain JAX reshape.
    y = jnp.stack(parts, axis=2).reshape(bsz, lp * s, cout)
    return y[:, :lout, :]


# ------------------------------ bottleneck 1x1 conv -----------------------------------
def _pointwise_kernel(x_ref, w_ref, b_ref, o_ref):
    o_ref[0] = _dot(x_ref[0], w_ref[...]) + b_ref[...]


def pointwise_conv(x, w, b):
    bsz, L, cin = x.shape
    cout = w.shape[1]
    return pl.pallas_call(
        _pointwise_kernel,
        out_shape=jax.ShapeDtypeStruct((bsz, L, cout), jnp.float32),
        grid=(bsz,),
        in_specs=[
            pl.BlockSpec((1, L, cin), lambda b: (b, 0, 0)),
            pl.BlockSpec((cin, cout), lambda b: (0, 0)),
            pl.BlockSpec((1, cout), lambda b: (0, 0)),
        ],
        out_specs=pl.BlockSpec((1, L, cout), lambda b: (b, 0, 0)),
        compiler_params=_parallel(1),
    )(x, w, b)


# --------------------------- final add + norm_f + conv2 --------------------------------
def _final_kernel(h_ref, r_ref, nw_ref, nb_ref, w_ref, b_ref, o_ref):
    res = h_ref[0] + r_ref[0]
    hn = _layer_norm(res, nw_ref[...], nb_ref[...])
    o_ref[0] = _dot(hn, w_ref[...]) + b_ref[...]


def final_norm_proj(hidden, residual, p):
    bsz, L, d = hidden.shape
    cout = p["w_c2"].shape[1]
    return pl.pallas_call(
        _final_kernel,
        out_shape=jax.ShapeDtypeStruct((bsz, L, cout), jnp.float32),
        grid=(bsz,),
        in_specs=[
            pl.BlockSpec((1, L, d), lambda b: (b, 0, 0)),
            pl.BlockSpec((1, L, d), lambda b: (b, 0, 0)),
            pl.BlockSpec((1, d), lambda b: (0, 0)),
            pl.BlockSpec((1, d), lambda b: (0, 0)),
            pl.BlockSpec((d, cout), lambda b: (0, 0)),
            pl.BlockSpec((1, cout), lambda b: (0, 0)),
        ],
        out_specs=pl.BlockSpec((1, L, cout), lambda b: (b, 0, 0)),
        compiler_params=_parallel(1),
    )(hidden, residual, p["norm_f_w"], p["norm_f_b"], p["w_c2"], p["b_c2"])


# ----------------------------- fused Mamba block kernel --------------------------------
def _mamba_kernel(h_ref, r_ref, nw_ref, nb_ref, wx_ref, wz_ref, cw_ref, cb_ref,
                  wdt_ref, wB_ref, wC_ref, dtb_ref, A_ref, Dsk_ref, wout_ref,
                  ho_ref, ro_ref):
    L = h_ref.shape[1]

    # pre-norm Mamba block: residual add (f32) + LayerNorm
    res = h_ref[0] + r_ref[0]                          # (L, D)
    ro_ref[0] = res
    hn = _layer_norm(res, nw_ref[...], nb_ref[...])    # (L, D)

    # in_proj split into x / gate halves at the weight level (no lane-axis split)
    xin = _dot(hn, wx_ref[...])                        # (L, Din)
    zg = _dot(hn, wz_ref[...])                         # (L, Din)
    din = xin.shape[1]

    # causal depthwise conv + SiLU (fused; left pad by K-1)
    cw = cw_ref[...]                                   # (K, Din)
    k = cw.shape[0]
    xpad = jnp.concatenate([jnp.zeros((k - 1, din), jnp.float32), xin], axis=0)
    acc = jnp.zeros((L, din), jnp.float32) + cb_ref[...]
    for kk in range(k):
        acc = acc + xpad[kk:kk + L, :] * cw[kk:kk + 1, :]
    u = acc * _sigmoid(acc)                            # (L, Din)

    # x_proj with dt_proj folded in  ->  dt | B | C  (three narrow matmuls, one pass)
    dt = _softplus(_dot(u, wdt_ref[...]) + dtb_ref[...])   # (L, Din)
    Bm = _dot(u, wB_ref[...])                              # (L, N)
    Cm = _dot(u, wC_ref[...])                              # (L, N)

    # selective scan: transcendentals + lane broadcasts hoisted out of the serial loop;
    # only the first-order recurrence is stepped (fully unrolled, static indices).
    A = A_ref[...]                                     # (N, Din) = -exp(A_log).T
    nst = A.shape[0]
    dtu = dt * u
    dA, dBu, Cb = [], [], []
    for n in range(nst):
        dA.append(jnp.exp(dt * A[n:n + 1, :]))                     # (L, Din)
        dBu.append(dtu * Bm[:, n:n + 1])                           # (L, Din)
        Cb.append(jnp.broadcast_to(Cm[:, n:n + 1], (L, din)))      # (L, Din)
    st = [jnp.zeros((1, din), jnp.float32)] * nst
    ys = []
    for i in range(L):
        y_i = jnp.zeros((1, din), jnp.float32)
        for n in range(nst):
            st[n] = dA[n][i:i + 1, :] * st[n] + dBu[n][i:i + 1, :]
            y_i = y_i + st[n] * Cb[n][i:i + 1, :]
        ys.append(y_i)
    y = jnp.concatenate(ys, axis=0)                    # (L, Din)

    y = y + u * Dsk_ref[...]                           # D skip connection
    y = y * (zg * _sigmoid(zg))                        # gate with SiLU(z)
    ho_ref[0] = _dot(y, wout_ref[...])                 # out_proj (no bias)


def mamba_block(hidden, residual, mp):
    bsz, L, d = hidden.shape
    din = mp["Dskip"].shape[1]
    nst = mp["A_neg"].shape[0]
    k = mp["conv_w"].shape[0]

    flops = 2 * bsz * L * (2 * d * din + k * din + din * (din + 2 * nst)
                           + 3 * nst * din + din * d)
    trans = bsz * L * din * (nst + 6)
    args = (hidden, residual, mp["norm_w"], mp["norm_b"], mp["wx"], mp["wz"],
            mp["conv_w"], mp["conv_b"], mp["w_dt"], mp["w_B"], mp["w_C"],
            mp["dt_bias"], mp["A_neg"], mp["Dskip"], mp["w_out"])
    nbytes = sum(int(a.size) * a.dtype.itemsize for a in args) + 2 * int(hidden.size) * 4

    bspec = pl.BlockSpec((1, L, d), lambda b: (b, 0, 0))

    def full(shape):
        return pl.BlockSpec(shape, lambda b: (0,) * len(shape))

    hidden_new, residual_new = pl.pallas_call(
        _mamba_kernel,
        out_shape=(jax.ShapeDtypeStruct((bsz, L, d), jnp.float32),
                   jax.ShapeDtypeStruct((bsz, L, d), jnp.float32)),
        grid=(bsz,),
        in_specs=[
            bspec, bspec,
            full((1, d)), full((1, d)),
            full((d, din)), full((d, din)),
            full((k, din)), full((1, din)),
            full((din, din)), full((din, nst)), full((din, nst)),
            full((1, din)), full((nst, din)), full((1, din)),
            full((din, d)),
        ],
        out_specs=(bspec, bspec),
        compiler_params=_parallel(1),
        cost_estimate=pl.CostEstimate(flops=int(flops), transcendentals=int(trans),
                                      bytes_accessed=int(nbytes)),
    )(*args)
    return hidden_new, residual_new


# ------------------------------------ forward ------------------------------------------
def valid_length(length):
    d, k, s = ENC_LAYERS, KSIZE, STRIDE
    for _ in range(d):
        length = 1 if length < k else 1 + math.ceil((length - k) / s)
    for _ in range(d):
        length = (length - 1) * s + k
    return int(length)


def forward(params, noisy_audio):
    """noisy_audio: (B, 1, L), PyTorch-style NCL input."""
    bsz, c, L = noisy_audio.shape
    assert c == 1
    std = jnp.std(noisy_audio, axis=2, keepdims=True, ddof=1) + 0.001
    x = noisy_audio / std
    lv = valid_length(L)
    x = jnp.pad(x, ((0, 0), (0, 0), (0, lv - L)))
    x = jnp.transpose(x, (0, 2, 1))                    # NCL -> NLC

    skips = []
    for ep in params["encoder"]:
        x = encoder_block(x, ep)
        skips.append(x)
    skips = skips[::-1]

    hidden = pointwise_conv(x, params["w_c1"], params["b_c1"])     # tsfm_conv1
    residual = jnp.zeros_like(hidden)
    for mp in params["mamba"]:
        hidden, residual = mamba_block(hidden, residual, mp)
    x = final_norm_proj(hidden, residual, params)                  # add + norm_f + conv2

    for i, dp in enumerate(params["decoder"]):
        skip = skips[i][:, :x.shape[1], :]
        x = decoder_block(x, skip, dp, last=(i == len(params["decoder"]) - 1))

    x = jnp.transpose(x, (0, 2, 1))                    # NLC -> NCL
    return x[:, :, :L] * std


# ---------------------------- deterministic parameter init ----------------------------
def _normal(key, shape, scale):
    return scale * jax.random.normal(key, shape, dtype=jnp.float32)


def init_params(key):
    """Torch-layout parameters (same shapes / semantics as the reference module)."""
    keys = iter(jax.random.split(key, 256))
    nk = lambda: next(keys)

    enc, dec_rev = [], []
    cin, cout_dec, ch = 1, 1, CH_H0
    for _ in range(ENC_LAYERS):
        enc.append(dict(
            conv_w=_normal(nk(), (ch, cin, KSIZE), 0.3),
            conv_b=_normal(nk(), (ch,), 0.05),
            pw_w=_normal(nk(), (2 * ch, ch, 1), 0.3),
            pw_b=_normal(nk(), (2 * ch,), 0.05),
        ))
        dec_rev.append(dict(
            pw_w=_normal(nk(), (2 * ch, ch, 1), 0.3),
            pw_b=_normal(nk(), (2 * ch,), 0.05),
            ct_w=_normal(nk(), (ch, cout_dec, KSIZE), 0.3),
            ct_b=_normal(nk(), (cout_dec,), 0.05),
        ))
        cin = ch
        cout_dec = ch
        ch = min(ch * 2, MAX_H)

    dec = dec_rev[::-1]            # model applies decoders in reverse build order
    ch_bottleneck = cin

    mamba = []
    for _ in range(N_MAMBA):
        dt0 = 0.01 + 0.09 * jax.random.uniform(nk(), (D_INNER,), dtype=jnp.float32)
        mamba.append(dict(
            norm_w=jnp.ones((D_MODEL,), jnp.float32),
            norm_b=jnp.zeros((D_MODEL,), jnp.float32),
            in_proj_w=_normal(nk(), (2 * D_INNER, D_MODEL), 0.2),
            conv_w=_normal(nk(), (D_CONV, D_INNER), 0.3),   # torch (Din,1,K) stored (K,Din)
            conv_b=_normal(nk(), (D_INNER,), 0.05),
            x_proj_w=_normal(nk(), (DT_RANK + 2 * D_STATE, D_INNER), 0.2),
            dt_proj_w=_normal(nk(), (D_INNER, DT_RANK), 0.3),
            dt_proj_b=jnp.log(jnp.expm1(dt0)),              # inverse-softplus dt init
            A_log=jnp.log(jnp.broadcast_to(
                jnp.arange(1, D_STATE + 1, dtype=jnp.float32), (D_INNER, D_STATE))),
            D=jnp.ones((D_INNER,), jnp.float32),
            out_proj_w=_normal(nk(), (D_MODEL, D_INNER), 0.2),
        ))

    return dict(
        encoder=enc,
        decoder=dec,
        mamba=mamba,
        tsfm_conv1_w=_normal(nk(), (D_MODEL, ch_bottleneck, 1), 0.2),
        tsfm_conv1_b=_normal(nk(), (D_MODEL,), 0.05),
        tsfm_conv2_w=_normal(nk(), (ch_bottleneck, D_MODEL, 1), 0.2),
        tsfm_conv2_b=_normal(nk(), (ch_bottleneck,), 0.05),
        norm_f_w=jnp.ones((D_MODEL,), jnp.float32),
        norm_f_b=jnp.zeros((D_MODEL,), jnp.float32),
    )


def prepare_params(p):
    """One-time conversion to kernel-ready layout: transposed / split weights (bf16 for
    MXU operands), (1, N)-shaped f32 biases, dt_proj folded into x_proj, A = -exp(A_log)."""
    bf = jnp.bfloat16
    f32 = jnp.float32

    enc = []
    for e in p["encoder"]:
        h = e["conv_w"].shape[0]
        w1 = jnp.transpose(e["conv_w"], (2, 1, 0)).reshape(-1, h)
        pw = e["pw_w"][:, :, 0]
        enc.append(dict(
            w1=w1.astype(bf), b1=e["conv_b"].reshape(1, h).astype(f32),
            wv=pw[:h].T.astype(bf), bv=e["pw_b"][:h].reshape(1, h).astype(f32),
            wg=pw[h:].T.astype(bf), bg=e["pw_b"][h:].reshape(1, h).astype(f32),
        ))

    dec = []
    for d in p["decoder"]:
        h = d["pw_w"].shape[1]
        pw = d["pw_w"][:, :, 0]
        cout = d["ct_w"].shape[1]
        dec.append(dict(
            wv=pw[:h].T.astype(bf), bv=d["pw_b"][:h].reshape(1, h).astype(f32),
            wg=pw[h:].T.astype(bf), bg=d["pw_b"][h:].reshape(1, h).astype(f32),
            wt=jnp.transpose(d["ct_w"], (2, 0, 1)).astype(bf),      # (K, H, Cout)
            bt=d["ct_b"].reshape(1, cout).astype(f32),
        ))

    mam = []
    for m in p["mamba"]:
        din, nst = m["A_log"].shape
        xp = m["x_proj_w"]
        w_dt = (m["dt_proj_w"] @ xp[:DT_RANK]).T                    # dt_proj folded in
        inp = m["in_proj_w"]
        mam.append(dict(
            norm_w=m["norm_w"].reshape(1, -1).astype(f32),
            norm_b=m["norm_b"].reshape(1, -1).astype(f32),
            wx=inp[:din].T.astype(bf), wz=inp[din:].T.astype(bf),
            conv_w=m["conv_w"].astype(f32),
            conv_b=m["conv_b"].reshape(1, din).astype(f32),
            w_dt=w_dt.astype(bf),
            w_B=xp[DT_RANK:DT_RANK + nst].T.astype(bf),
            w_C=xp[DT_RANK + nst:].T.astype(bf),
            dt_bias=m["dt_proj_b"].reshape(1, din).astype(f32),
            A_neg=(-jnp.exp(m["A_log"])).T.astype(f32),             # (N, Din)
            Dskip=m["D"].reshape(1, din).astype(f32),
            w_out=m["out_proj_w"].T.astype(bf),
        ))

    return dict(
        encoder=enc, decoder=dec, mamba=mam,
        w_c1=p["tsfm_conv1_w"][:, :, 0].T.astype(bf),
        b_c1=p["tsfm_conv1_b"].reshape(1, -1).astype(f32),
        w_c2=p["tsfm_conv2_w"][:, :, 0].T.astype(bf),
        b_c2=p["tsfm_conv2_b"].reshape(1, -1).astype(f32),
        norm_f_w=p["norm_f_w"].reshape(1, -1).astype(f32),
        norm_f_b=p["norm_f_b"].reshape(1, -1).astype(f32),
    )


# ----------------------------------------- main ---------------------------------------
if __name__ == "__main__":
    root = jax.random.PRNGKey(0)
    kp, kx = jax.random.split(root)
    params = prepare_params(init_params(kp))           # one-time layout/dtype prep
    noisy = jax.random.normal(kx, (BATCH, 1, L_IN), dtype=jnp.float32)

    fwd = jax.jit(forward)
    out = jax.block_until_ready(fwd(params, noisy))

    assert out.shape == (BATCH, 1, L_IN), out.shape
    assert bool(jnp.all(jnp.isfinite(out)))
    print("KERNEL_OK")
</pallas_src>

<mosaic_0001>
module attributes {stable_mosaic.version = 11 : i64} {
  func.func @_encoder_kernel(%arg0: i32, %arg1: memref<1x34x4xf32, #tpu.memory_space<vmem>>, %arg2: memref<4x8xbf16, #tpu.memory_space<vmem>>, %arg3: memref<1x8xf32, #tpu.memory_space<vmem>>, %arg4: memref<8x8xbf16, #tpu.memory_space<vmem>>, %arg5: memref<1x8xf32, #tpu.memory_space<vmem>>, %arg6: memref<8x8xbf16, #tpu.memory_space<vmem>>, %arg7: memref<1x8xf32, #tpu.memory_space<vmem>>, %arg8: memref<1x34x8xf32, #tpu.memory_space<vmem>>) attributes {dimension_semantics = [#tpu.dimension_semantics<parallel>], iteration_bounds = array<i64: 2>, scalar_prefetch = 0 : i64, scratch_operands = 0 : i64, tpu.core_type = #tpu.core_type<tc>, window_params = [{transform_indices = @transform_0, window_bounds = array<i64: 1, 34, 4>}, {pipeline_mode = #tpu.pipeline_mode<synchronous>, transform_indices = @transform_1, window_bounds = array<i64: 4, 8>}, {pipeline_mode = #tpu.pipeline_mode<synchronous>, transform_indices = @transform_2, window_bounds = array<i64: 1, 8>}, {pipeline_mode = #tpu.pipeline_mode<synchronous>, transform_indices = @transform_3, window_bounds = array<i64: 8, 8>}, {pipeline_mode = #tpu.pipeline_mode<synchronous>, transform_indices = @transform_4, window_bounds = array<i64: 1, 8>}, {pipeline_mode = #tpu.pipeline_mode<synchronous>, transform_indices = @transform_5, window_bounds = array<i64: 8, 8>}, {pipeline_mode = #tpu.pipeline_mode<synchronous>, transform_indices = @transform_6, window_bounds = array<i64: 1, 8>}, {transform_indices = @transform_7, window_bounds = array<i64: 1, 34, 8>}]} {
    %c0 = arith.constant 0 : index
    %c0_0 = arith.constant 0 : index
    %c0_1 = arith.constant 0 : index
    %0 = vector.load %arg1[%c0, %c0_0, %c0_1] : memref<1x34x4xf32, #tpu.memory_space<vmem>>, vector<1x34x4xf32>
    %1 = vector.shape_cast %0 : vector<1x34x4xf32> to vector<34x4xf32>
    %c0_2 = arith.constant 0 : index
    %c0_3 = arith.constant 0 : index
    %2 = vector.load %arg2[%c0_2, %c0_3] : memref<4x8xbf16, #tpu.memory_space<vmem>>, vector<4x8xbf16>
    %3 = arith.truncf %1 : vector<34x4xf32> to vector<34x4xbf16>
    %cst = arith.constant dense<0.000000e+00> : vector<34x8xf32>
    %4 = tpu.matmul %3, %2, %cst {dimension_numbers = #tpu.dot_dimension_numbers<[1], [0], [0], [1], [0, 0, 1, 1], [], []>} : vector<34x4xbf16>, vector<4x8xbf16>, vector<34x8xf32> -> vector<34x8xf32>
    %c0_4 = arith.constant 0 : index
    %c0_5 = arith.constant 0 : index
    %5 = vector.load %arg3[%c0_4, %c0_5] : memref<1x8xf32, #tpu.memory_space<vmem>>, vector<1x8xf32>
    %6 = vector.broadcast %5 : vector<1x8xf32> to vector<34x8xf32>
    %7 = arith.addf %4, %6 : vector<34x8xf32>
    %cst_6 = arith.constant 0.000000e+00 : f32
    %8 = vector.broadcast %cst_6 : f32 to vector<34x8xf32>
    %9 = arith.maximumf %7, %8 : vector<34x8xf32>
    %c0_7 = arith.constant 0 : index
    %c0_8 = arith.constant 0 : index
    %10 = vector.load %arg4[%c0_7, %c0_8] : memref<8x8xbf16, #tpu.memory_space<vmem>>, vector<8x8xbf16>
    %11 = arith.truncf %9 : vector<34x8xf32> to vector<34x8xbf16>
    %cst_9 = arith.constant dense<0.000000e+00> : vector<34x8xf32>
    %12 = tpu.matmul %11, %10, %cst_9 {dimension_numbers = #tpu.dot_dimension_numbers<[1], [0], [0], [1], [0, 0, 1, 1], [], []>} : vector<34x8xbf16>, vector<8x8xbf16>, vector<34x8xf32> -> vector<34x8xf32>
    %c0_10 = arith.constant 0 : index
    %c0_11 = arith.constant 0 : index
    %13 = vector.load %arg5[%c0_10, %c0_11] : memref<1x8xf32, #tpu.memory_space<vmem>>, vector<1x8xf32>
    %14 = vector.broadcast %13 : vector<1x8xf32> to vector<34x8xf32>
    %15 = arith.addf %12, %14 : vector<34x8xf32>
    %c0_12 = arith.constant 0 : index
    %c0_13 = arith.constant 0 : index
    %16 = vector.load %arg6[%c0_12, %c0_13] : memref<8x8xbf16, #tpu.memory_space<vmem>>, vector<8x8xbf16>
    %17 = arith.truncf %9 : vector<34x8xf32> to vector<34x8xbf16>
    %cst_14 = arith.constant dense<0.000000e+00> : vector<34x8xf32>
    %18 = tpu.matmul %17, %16, %cst_14 {dimension_numbers = #tpu.dot_dimension_numbers<[1], [0], [0], [1], [0, 0, 1, 1], [], []>} : vector<34x8xbf16>, vector<8x8xbf16>, vector<34x8xf32> -> vector<34x8xf32>
    %c0_15 = arith.constant 0 : index
    %c0_16 = arith.constant 0 : index
    %19 = vector.load %arg7[%c0_15, %c0_16] : memref<1x8xf32, #tpu.memory_space<vmem>>, vector<1x8xf32>
    %20 = vector.broadcast %19 : vector<1x8xf32> to vector<34x8xf32>
    %21 = arith.addf %18, %20 : vector<34x8xf32>
    %cst_17 = arith.constant 0.000000e+00 : f32
    %22 = vector.broadcast %cst_17 : f32 to vector<34x8xf32>
    %23 = arith.subf %22, %21 : vector<34x8xf32>
    %24 = math.exp %23 : vector<34x8xf32>
    %cst_18 = arith.constant 1.000000e+00 : f32
    %25 = vector.broadcast %cst_18 : f32 to vector<34x8xf32>
    %26 = arith.addf %25, %24 : vector<34x8xf32>
    %cst_19 = arith.constant 1.000000e+00 : f32
    %27 = vector.broadcast %cst_19 : f32 to vector<34x8xf32>
    %28 = arith.divf %27, %26 : vector<34x8xf32>
    %29 = arith.mulf %15, %28 : vector<34x8xf32>
    %c0_20 = arith.constant 0 : index
    %c0_21 = arith.constant 0 : index
    %c0_22 = arith.constant 0 : index
    %30 = vector.load %arg8[%c0_20, %c0_21, %c0_22] : memref<1x34x8xf32, #tpu.memory_space<vmem>>, vector<1x34x8xf32>
    %31 = vector.shape_cast %30 : vector<1x34x8xf32> to vector<34x8xf32>
    %32 = vector.shape_cast %29 : vector<34x8xf32> to vector<1x34x8xf32>
    tpu.vector_store %arg8[%c0_20, %c0_21, %c0_22], %32 {strides = array<i32>} : memref<1x34x8xf32, #tpu.memory_space<vmem>>, vector<1x34x8xf32>,
    return
  }
  func.func @transform_0(%arg0: i32) -> (i32, i32, i32) {
    %c0_i32 = arith.constant 0 : i32
    %c0_i32_0 = arith.constant 0 : i32
    %c0_i32_1 = arith.constant 0 : i32
    return %arg0, %c0_i32, %c0_i32_0 : i32, i32, i32
  }
  func.func @transform_1(%arg0: i32) -> (i32, i32) {
    %c0_i32 = arith.constant 0 : i32
    %c0_i32_0 = arith.constant 0 : i32
    %c0_i32_1 = arith.constant 0 : i32
    return %c0_i32, %c0_i32_0 : i32, i32
  }
  func.func @transform_2(%arg0: i32) -> (i32, i32) {
    %c0_i32 = arith.constant 0 : i32
    %c0_i32_0 = arith.constant 0 : i32
    %c0_i32_1 = arith.constant 0 : i32
    return %c0_i32, %c0_i32_0 : i32, i32
  }
  func.func @transform_3(%arg0: i32) -> (i32, i32) {
    %c0_i32 = arith.constant 0 : i32
    %c0_i32_0 = arith.constant 0 : i32
    %c0_i32_1 = arith.constant 0 : i32
    return %c0_i32, %c0_i32_0 : i32, i32
  }
  func.func @transform_4(%arg0: i32) -> (i32, i32) {
    %c0_i32 = arith.constant 0 : i32
    %c0_i32_0 = arith.constant 0 : i32
    %c0_i32_1 = arith.constant 0 : i32
    return %c0_i32, %c0_i32_0 : i32, i32
  }
  func.func @transform_5(%arg0: i32) -> (i32, i32) {
    %c0_i32 = arith.constant 0 : i32
    %c0_i32_0 = arith.constant 0 : i32
    %c0_i32_1 = arith.constant 0 : i32
    return %c0_i32, %c0_i32_0 : i32, i32
  }
  func.func @transform_6(%arg0: i32) -> (i32, i32) {
    %c0_i32 = arith.constant 0 : i32
    %c0_i32_0 = arith.constant 0 : i32
    %c0_i32_1 = arith.constant 0 : i32
    return %c0_i32, %c0_i32_0 : i32, i32
  }
  func.func @transform_7(%arg0: i32) -> (i32, i32, i32) {
    %c0_i32 = arith.constant 0 : i32
    %c0_i32_0 = arith.constant 0 : i32
    %c0_i32_1 = arith.constant 0 : i32
    return %arg0, %c0_i32, %c0_i32_0 : i32, i32, i32
  }
}

module attributes {stable_mosaic.version = 11 : i64} {
  func.func @_encoder_kernel(%arg0: i32, %arg1: memref<1x16x32xf32, #tpu.memory_space<vmem>>, %arg2: memref<32x16xbf16, #tpu.memory_space<vmem>>, %arg3: memref<1x16xf32, #tpu.memory_space<vmem>>, %arg4: memref<16x16xbf16, #tpu.memory_space<vmem>>, %arg5: memref<1x16xf32, #tpu.memory_space<vmem>>, %arg6: memref<16x16xbf16, #tpu.memory_space<vmem>>, %arg7: memref<1x16xf32, #tpu.memory_space<vmem>>, %arg8: memref<1x16x16xf32, #tpu.memory_space<vmem>>) attributes {dimension_semantics = [#tpu.dimension_semantics<parallel>], iteration_bounds = array<i64: 2>, scalar_prefetch = 0 : i64, scratch_operands = 0 : i64, tpu.core_type = #tpu.core_type<tc>, window_params = [{transform_indices = @transform_0, window_bounds = array<i64: 1, 16, 32>}, {pipeline_mode = #tpu.pipeline_mode<synchronous>, transform_indices = @transform_1, window_bounds = array<i64: 32, 16>}, {pipeline_mode = #tpu.pipeline_mode<synchronous>, transform_indices = @transform_2, window_bounds = array<i64: 1, 16>}, {pipeline_mode = #tpu.pipeline_mode<synchronous>, transform_indices = @transform_3, window_bounds = array<i64: 16, 16>}, {pipeline_mode = #tpu.pipeline_mode<synchronous>, transform_indices = @transform_4, window_bounds = array<i64: 1, 16>}, {pipeline_mode = #tpu.pipeline_mode<synchronous>, transform_indices = @transform_5, window_bounds = array<i64: 16, 16>}, {pipeline_mode = #tpu.pipeline_mode<synchronous>, transform_indices = @transform_6, window_bounds = array<i64: 1, 16>}, {transform_indices = @transform_7, window_bounds = array<i64: 1, 16, 16>}]} {
    %c0 = arith.constant 0 : index
    %c0_0 = arith.constant 0 : index
    %c0_1 = arith.constant 0 : index
    %0 = vector.load %arg1[%c0, %c0_0, %c0_1] : memref<1x16x32xf32, #tpu.memory_space<vmem>>, vector<1x16x32xf32>
    %1 = vector.shape_cast %0 : vector<1x16x32xf32> to vector<16x32xf32>
    %c0_2 = arith.constant 0 : index
    %c0_3 = arith.constant 0 : index
    %2 = vector.load %arg2[%c0_2, %c0_3] : memref<32x16xbf16, #tpu.memory_space<vmem>>, vector<32x16xbf16>
    %3 = arith.truncf %1 : vector<16x32xf32> to vector<16x32xbf16>
    %cst = arith.constant dense<0.000000e+00> : vector<16x16xf32>
    %4 = tpu.matmul %3, %2, %cst {dimension_numbers = #tpu.dot_dimension_numbers<[1], [0], [0], [1], [0, 0, 1, 1], [], []>} : vector<16x32xbf16>, vector<32x16xbf16>, vector<16x16xf32> -> vector<16x16xf32>
    %c0_4 = arith.constant 0 : index
    %c0_5 = arith.constant 0 : index
    %5 = vector.load %arg3[%c0_4, %c0_5] : memref<1x16xf32, #tpu.memory_space<vmem>>, vector<1x16xf32>
    %6 = vector.broadcast %5 : vector<1x16xf32> to vector<16x16xf32>
    %7 = arith.addf %4, %6 : vector<16x16xf32>
    %cst_6 = arith.constant 0.000000e+00 : f32
    %8 = vector.broadcast %cst_6 : f32 to vector<16x16xf32>
    %9 = arith.maximumf %7, %8 : vector<16x16xf32>
    %c0_7 = arith.constant 0 : index
    %c0_8 = arith.constant 0 : index
    %10 = vector.load %arg4[%c0_7, %c0_8] : memref<16x16xbf16, #tpu.memory_space<vmem>>, vector<16x16xbf16>
    %11 = arith.truncf %9 : vector<16x16xf32> to vector<16x16xbf16>
    %cst_9 = arith.constant dense<0.000000e+00> : vector<16x16xf32>
    %12 = tpu.matmul %11, %10, %cst_9 {dimension_numbers = #tpu.dot_dimension_numbers<[1], [0], [0], [1], [0, 0, 1, 1], [], []>} : vector<16x16xbf16>, vector<16x16xbf16>, vector<16x16xf32> -> vector<16x16xf32>
    %c0_10 = arith.constant 0 : index
    %c0_11 = arith.constant 0 : index
    %13 = vector.load %arg5[%c0_10, %c0_11] : memref<1x16xf32, #tpu.memory_space<vmem>>, vector<1x16xf32>
    %14 = vector.broadcast %13 : vector<1x16xf32> to vector<16x16xf32>
    %15 = arith.addf %12, %14 : vector<16x16xf32>
    %c0_12 = arith.constant 0 : index
    %c0_13 = arith.constant 0 : index
    %16 = vector.load %arg6[%c0_12, %c0_13] : memref<16x16xbf16, #tpu.memory_space<vmem>>, vector<16x16xbf16>
    %17 = arith.truncf %9 : vector<16x16xf32> to vector<16x16xbf16>
    %cst_14 = arith.constant dense<0.000000e+00> : vector<16x16xf32>
    %18 = tpu.matmul %17, %16, %cst_14 {dimension_numbers = #tpu.dot_dimension_numbers<[1], [0], [0], [1], [0, 0, 1, 1], [], []>} : vector<16x16xbf16>, vector<16x16xbf16>, vector<16x16xf32> -> vector<16x16xf32>
    %c0_15 = arith.constant 0 : index
    %c0_16 = arith.constant 0 : index
    %19 = vector.load %arg7[%c0_15, %c0_16] : memref<1x16xf32, #tpu.memory_space<vmem>>, vector<1x16xf32>
    %20 = vector.broadcast %19 : vector<1x16xf32> to vector<16x16xf32>
    %21 = arith.addf %18, %20 : vector<16x16xf32>
    %cst_17 = arith.constant 0.000000e+00 : f32
    %22 = vector.broadcast %cst_17 : f32 to vector<16x16xf32>
    %23 = arith.subf %22, %21 : vector<16x16xf32>
    %24 = math.exp %23 : vector<16x16xf32>
    %cst_18 = arith.constant 1.000000e+00 : f32
    %25 = vector.broadcast %cst_18 : f32 to vector<16x16xf32>
    %26 = arith.addf %25, %24 : vector<16x16xf32>
    %cst_19 = arith.constant 1.000000e+00 : f32
    %27 = vector.broadcast %cst_19 : f32 to vector<16x16xf32>
    %28 = arith.divf %27, %26 : vector<16x16xf32>
    %29 = arith.mulf %15, %28 : vector<16x16xf32>
    %c0_20 = arith.constant 0 : index
    %c0_21 = arith.constant 0 : index
    %c0_22 = arith.constant 0 : index
    %30 = vector.load %arg8[%c0_20, %c0_21, %c0_22] : memref<1x16x16xf32, #tpu.memory_space<vmem>>, vector<1x16x16xf32>
    %31 = vector.shape_cast %30 : vector<1x16x16xf32> to vector<16x16xf32>
    %32 = vector.shape_cast %29 : vector<16x16xf32> to vector<1x16x16xf32>
    tpu.vector_store %arg8[%c0_20, %c0_21, %c0_22], %32 {strides = array<i32>} : memref<1x16x16xf32, #tpu.memory_space<vmem>>, vector<1x16x16xf32>,
    return
  }
  func.func @transform_0(%arg0: i32) -> (i32, i32, i32) {
    %c0_i32 = arith.constant 0 : i32
    %c0_i32_0 = arith.constant 0 : i32
    %c0_i32_1 = arith.constant 0 : i32
    return %arg0, %c0_i32, %c0_i32_0 : i32, i32, i32
  }
  func.func @transform_1(%arg0: i32) -> (i32, i32) {
    %c0_i32 = arith.constant 0 : i32
    %c0_i32_0 = arith.constant 0 : i32
    %c0_i32_1 = arith.constant 0 : i32
    return %c0_i32, %c0_i32_0 : i32, i32
  }
  func.func @transform_2(%arg0: i32) -> (i32, i32) {
    %c0_i32 = arith.constant 0 : i32
    %c0_i32_0 = arith.constant 0 : i32
    %c0_i32_1 = arith.constant 0 : i32
    return %c0_i32, %c0_i32_0 : i32, i32
  }
  func.func @transform_3(%arg0: i32) -> (i32, i32) {
    %c0_i32 = arith.constant 0 : i32
    %c0_i32_0 = arith.constant 0 : i32
    %c0_i32_1 = arith.constant 0 : i32
    return %c0_i32, %c0_i32_0 : i32, i32
  }
  func.func @transform_4(%arg0: i32) -> (i32, i32) {
    %c0_i32 = arith.constant 0 : i32
    %c0_i32_0 = arith.constant 0 : i32
    %c0_i32_1 = arith.constant 0 : i32
    return %c0_i32, %c0_i32_0 : i32, i32
  }
  func.func @transform_5(%arg0: i32) -> (i32, i32) {
    %c0_i32 = arith.constant 0 : i32
    %c0_i32_0 = arith.constant 0 : i32
    %c0_i32_1 = arith.constant 0 : i32
    return %c0_i32, %c0_i32_0 : i32, i32
  }
  func.func @transform_6(%arg0: i32) -> (i32, i32) {
    %c0_i32 = arith.constant 0 : i32
    %c0_i32_0 = arith.constant 0 : i32
    %c0_i32_1 = arith.constant 0 : i32
    return %c0_i32, %c0_i32_0 : i32, i32
  }
  func.func @transform_7(%arg0: i32) -> (i32, i32, i32) {
    %c0_i32 = arith.constant 0 : i32
    %c0_i32_0 = arith.constant 0 : i32
    %c0_i32_1 = arith.constant 0 : i32
    return %arg0, %c0_i32, %c0_i32_0 : i32, i32, i32
  }
}

module attributes {stable_mosaic.version = 11 : i64} {
  func.func @_pointwise_kernel(%arg0: i32, %arg1: memref<1x7x32xf32, #tpu.memory_space<vmem>>, %arg2: memref<32x16xbf16, #tpu.memory_space<vmem>>, %arg3: memref<1x16xf32, #tpu.memory_space<vmem>>, %arg4: memref<1x7x16xf32, #tpu.memory_space<vmem>>) attributes {dimension_semantics = [#tpu.dimension_semantics<parallel>], iteration_bounds = array<i64: 2>, scalar_prefetch = 0 : i64, scratch_operands = 0 : i64, tpu.core_type = #tpu.core_type<tc>, window_params = [{transform_indices = @transform_0, window_bounds = array<i64: 1, 7, 32>}, {pipeline_mode = #tpu.pipeline_mode<synchronous>, transform_indices = @transform_1, window_bounds = array<i64: 32, 16>}, {pipeline_mode = #tpu.pipeline_mode<synchronous>, transform_indices = @transform_2, window_bounds = array<i64: 1, 16>}, {transform_indices = @transform_3, window_bounds = array<i64: 1, 7, 16>}]} {
    %c0 = arith.constant 0 : index
    %c0_0 = arith.constant 0 : index
    %c0_1 = arith.constant 0 : index
    %0 = vector.load %arg1[%c0, %c0_0, %c0_1] : memref<1x7x32xf32, #tpu.memory_space<vmem>>, vector<1x7x32xf32>
    %1 = vector.shape_cast %0 : vector<1x7x32xf32> to vector<7x32xf32>
    %c0_2 = arith.constant 0 : index
    %c0_3 = arith.constant 0 : index
    %2 = vector.load %arg2[%c0_2, %c0_3] : memref<32x16xbf16, #tpu.memory_space<vmem>>, vector<32x16xbf16>
    %3 = arith.truncf %1 : vector<7x32xf32> to vector<7x32xbf16>
    %cst = arith.constant dense<0.000000e+00> : vector<7x16xf32>
    %4 = tpu.matmul %3, %2, %cst {dimension_numbers = #tpu.dot_dimension_numbers<[1], [0], [0], [1], [0, 0, 1, 1], [], []>} : vector<7x32xbf16>, vector<32x16xbf16>, vector<7x16xf32> -> vector<7x16xf32>
    %c0_4 = arith.constant 0 : index
    %c0_5 = arith.constant 0 : index
    %5 = vector.load %arg3[%c0_4, %c0_5] : memref<1x16xf32, #tpu.memory_space<vmem>>, vector<1x16xf32>
    %6 = vector.broadcast %5 : vector<1x16xf32> to vector<7x16xf32>
    %7 = arith.addf %4, %6 : vector<7x16xf32>
    %c0_6 = arith.constant 0 : index
    %c0_7 = arith.constant 0 : index
    %c0_8 = arith.constant 0 : index
    %8 = vector.load %arg4[%c0_6, %c0_7, %c0_8] : memref<1x7x16xf32, #tpu.memory_space<vmem>>, vector<1x7x16xf32>
    %9 = vector.shape_cast %8 : vector<1x7x16xf32> to vector<7x16xf32>
    %10 = vector.shape_cast %7 : vector<7x16xf32> to vector<1x7x16xf32>
    tpu.vector_store %arg4[%c0_6, %c0_7, %c0_8], %10 {strides = array<i32>} : memref<1x7x16xf32, #tpu.memory_space<vmem>>, vector<1x7x16xf32>,
    return
  }
  func.func @transform_0(%arg0: i32) -> (i32, i32, i32) {
    %c0_i32 = arith.constant 0 : i32
    %c0_i32_0 = arith.constant 0 : i32
    %c0_i32_1 = arith.constant 0 : i32
    return %arg0, %c0_i32, %c0_i32_0 : i32, i32, i32
  }
  func.func @transform_1(%arg0: i32) -> (i32, i32) {
    %c0_i32 = arith.constant 0 : i32
    %c0_i32_0 = arith.constant 0 : i32
    %c0_i32_1 = arith.constant 0 : i32
    return %c0_i32, %c0_i32_0 : i32, i32
  }
  func.func @transform_2(%arg0: i32) -> (i32, i32) {
    %c0_i32 = arith.constant 0 : i32
    %c0_i32_0 = arith.constant 0 : i32
    %c0_i32_1 = arith.constant 0 : i32
    return %c0_i32, %c0_i32_0 : i32, i32
  }
  func.func @transform_3(%arg0: i32) -> (i32, i32, i32) {
    %c0_i32 = arith.constant 0 : i32
    %c0_i32_0 = arith.constant 0 : i32
    %c0_i32_1 = arith.constant 0 : i32
    return %arg0, %c0_i32, %c0_i32_0 : i32, i32, i32
  }
}

module attributes {stable_mosaic.version = 11 : i64} {
  func.func @_encoder_kernel(%arg0: i32, %arg1: memref<1x7x64xf32, #tpu.memory_space<vmem>>, %arg2: memref<64x32xbf16, #tpu.memory_space<vmem>>, %arg3: memref<1x32xf32, #tpu.memory_space<vmem>>, %arg4: memref<32x32xbf16, #tpu.memory_space<vmem>>, %arg5: memref<1x32xf32, #tpu.memory_space<vmem>>, %arg6: memref<32x32xbf16, #tpu.memory_space<vmem>>, %arg7: memref<1x32xf32, #tpu.memory_space<vmem>>, %arg8: memref<1x7x32xf32, #tpu.memory_space<vmem>>) attributes {dimension_semantics = [#tpu.dimension_semantics<parallel>], iteration_bounds = array<i64: 2>, scalar_prefetch = 0 : i64, scratch_operands = 0 : i64, tpu.core_type = #tpu.core_type<tc>, window_params = [{transform_indices = @transform_0, window_bounds = array<i64: 1, 7, 64>}, {pipeline_mode = #tpu.pipeline_mode<synchronous>, transform_indices = @transform_1, window_bounds = array<i64: 64, 32>}, {pipeline_mode = #tpu.pipeline_mode<synchronous>, transform_indices = @transform_2, window_bounds = array<i64: 1, 32>}, {pipeline_mode = #tpu.pipeline_mode<synchronous>, transform_indices = @transform_3, window_bounds = array<i64: 32, 32>}, {pipeline_mode = #tpu.pipeline_mode<synchronous>, transform_indices = @transform_4, window_bounds = array<i64: 1, 32>}, {pipeline_mode = #tpu.pipeline_mode<synchronous>, transform_indices = @transform_5, window_bounds = array<i64: 32, 32>}, {pipeline_mode = #tpu.pipeline_mode<synchronous>, transform_indices = @transform_6, window_bounds = array<i64: 1, 32>}, {transform_indices = @transform_7, window_bounds = array<i64: 1, 7, 32>}]} {
    %c0 = arith.constant 0 : index
    %c0_0 = arith.constant 0 : index
    %c0_1 = arith.constant 0 : index
    %0 = vector.load %arg1[%c0, %c0_0, %c0_1] : memref<1x7x64xf32, #tpu.memory_space<vmem>>, vector<1x7x64xf32>
    %1 = vector.shape_cast %0 : vector<1x7x64xf32> to vector<7x64xf32>
    %c0_2 = arith.constant 0 : index
    %c0_3 = arith.constant 0 : index
    %2 = vector.load %arg2[%c0_2, %c0_3] : memref<64x32xbf16, #tpu.memory_space<vmem>>, vector<64x32xbf16>
    %3 = arith.truncf %1 : vector<7x64xf32> to vector<7x64xbf16>
    %cst = arith.constant dense<0.000000e+00> : vector<7x32xf32>
    %4 = tpu.matmul %3, %2, %cst {dimension_numbers = #tpu.dot_dimension_numbers<[1], [0], [0], [1], [0, 0, 1, 1], [], []>} : vector<7x64xbf16>, vector<64x32xbf16>, vector<7x32xf32> -> vector<7x32xf32>
    %c0_4 = arith.constant 0 : index
    %c0_5 = arith.constant 0 : index
    %5 = vector.load %arg3[%c0_4, %c0_5] : memref<1x32xf32, #tpu.memory_space<vmem>>, vector<1x32xf32>
    %6 = vector.broadcast %5 : vector<1x32xf32> to vector<7x32xf32>
    %7 = arith.addf %4, %6 : vector<7x32xf32>
    %cst_6 = arith.constant 0.000000e+00 : f32
    %8 = vector.broadcast %cst_6 : f32 to vector<7x32xf32>
    %9 = arith.maximumf %7, %8 : vector<7x32xf32>
    %c0_7 = arith.constant 0 : index
    %c0_8 = arith.constant 0 : index
    %10 = vector.load %arg4[%c0_7, %c0_8] : memref<32x32xbf16, #tpu.memory_space<vmem>>, vector<32x32xbf16>
    %11 = arith.truncf %9 : vector<7x32xf32> to vector<7x32xbf16>
    %cst_9 = arith.constant dense<0.000000e+00> : vector<7x32xf32>
    %12 = tpu.matmul %11, %10, %cst_9 {dimension_numbers = #tpu.dot_dimension_numbers<[1], [0], [0], [1], [0, 0, 1, 1], [], []>} : vector<7x32xbf16>, vector<32x32xbf16>, vector<7x32xf32> -> vector<7x32xf32>
    %c0_10 = arith.constant 0 : index
    %c0_11 = arith.constant 0 : index
    %13 = vector.load %arg5[%c0_10, %c0_11] : memref<1x32xf32, #tpu.memory_space<vmem>>, vector<1x32xf32>
    %14 = vector.broadcast %13 : vector<1x32xf32> to vector<7x32xf32>
    %15 = arith.addf %12, %14 : vector<7x32xf32>
    %c0_12 = arith.constant 0 : index
    %c0_13 = arith.constant 0 : index
    %16 = vector.load %arg6[%c0_12, %c0_13] : memref<32x32xbf16, #tpu.memory_space<vmem>>, vector<32x32xbf16>
    %17 = arith.truncf %9 : vector<7x32xf32> to vector<7x32xbf16>
    %cst_14 = arith.constant dense<0.000000e+00> : vector<7x32xf32>
    %18 = tpu.matmul %17, %16, %cst_14 {dimension_numbers = #tpu.dot_dimension_numbers<[1], [0], [0], [1], [0, 0, 1, 1], [], []>} : vector<7x32xbf16>, vector<32x32xbf16>, vector<7x32xf32> -> vector<7x32xf32>
    %c0_15 = arith.constant 0 : index
    %c0_16 = arith.constant 0 : index
    %19 = vector.load %arg7[%c0_15, %c0_16] : memref<1x32xf32, #tpu.memory_space<vmem>>, vector<1x32xf32>
    %20 = vector.broadcast %19 : vector<1x32xf32> to vector<7x32xf32>
    %21 = arith.addf %18, %20 : vector<7x32xf32>
    %cst_17 = arith.constant 0.000000e+00 : f32
    %22 = vector.broadcast %cst_17 : f32 to vector<7x32xf32>
    %23 = arith.subf %22, %21 : vector<7x32xf32>
    %24 = math.exp %23 : vector<7x32xf32>
    %cst_18 = arith.constant 1.000000e+00 : f32
    %25 = vector.broadcast %cst_18 : f32 to vector<7x32xf32>
    %26 = arith.addf %25, %24 : vector<7x32xf32>
    %cst_19 = arith.constant 1.000000e+00 : f32
    %27 = vector.broadcast %cst_19 : f32 to vector<7x32xf32>
    %28 = arith.divf %27, %26 : vector<7x32xf32>
    %29 = arith.mulf %15, %28 : vector<7x32xf32>
    %c0_20 = arith.constant 0 : index
    %c0_21 = arith.constant 0 : index
    %c0_22 = arith.constant 0 : index
    %30 = vector.load %arg8[%c0_20, %c0_21, %c0_22] : memref<1x7x32xf32, #tpu.memory_space<vmem>>, vector<1x7x32xf32>
    %31 = vector.shape_cast %30 : vector<1x7x32xf32> to vector<7x32xf32>
    %32 = vector.shape_cast %29 : vector<7x32xf32> to vector<1x7x32xf32>
    tpu.vector_store %arg8[%c0_20, %c0_21, %c0_22], %32 {strides = array<i32>} : memref<1x7x32xf32, #tpu.memory_space<vmem>>, vector<1x7x32xf32>,
    return
  }
  func.func @transform_0(%arg0: i32) -> (i32, i32, i32) {
    %c0_i32 = arith.constant 0 : i32
    %c0_i32_0 = arith.constant 0 : i32
    %c0_i32_1 = arith.constant 0 : i32
    return %arg0, %c0_i32, %c0_i32_0 : i32, i32, i32
  }
  func.func @transform_1(%arg0: i32) -> (i32, i32) {
    %c0_i32 = arith.constant 0 : i32
    %c0_i32_0 = arith.constant 0 : i32
    %c0_i32_1 = arith.constant 0 : i32
    return %c0_i32, %c0_i32_0 : i32, i32
  }
  func.func @transform_2(%arg0: i32) -> (i32, i32) {
    %c0_i32 = arith.constant 0 : i32
    %c0_i32_0 = arith.constant 0 : i32
    %c0_i32_1 = arith.constant 0 : i32
    return %c0_i32, %c0_i32_0 : i32, i32
  }
  func.func @transform_3(%arg0: i32) -> (i32, i32) {
    %c0_i32 = arith.constant 0 : i32
    %c0_i32_0 = arith.constant 0 : i32
    %c0_i32_1 = arith.constant 0 : i32
    return %c0_i32, %c0_i32_0 : i32, i32
  }
  func.func @transform_4(%arg0: i32) -> (i32, i32) {
    %c0_i32 = arith.constant 0 : i32
    %c0_i32_0 = arith.constant 0 : i32
    %c0_i32_1 = arith.constant 0 : i32
    return %c0_i32, %c0_i32_0 : i32, i32
  }
  func.func @transform_5(%arg0: i32) -> (i32, i32) {
    %c0_i32 = arith.constant 0 : i32
    %c0_i32_0 = arith.constant 0 : i32
    %c0_i32_1 = arith.constant 0 : i32
    return %c0_i32, %c0_i32_0 : i32, i32
  }
  func.func @transform_6(%arg0: i32) -> (i32, i32) {
    %c0_i32 = arith.constant 0 : i32
    %c0_i32_0 = arith.constant 0 : i32
    %c0_i32_1 = arith.constant 0 : i32
    return %c0_i32, %c0_i32_0 : i32, i32
  }
  func.func @transform_7(%arg0: i32) -> (i32, i32, i32) {
    %c0_i32 = arith.constant 0 : i32
    %c0_i32_0 = arith.constant 0 : i32
    %c0_i32_1 = arith.constant 0 : i32
    return %arg0, %c0_i32, %c0_i32_0 : i32, i32, i32
  }
}

module attributes {stable_mosaic.version = 11 : i64} {
  func.func @_final_kernel(%arg0: i32, %arg1: memref<1x7x16xf32, #tpu.memory_space<vmem>>, %arg2: memref<1x7x16xf32, #tpu.memory_space<vmem>>, %arg3: memref<1x16xf32, #tpu.memory_space<vmem>>, %arg4: memref<1x16xf32, #tpu.memory_space<vmem>>, %arg5: memref<16x32xbf16, #tpu.memory_space<vmem>>, %arg6: memref<1x32xf32, #tpu.memory_space<vmem>>, %arg7: memref<1x7x32xf32, #tpu.memory_space<vmem>>) attributes {dimension_semantics = [#tpu.dimension_semantics<parallel>], iteration_bounds = array<i64: 2>, scalar_prefetch = 0 : i64, scratch_operands = 0 : i64, tpu.core_type = #tpu.core_type<tc>, window_params = [{transform_indices = @transform_0, window_bounds = array<i64: 1, 7, 16>}, {transform_indices = @transform_1, window_bounds = array<i64: 1, 7, 16>}, {pipeline_mode = #tpu.pipeline_mode<synchronous>, transform_indices = @transform_2, window_bounds = array<i64: 1, 16>}, {pipeline_mode = #tpu.pipeline_mode<synchronous>, transform_indices = @transform_3, window_bounds = array<i64: 1, 16>}, {pipeline_mode = #tpu.pipeline_mode<synchronous>, transform_indices = @transform_4, window_bounds = array<i64: 16, 32>}, {pipeline_mode = #tpu.pipeline_mode<synchronous>, transform_indices = @transform_5, window_bounds = array<i64: 1, 32>}, {transform_indices = @transform_6, window_bounds = array<i64: 1, 7, 32>}]} {
    %c0 = arith.constant 0 : index
    %c0_0 = arith.constant 0 : index
    %c0_1 = arith.constant 0 : index
    %0 = vector.load %arg1[%c0, %c0_0, %c0_1] : memref<1x7x16xf32, #tpu.memory_space<vmem>>, vector<1x7x16xf32>
    %1 = vector.shape_cast %0 : vector<1x7x16xf32> to vector<7x16xf32>
    %c0_2 = arith.constant 0 : index
    %c0_3 = arith.constant 0 : index
    %c0_4 = arith.constant 0 : index
    %2 = vector.load %arg2[%c0_2, %c0_3, %c0_4] : memref<1x7x16xf32, #tpu.memory_space<vmem>>, vector<1x7x16xf32>
    %3 = vector.shape_cast %2 : vector<1x7x16xf32> to vector<7x16xf32>
    %4 = arith.addf %1, %3 : vector<7x16xf32>
    %c0_5 = arith.constant 0 : index
    %c0_6 = arith.constant 0 : index
    %5 = vector.load %arg3[%c0_5, %c0_6] : memref<1x16xf32, #tpu.memory_space<vmem>>, vector<1x16xf32>
    %c0_7 = arith.constant 0 : index
    %c0_8 = arith.constant 0 : index
    %6 = vector.load %arg4[%c0_7, %c0_8] : memref<1x16xf32, #tpu.memory_space<vmem>>, vector<1x16xf32>
    %cst = arith.constant dense<0.000000e+00> : vector<7xf32>
    %7 = vector.multi_reduction <add>, %4, %cst [1] : vector<7x16xf32> to vector<7xf32>
    %8 = vector.shape_cast %7 : vector<7xf32> to vector<7x1xf32>
    %cst_9 = arith.constant 1.600000e+01 : f32
    %9 = vector.broadcast %cst_9 : f32 to vector<7x1xf32>
    %10 = arith.divf %8, %9 : vector<7x1xf32>
    %11 = vector.broadcast %10 : vector<7x1xf32> to vector<7x16xf32>
    %12 = arith.subf %4, %11 : vector<7x16xf32>
    %13 = arith.mulf %12, %12 : vector<7x16xf32>
    %cst_10 = arith.constant dense<0.000000e+00> : vector<7xf32>
    %14 = vector.multi_reduction <add>, %13, %cst_10 [1] : vector<7x16xf32> to vector<7xf32>
    %15 = vector.shape_cast %14 : vector<7xf32> to vector<7x1xf32>
    %cst_11 = arith.constant 1.600000e+01 : f32
    %16 = vector.broadcast %cst_11 : f32 to vector<7x1xf32>
    %17 = arith.divf %15, %16 : vector<7x1xf32>
    %cst_12 = arith.constant 9.99999974E-6 : f32
    %18 = vector.broadcast %cst_12 : f32 to vector<7x1xf32>
    %19 = arith.addf %17, %18 : vector<7x1xf32>
    %20 = math.rsqrt %19 : vector<7x1xf32>
    %21 = vector.broadcast %20 : vector<7x1xf32> to vector<7x16xf32>
    %22 = arith.mulf %12, %21 : vector<7x16xf32>
    %23 = vector.broadcast %5 : vector<1x16xf32> to vector<7x16xf32>
    %24 = arith.mulf %22, %23 : vector<7x16xf32>
    %25 = vector.broadcast %6 : vector<1x16xf32> to vector<7x16xf32>
    %26 = arith.addf %24, %25 : vector<7x16xf32>
    %c0_13 = arith.constant 0 : index
    %c0_14 = arith.constant 0 : index
    %27 = vector.load %arg5[%c0_13, %c0_14] : memref<16x32xbf16, #tpu.memory_space<vmem>>, vector<16x32xbf16>
    %28 = arith.truncf %26 : vector<7x16xf32> to vector<7x16xbf16>
    %cst_15 = arith.constant dense<0.000000e+00> : vector<7x32xf32>
    %29 = tpu.matmul %28, %27, %cst_15 {dimension_numbers = #tpu.dot_dimension_numbers<[1], [0], [0], [1], [0, 0, 1, 1], [], []>} : vector<7x16xbf16>, vector<16x32xbf16>, vector<7x32xf32> -> vector<7x32xf32>
    %c0_16 = arith.constant 0 : index
    %c0_17 = arith.constant 0 : index
    %30 = vector.load %arg6[%c0_16, %c0_17] : memref<1x32xf32, #tpu.memory_space<vmem>>, vector<1x32xf32>
    %31 = vector.broadcast %30 : vector<1x32xf32> to vector<7x32xf32>
    %32 = arith.addf %29, %31 : vector<7x32xf32>
    %c0_18 = arith.constant 0 : index
    %c0_19 = arith.constant 0 : index
    %c0_20 = arith.constant 0 : index
    %33 = vector.load %arg7[%c0_18, %c0_19, %c0_20] : memref<1x7x32xf32, #tpu.memory_space<vmem>>, vector<1x7x32xf32>
    %34 = vector.shape_cast %33 : vector<1x7x32xf32> to vector<7x32xf32>
    %35 = vector.shape_cast %32 : vector<7x32xf32> to vector<1x7x32xf32>
    tpu.vector_store %arg7[%c0_18, %c0_19, %c0_20], %35 {strides = array<i32>} : memref<1x7x32xf32, #tpu.memory_space<vmem>>, vector<1x7x32xf32>,
    return
  }
  func.func @transform_0(%arg0: i32) -> (i32, i32, i32) {
    %c0_i32 = arith.constant 0 : i32
    %c0_i32_0 = arith.constant 0 : i32
    %c0_i32_1 = arith.constant 0 : i32
    return %arg0, %c0_i32, %c0_i32_0 : i32, i32, i32
  }
  func.func @transform_1(%arg0: i32) -> (i32, i32, i32) {
    %c0_i32 = arith.constant 0 : i32
    %c0_i32_0 = arith.constant 0 : i32
    %c0_i32_1 = arith.constant 0 : i32
    return %arg0, %c0_i32, %c0_i32_0 : i32, i32, i32
  }
  func.func @transform_2(%arg0: i32) -> (i32, i32) {
    %c0_i32 = arith.constant 0 : i32
    %c0_i32_0 = arith.constant 0 : i32
    %c0_i32_1 = arith.constant 0 : i32
    return %c0_i32, %c0_i32_0 : i32, i32
  }
  func.func @transform_3(%arg0: i32) -> (i32, i32) {
    %c0_i32 = arith.constant 0 : i32
    %c0_i32_0 = arith.constant 0 : i32
    %c0_i32_1 = arith.constant 0 : i32
    return %c0_i32, %c0_i32_0 : i32, i32
  }
  func.func @transform_4(%arg0: i32) -> (i32, i32) {
    %c0_i32 = arith.constant 0 : i32
    %c0_i32_0 = arith.constant 0 : i32
    %c0_i32_1 = arith.constant 0 : i32
    return %c0_i32, %c0_i32_0 : i32, i32
  }
  func.func @transform_5(%arg0: i32) -> (i32, i32) {
    %c0_i32 = arith.constant 0 : i32
    %c0_i32_0 = arith.constant 0 : i32
    %c0_i32_1 = arith.constant 0 : i32
    return %c0_i32, %c0_i32_0 : i32, i32
  }
  func.func @transform_6(%arg0: i32) -> (i32, i32, i32) {
    %c0_i32 = arith.constant 0 : i32
    %c0_i32_0 = arith.constant 0 : i32
    %c0_i32_1 = arith.constant 0 : i32
    return %arg0, %c0_i32, %c0_i32_0 : i32, i32, i32
  }
}

module attributes {stable_mosaic.version = 11 : i64} {
  func.func @_mamba_kernel(%arg0: i32, %arg1: memref<1x7x16xf32, #tpu.memory_space<vmem>>, %arg2: memref<1x7x16xf32, #tpu.memory_space<vmem>>, %arg3: memref<1x16xf32, #tpu.memory_space<vmem>>, %arg4: memref<1x16xf32, #tpu.memory_space<vmem>>, %arg5: memref<16x32xbf16, #tpu.memory_space<vmem>>, %arg6: memref<16x32xbf16, #tpu.memory_space<vmem>>, %arg7: memref<4x32xf32, #tpu.memory_space<vmem>>, %arg8: memref<1x32xf32, #tpu.memory_space<vmem>>, %arg9: memref<32x32xbf16, #tpu.memory_space<vmem>>, %arg10: memref<32x4xbf16, #tpu.memory_space<vmem>>, %arg11: memref<32x4xbf16, #tpu.memory_space<vmem>>, %arg12: memref<1x32xf32, #tpu.memory_space<vmem>>, %arg13: memref<4x32xf32, #tpu.memory_space<vmem>>, %arg14: memref<1x32xf32, #tpu.memory_space<vmem>>, %arg15: memref<32x16xbf16, #tpu.memory_space<vmem>>, %arg16: memref<1x7x16xf32, #tpu.memory_space<vmem>>, %arg17: memref<1x7x16xf32, #tpu.memory_space<vmem>>) attributes {dimension_semantics = [#tpu.dimension_semantics<parallel>], iteration_bounds = array<i64: 2>, scalar_prefetch = 0 : i64, scratch_operands = 0 : i64, tpu.core_type = #tpu.core_type<tc>, window_params = [{transform_indices = @transform_0, window_bounds = array<i64: 1, 7, 16>}, {transform_indices = @transform_1, window_bounds = array<i64: 1, 7, 16>}, {pipeline_mode = #tpu.pipeline_mode<synchronous>, transform_indices = @transform_2, window_bounds = array<i64: 1, 16>}, {pipeline_mode = #tpu.pipeline_mode<synchronous>, transform_indices = @transform_3, window_bounds = array<i64: 1, 16>}, {pipeline_mode = #tpu.pipeline_mode<synchronous>, transform_indices = @transform_4, window_bounds = array<i64: 16, 32>}, {pipeline_mode = #tpu.pipeline_mode<synchronous>, transform_indices = @transform_5, window_bounds = array<i64: 16, 32>}, {pipeline_mode = #tpu.pipeline_mode<synchronous>, transform_indices = @transform_6, window_bounds = array<i64: 4, 32>}, {pipeline_mode = #tpu.pipeline_mode<synchronous>, transform_indices = @transform_7, window_bounds = array<i64: 1, 32>}, {pipeline_mode = #tpu.pipeline_mode<synchronous>, transform_indices = @transform_8, window_bounds = array<i64: 32, 32>}, {pipeline_mode = #tpu.pipeline_mode<synchronous>, transform_indices = @transform_9, window_bounds = array<i64: 32, 4>}, {pipeline_mode = #tpu.pipeline_mode<synchronous>, transform_indices = @transform_10, window_bounds = array<i64: 32, 4>}, {pipeline_mode = #tpu.pipeline_mode<synchronous>, transform_indices = @transform_11, window_bounds = array<i64: 1, 32>}, {pipeline_mode = #tpu.pipeline_mode<synchronous>, transform_indices = @transform_12, window_bounds = array<i64: 4, 32>}, {pipeline_mode = #tpu.pipeline_mode<synchronous>, transform_indices = @transform_13, window_bounds = array<i64: 1, 32>}, {pipeline_mode = #tpu.pipeline_mode<synchronous>, transform_indices = @transform_14, window_bounds = array<i64: 32, 16>}, {transform_indices = @transform_15, window_bounds = array<i64: 1, 7, 16>}, {transform_indices = @transform_16, window_bounds = array<i64: 1, 7, 16>}]} {
    %c0 = arith.constant 0 : index
    %c0_0 = arith.constant 0 : index
    %c0_1 = arith.constant 0 : index
    %0 = vector.load %arg1[%c0, %c0_0, %c0_1] : memref<1x7x16xf32, #tpu.memory_space<vmem>>, vector<1x7x16xf32>
    %1 = vector.shape_cast %0 : vector<1x7x16xf32> to vector<7x16xf32>
    %c0_2 = arith.constant 0 : index
    %c0_3 = arith.constant 0 : index
    %c0_4 = arith.constant 0 : index
    %2 = vector.load %arg2[%c0_2, %c0_3, %c0_4] : memref<1x7x16xf32, #tpu.memory_space<vmem>>, vector<1x7x16xf32>
    %3 = vector.shape_cast %2 : vector<1x7x16xf32> to vector<7x16xf32>
    %4 = arith.addf %1, %3 : vector<7x16xf32>
    %c0_5 = arith.constant 0 : index
    %c0_6 = arith.constant 0 : index
    %c0_7 = arith.constant 0 : index
    %5 = vector.load %arg17[%c0_5, %c0_6, %c0_7] : memref<1x7x16xf32, #tpu.memory_space<vmem>>, vector<1x7x16xf32>
    %6 = vector.shape_cast %5 : vector<1x7x16xf32> to vector<7x16xf32>
    %7 = vector.shape_cast %4 : vector<7x16xf32> to vector<1x7x16xf32>
    tpu.vector_store %arg17[%c0_5, %c0_6, %c0_7], %7 {strides = array<i32>} : memref<1x7x16xf32, #tpu.memory_space<vmem>>, vector<1x7x16xf32>,
    %c0_8 = arith.constant 0 : index
    %c0_9 = arith.constant 0 : index
    %8 = vector.load %arg3[%c0_8, %c0_9] : memref<1x16xf32, #tpu.memory_space<vmem>>, vector<1x16xf32>
    %c0_10 = arith.constant 0 : index
    %c0_11 = arith.constant 0 : index
    %9 = vector.load %arg4[%c0_10, %c0_11] : memref<1x16xf32, #tpu.memory_space<vmem>>, vector<1x16xf32>
    %cst = arith.constant dense<0.000000e+00> : vector<7xf32>
    %10 = vector.multi_reduction <add>, %4, %cst [1] : vector<7x16xf32> to vector<7xf32>
    %11 = vector.shape_cast %10 : vector<7xf32> to vector<7x1xf32>
    %cst_12 = arith.constant 1.600000e+01 : f32
    %12 = vector.broadcast %cst_12 : f32 to vector<7x1xf32>
    %13 = arith.divf %11, %12 : vector<7x1xf32>
    %14 = vector.broadcast %13 : vector<7x1xf32> to vector<7x16xf32>
    %15 = arith.subf %4, %14 : vector<7x16xf32>
    %16 = arith.mulf %15, %15 : vector<7x16xf32>
    %cst_13 = arith.constant dense<0.000000e+00> : vector<7xf32>
    %17 = vector.multi_reduction <add>, %16, %cst_13 [1] : vector<7x16xf32> to vector<7xf32>
    %18 = vector.shape_cast %17 : vector<7xf32> to vector<7x1xf32>
    %cst_14 = arith.constant 1.600000e+01 : f32
    %19 = vector.broadcast %cst_14 : f32 to vector<7x1xf32>
    %20 = arith.divf %18, %19 : vector<7x1xf32>
    %cst_15 = arith.constant 9.99999974E-6 : f32
    %21 = vector.broadcast %cst_15 : f32 to vector<7x1xf32>
    %22 = arith.addf %20, %21 : vector<7x1xf32>
    %23 = math.rsqrt %22 : vector<7x1xf32>
    %24 = vector.broadcast %23 : vector<7x1xf32> to vector<7x16xf32>
    %25 = arith.mulf %15, %24 : vector<7x16xf32>
    %26 = vector.broadcast %8 : vector<1x16xf32> to vector<7x16xf32>
    %27 = arith.mulf %25, %26 : vector<7x16xf32>
    %28 = vector.broadcast %9 : vector<1x16xf32> to vector<7x16xf32>
    %29 = arith.addf %27, %28 : vector<7x16xf32>
    %c0_16 = arith.constant 0 : index
    %c0_17 = arith.constant 0 : index
    %30 = vector.load %arg5[%c0_16, %c0_17] : memref<16x32xbf16, #tpu.memory_space<vmem>>, vector<16x32xbf16>
    %31 = arith.truncf %29 : vector<7x16xf32> to vector<7x16xbf16>
    %cst_18 = arith.constant dense<0.000000e+00> : vector<7x32xf32>
    %32 = tpu.matmul %31, %30, %cst_18 {dimension_numbers = #tpu.dot_dimension_numbers<[1], [0], [0], [1], [0, 0, 1, 1], [], []>} : vector<7x16xbf16>, vector<16x32xbf16>, vector<7x32xf32> -> vector<7x32xf32>
    %c0_19 = arith.constant 0 : index
    %c0_20 = arith.constant 0 : index
    %33 = vector.load %arg6[%c0_19, %c0_20] : memref<16x32xbf16, #tpu.memory_space<vmem>>, vector<16x32xbf16>
    %34 = arith.truncf %29 : vector<7x16xf32> to vector<7x16xbf16>
    %cst_21 = arith.constant dense<0.000000e+00> : vector<7x32xf32>
    %35 = tpu.matmul %34, %33, %cst_21 {dimension_numbers = #tpu.dot_dimension_numbers<[1], [0], [0], [1], [0, 0, 1, 1], [], []>} : vector<7x16xbf16>, vector<16x32xbf16>, vector<7x32xf32> -> vector<7x32xf32>
    %c0_22 = arith.constant 0 : index
    %c0_23 = arith.constant 0 : index
    %36 = vector.load %arg7[%c0_22, %c0_23] : memref<4x32xf32, #tpu.memory_space<vmem>>, vector<4x32xf32>
    %cst_24 = arith.constant 0.000000e+00 : f32
    %37 = vector.broadcast %cst_24 : f32 to vector<3x32xf32>
    %38 = tpu.concatenate %37, %32 in 0 : vector<3x32xf32>, vector<7x32xf32> -> vector<10x32xf32>
    %cst_25 = arith.constant 0.000000e+00 : f32
    %39 = vector.broadcast %cst_25 : f32 to vector<7x32xf32>
    %c0_26 = arith.constant 0 : index
    %c0_27 = arith.constant 0 : index
    %40 = vector.load %arg8[%c0_26, %c0_27] : memref<1x32xf32, #tpu.memory_space<vmem>>, vector<1x32xf32>
    %41 = vector.broadcast %40 : vector<1x32xf32> to vector<7x32xf32>
    %42 = arith.addf %39, %41 : vector<7x32xf32>
    %43 = vector.extract_strided_slice %38 {offsets = [0, 0], sizes = [7, 32], strides = [1, 1]} : vector<10x32xf32> to vector<7x32xf32>
    %44 = vector.extract_strided_slice %36 {offsets = [0, 0], sizes = [1, 32], strides = [1, 1]} : vector<4x32xf32> to vector<1x32xf32>
    %45 = vector.broadcast %44 : vector<1x32xf32> to vector<7x32xf32>
    %46 = arith.mulf %43, %45 : vector<7x32xf32>
    %47 = arith.addf %42, %46 : vector<7x32xf32>
    %48 = vector.extract_strided_slice %38 {offsets = [1, 0], sizes = [7, 32], strides = [1, 1]} : vector<10x32xf32> to vector<7x32xf32>
    %49 = vector.extract_strided_slice %36 {offsets = [1, 0], sizes = [1, 32], strides = [1, 1]} : vector<4x32xf32> to vector<1x32xf32>
    %50 = vector.broadcast %49 : vector<1x32xf32> to vector<7x32xf32>
    %51 = arith.mulf %48, %50 : vector<7x32xf32>
    %52 = arith.addf %47, %51 : vector<7x32xf32>
    %53 = vector.extract_strided_slice %38 {offsets = [2, 0], sizes = [7, 32], strides = [1, 1]} : vector<10x32xf32> to vector<7x32xf32>
    %54 = vector.extract_strided_slice %36 {offsets = [2, 0], sizes = [1, 32], strides = [1, 1]} : vector<4x32xf32> to vector<1x32xf32>
    %55 = vector.broadcast %54 : vector<1x32xf32> to vector<7x32xf32>
    %56 = arith.mulf %53, %55 : vector<7x32xf32>
    %57 = arith.addf %52, %56 : vector<7x32xf32>
    %58 = vector.extract_strided_slice %38 {offsets = [3, 0], sizes = [7, 32], strides = [1, 1]} : vector<10x32xf32> to vector<7x32xf32>
    %59 = vector.extract_strided_slice %36 {offsets = [3, 0], sizes = [1, 32], strides = [1, 1]} : vector<4x32xf32> to vector<1x32xf32>
    %60 = vector.broadcast %59 : vector<1x32xf32> to vector<7x32xf32>
    %61 = arith.mulf %58, %60 : vector<7x32xf32>
    %62 = arith.addf %57, %61 : vector<7x32xf32>
    %cst_28 = arith.constant 0.000000e+00 : f32
    %63 = vector.broadcast %cst_28 : f32 to vector<7x32xf32>
    %64 = arith.subf %63, %62 : vector<7x32xf32>
    %65 = math.exp %64 : vector<7x32xf32>
    %cst_29 = arith.constant 1.000000e+00 : f32
    %66 = vector.broadcast %cst_29 : f32 to vector<7x32xf32>
    %67 = arith.addf %66, %65 : vector<7x32xf32>
    %cst_30 = arith.constant 1.000000e+00 : f32
    %68 = vector.broadcast %cst_30 : f32 to vector<7x32xf32>
    %69 = arith.divf %68, %67 : vector<7x32xf32>
    %70 = arith.mulf %62, %69 : vector<7x32xf32>
    %c0_31 = arith.constant 0 : index
    %c0_32 = arith.constant 0 : index
    %71 = vector.load %arg9[%c0_31, %c0_32] : memref<32x32xbf16, #tpu.memory_space<vmem>>, vector<32x32xbf16>
    %72 = arith.truncf %70 : vector<7x32xf32> to vector<7x32xbf16>
    %cst_33 = arith.constant dense<0.000000e+00> : vector<7x32xf32>
    %73 = tpu.matmul %72, %71, %cst_33 {dimension_numbers = #tpu.dot_dimension_numbers<[1], [0], [0], [1], [0, 0, 1, 1], [], []>} : vector<7x32xbf16>, vector<32x32xbf16>, vector<7x32xf32> -> vector<7x32xf32>
    %c0_34 = arith.constant 0 : index
    %c0_35 = arith.constant 0 : index
    %74 = vector.load %arg12[%c0_34, %c0_35] : memref<1x32xf32, #tpu.memory_space<vmem>>, vector<1x32xf32>
    %75 = vector.broadcast %74 : vector<1x32xf32> to vector<7x32xf32>
    %76 = arith.addf %73, %75 : vector<7x32xf32>
    %cst_36 = arith.constant 0.000000e+00 : f32
    %77 = vector.broadcast %cst_36 : f32 to vector<7x32xf32>
    %78 = arith.maximumf %76, %77 : vector<7x32xf32>
    %79 = math.absf %76 : vector<7x32xf32>
    %cst_37 = arith.constant 0.000000e+00 : f32
    %80 = vector.broadcast %cst_37 : f32 to vector<7x32xf32>
    %81 = arith.subf %80, %79 : vector<7x32xf32>
    %82 = math.exp %81 : vector<7x32xf32>
    %cst_38 = arith.constant 1.000000e+00 : f32
    %83 = vector.broadcast %cst_38 : f32 to vector<7x32xf32>
    %84 = arith.addf %83, %82 : vector<7x32xf32>
    %85 = math.log %84 : vector<7x32xf32>
    %86 = arith.addf %78, %85 : vector<7x32xf32>
    %c0_39 = arith.constant 0 : index
    %c0_40 = arith.constant 0 : index
    %87 = vector.load %arg10[%c0_39, %c0_40] : memref<32x4xbf16, #tpu.memory_space<vmem>>, vector<32x4xbf16>
    %88 = arith.truncf %70 : vector<7x32xf32> to vector<7x32xbf16>
    %cst_41 = arith.constant dense<0.000000e+00> : vector<7x4xf32>
    %89 = tpu.matmul %88, %87, %cst_41 {dimension_numbers = #tpu.dot_dimension_numbers<[1], [0], [0], [1], [0, 0, 1, 1], [], []>} : vector<7x32xbf16>, vector<32x4xbf16>, vector<7x4xf32> -> vector<7x4xf32>
    %c0_42 = arith.constant 0 : index
    %c0_43 = arith.constant 0 : index
    %90 = vector.load %arg11[%c0_42, %c0_43] : memref<32x4xbf16, #tpu.memory_space<vmem>>, vector<32x4xbf16>
    %91 = arith.truncf %70 : vector<7x32xf32> to vector<7x32xbf16>
    %cst_44 = arith.constant dense<0.000000e+00> : vector<7x4xf32>
    %92 = tpu.matmul %91, %90, %cst_44 {dimension_numbers = #tpu.dot_dimension_numbers<[1], [0], [0], [1], [0, 0, 1, 1], [], []>} : vector<7x32xbf16>, vector<32x4xbf16>, vector<7x4xf32> -> vector<7x4xf32>
    %c0_45 = arith.constant 0 : index
    %c0_46 = arith.constant 0 : index
    %93 = vector.load %arg13[%c0_45, %c0_46] : memref<4x32xf32, #tpu.memory_space<vmem>>, vector<4x32xf32>
    %94 = arith.mulf %86, %70 : vector<7x32xf32>
    %95 = vector.extract_strided_slice %93 {offsets = [0, 0], sizes = [1, 32], strides = [1, 1]} : vector<4x32xf32> to vector<1x32xf32>
    %96 = vector.broadcast %95 : vector<1x32xf32> to vector<7x32xf32>
    %97 = arith.mulf %86, %96 : vector<7x32xf32>
    %98 = math.exp %97 : vector<7x32xf32>
    %99 = vector.extract_strided_slice %89 {offsets = [0, 0], sizes = [7, 1], strides = [1, 1]} : vector<7x4xf32> to vector<7x1xf32>
    %100 = vector.broadcast %99 : vector<7x1xf32> to vector<7x32xf32>
    %101 = arith.mulf %94, %100 : vector<7x32xf32>
    %102 = vector.extract_strided_slice %92 {offsets = [0, 0], sizes = [7, 1], strides = [1, 1]} : vector<7x4xf32> to vector<7x1xf32>
    %103 = vector.shape_cast %102 : vector<7x1xf32> to vector<7x1xf32>
    %104 = vector.broadcast %103 : vector<7x1xf32> to vector<7x32xf32>
    %105 = vector.extract_strided_slice %93 {offsets = [1, 0], sizes = [1, 32], strides = [1, 1]} : vector<4x32xf32> to vector<1x32xf32>
    %106 = vector.broadcast %105 : vector<1x32xf32> to vector<7x32xf32>
    %107 = arith.mulf %86, %106 : vector<7x32xf32>
    %108 = math.exp %107 : vector<7x32xf32>
    %109 = vector.extract_strided_slice %89 {offsets = [0, 1], sizes = [7, 1], strides = [1, 1]} : vector<7x4xf32> to vector<7x1xf32>
    %110 = vector.broadcast %109 : vector<7x1xf32> to vector<7x32xf32>
    %111 = arith.mulf %94, %110 : vector<7x32xf32>
    %112 = vector.extract_strided_slice %92 {offsets = [0, 1], sizes = [7, 1], strides = [1, 1]} : vector<7x4xf32> to vector<7x1xf32>
    %113 = vector.shape_cast %112 : vector<7x1xf32> to vector<7x1xf32>
    %114 = vector.broadcast %113 : vector<7x1xf32> to vector<7x32xf32>
    %115 = vector.extract_strided_slice %93 {offsets = [2, 0], sizes = [1, 32], strides = [1, 1]} : vector<4x32xf32> to vector<1x32xf32>
    %116 = vector.broadcast %115 : vector<1x32xf32> to vector<7x32xf32>
    %117 = arith.mulf %86, %116 : vector<7x32xf32>
    %118 = math.exp %117 : vector<7x32xf32>
    %119 = vector.extract_strided_slice %89 {offsets = [0, 2], sizes = [7, 1], strides = [1, 1]} : vector<7x4xf32> to vector<7x1xf32>
    %120 = vector.broadcast %119 : vector<7x1xf32> to vector<7x32xf32>
    %121 = arith.mulf %94, %120 : vector<7x32xf32>
    %122 = vector.extract_strided_slice %92 {offsets = [0, 2], sizes = [7, 1], strides = [1, 1]} : vector<7x4xf32> to vector<7x1xf32>
    %123 = vector.shape_cast %122 : vector<7x1xf32> to vector<7x1xf32>
    %124 = vector.broadcast %123 : vector<7x1xf32> to vector<7x32xf32>
    %125 = vector.extract_strided_slice %93 {offsets = [3, 0], sizes = [1, 32], strides = [1, 1]} : vector<4x32xf32> to vector<1x32xf32>
    %126 = vector.broadcast %125 : vector<1x32xf32> to vector<7x32xf32>
    %127 = arith.mulf %86, %126 : vector<7x32xf32>
    %128 = math.exp %127 : vector<7x32xf32>
    %129 = vector.extract_strided_slice %89 {offsets = [0, 3], sizes = [7, 1], strides = [1, 1]} : vector<7x4xf32> to vector<7x1xf32>
    %130 = vector.broadcast %129 : vector<7x1xf32> to vector<7x32xf32>
    %131 = arith.mulf %94, %130 : vector<7x32xf32>
    %132 = vector.extract_strided_slice %92 {offsets = [0, 3], sizes = [7, 1], strides = [1, 1]} : vector<7x4xf32> to vector<7x1xf32>
    %133 = vector.shape_cast %132 : vector<7x1xf32> to vector<7x1xf32>
    %134 = vector.broadcast %133 : vector<7x1xf32> to vector<7x32xf32>
    %cst_47 = arith.constant 0.000000e+00 : f32
    %135 = vector.broadcast %cst_47 : f32 to vector<1x32xf32>
    %cst_48 = arith.constant 0.000000e+00 : f32
    %136 = vector.broadcast %cst_48 : f32 to vector<1x32xf32>
    %137 = vector.extract_strided_slice %98 {offsets = [0, 0], sizes = [1, 32], strides = [1, 1]} : vector<7x32xf32> to vector<1x32xf32>
    %138 = arith.mulf %137, %135 : vector<1x32xf32>
    %139 = vector.extract_strided_slice %101 {offsets = [0, 0], sizes = [1, 32], strides = [1, 1]} : vector<7x32xf32> to vector<1x32xf32>
    %140 = arith.addf %138, %139 : vector<1x32xf32>
    %141 = vector.extract_strided_slice %104 {offsets = [0, 0], sizes = [1, 32], strides = [1, 1]} : vector<7x32xf32> to vector<1x32xf32>
    %142 = arith.mulf %140, %141 : vector<1x32xf32>
    %143 = arith.addf %136, %142 : vector<1x32xf32>
    %144 = vector.extract_strided_slice %108 {offsets = [0, 0], sizes = [1, 32], strides = [1, 1]} : vector<7x32xf32> to vector<1x32xf32>
    %145 = arith.mulf %144, %135 : vector<1x32xf32>
    %146 = vector.extract_strided_slice %111 {offsets = [0, 0], sizes = [1, 32], strides = [1, 1]} : vector<7x32xf32> to vector<1x32xf32>
    %147 = arith.addf %145, %146 : vector<1x32xf32>
    %148 = vector.extract_strided_slice %114 {offsets = [0, 0], sizes = [1, 32], strides = [1, 1]} : vector<7x32xf32> to vector<1x32xf32>
    %149 = arith.mulf %147, %148 : vector<1x32xf32>
    %150 = arith.addf %143, %149 : vector<1x32xf32>
    %151 = vector.extract_strided_slice %118 {offsets = [0, 0], sizes = [1, 32], strides = [1, 1]} : vector<7x32xf32> to vector<1x32xf32>
    %152 = arith.mulf %151, %135 : vector<1x32xf32>
    %153 = vector.extract_strided_slice %121 {offsets = [0, 0], sizes = [1, 32], strides = [1, 1]} : vector<7x32xf32> to vector<1x32xf32>
    %154 = arith.addf %152, %153 : vector<1x32xf32>
    %155 = vector.extract_strided_slice %124 {offsets = [0, 0], sizes = [1, 32], strides = [1, 1]} : vector<7x32xf32> to vector<1x32xf32>
    %156 = arith.mulf %154, %155 : vector<1x32xf32>
    %157 = arith.addf %150, %156 : vector<1x32xf32>
    %158 = vector.extract_strided_slice %128 {offsets = [0, 0], sizes = [1, 32], strides = [1, 1]} : vector<7x32xf32> to vector<1x32xf32>
    %159 = arith.mulf %158, %135 : vector<1x32xf32>
    %160 = vector.extract_strided_slice %131 {offsets = [0, 0], sizes = [1, 32], strides = [1, 1]} : vector<7x32xf32> to vector<1x32xf32>
    %161 = arith.addf %159, %160 : vector<1x32xf32>
    %162 = vector.extract_strided_slice %134 {offsets = [0, 0], sizes = [1, 32], strides = [1, 1]} : vector<7x32xf32> to vector<1x32xf32>
    %163 = arith.mulf %161, %162 : vector<1x32xf32>
    %164 = arith.addf %157, %163 : vector<1x32xf32>
    %cst_49 = arith.constant 0.000000e+00 : f32
    %165 = vector.broadcast %cst_49 : f32 to vector<1x32xf32>
    %166 = vector.extract_strided_slice %98 {offsets = [1, 0], sizes = [1, 32], strides = [1, 1]} : vector<7x32xf32> to vector<1x32xf32>
    %167 = arith.mulf %166, %140 : vector<1x32xf32>
    %168 = vector.extract_strided_slice %101 {offsets = [1, 0], sizes = [1, 32], strides = [1, 1]} : vector<7x32xf32> to vector<1x32xf32>
    %169 = arith.addf %167, %168 : vector<1x32xf32>
    %170 = vector.extract_strided_slice %104 {offsets = [1, 0], sizes = [1, 32], strides = [1, 1]} : vector<7x32xf32> to vector<1x32xf32>
    %171 = arith.mulf %169, %170 : vector<1x32xf32>
    %172 = arith.addf %165, %171 : vector<1x32xf32>
    %173 = vector.extract_strided_slice %108 {offsets = [1, 0], sizes = [1, 32], strides = [1, 1]} : vector<7x32xf32> to vector<1x32xf32>
    %174 = arith.mulf %173, %147 : vector<1x32xf32>
    %175 = vector.extract_strided_slice %111 {offsets = [1, 0], sizes = [1, 32], strides = [1, 1]} : vector<7x32xf32> to vector<1x32xf32>
    %176 = arith.addf %174, %175 : vector<1x32xf32>
    %177 = vector.extract_strided_slice %114 {offsets = [1, 0], sizes = [1, 32], strides = [1, 1]} : vector<7x32xf32> to vector<1x32xf32>
    %178 = arith.mulf %176, %177 : vector<1x32xf32>
    %179 = arith.addf %172, %178 : vector<1x32xf32>
    %180 = vector.extract_strided_slice %118 {offsets = [1, 0], sizes = [1, 32], strides = [1, 1]} : vector<7x32xf32> to vector<1x32xf32>
    %181 = arith.mulf %180, %154 : vector<1x32xf32>
    %182 = vector.extract_strided_slice %121 {offsets = [1, 0], sizes = [1, 32], strides = [1, 1]} : vector<7x32xf32> to vector<1x32xf32>
    %183 = arith.addf %181, %182 : vector<1x32xf32>
    %184 = vector.extract_strided_slice %124 {offsets = [1, 0], sizes = [1, 32], strides = [1, 1]} : vector<7x32xf32> to vector<1x32xf32>
    %185 = arith.mulf %183, %184 : vector<1x32xf32>
    %186 = arith.addf %179, %185 : vector<1x32xf32>
    %187 = vector.extract_strided_slice %128 {offsets = [1, 0], sizes = [1, 32], strides = [1, 1]} : vector<7x32xf32> to vector<1x32xf32>
    %188 = arith.mulf %187, %161 : vector<1x32xf32>
    %189 = vector.extract_strided_slice %131 {offsets = [1, 0], sizes = [1, 32], strides = [1, 1]} : vector<7x32xf32> to vector<1x32xf32>
    %190 = arith.addf %188, %189 : vector<1x32xf32>
    %191 = vector.extract_strided_slice %134 {offsets = [1, 0], sizes = [1, 32], strides = [1, 1]} : vector<7x32xf32> to vector<1x32xf32>
    %192 = arith.mulf %190, %191 : vector<1x32xf32>
    %193 = arith.addf %186, %192 : vector<1x32xf32>
    %cst_50 = arith.constant 0.000000e+00 : f32
    %194 = vector.broadcast %cst_50 : f32 to vector<1x32xf32>
    %195 = vector.extract_strided_slice %98 {offsets = [2, 0], sizes = [1, 32], strides = [1, 1]} : vector<7x32xf32> to vector<1x32xf32>
    %196 = arith.mulf %195, %169 : vector<1x32xf32>
    %197 = vector.extract_strided_slice %101 {offsets = [2, 0], sizes = [1, 32], strides = [1, 1]} : vector<7x32xf32> to vector<1x32xf32>
    %198 = arith.addf %196, %197 : vector<1x32xf32>
    %199 = vector.extract_strided_slice %104 {offsets = [2, 0], sizes = [1, 32], strides = [1, 1]} : vector<7x32xf32> to vector<1x32xf32>
    %200 = arith.mulf %198, %199 : vector<1x32xf32>
    %201 = arith.addf %194, %200 : vector<1x32xf32>
    %202 = vector.extract_strided_slice %108 {offsets = [2, 0], sizes = [1, 32], strides = [1, 1]} : vector<7x32xf32> to vector<1x32xf32>
    %203 = arith.mulf %202, %176 : vector<1x32xf32>
    %204 = vector.extract_strided_slice %111 {offsets = [2, 0], sizes = [1, 32], strides = [1, 1]} : vector<7x32xf32> to vector<1x32xf32>
    %205 = arith.addf %203, %204 : vector<1x32xf32>
    %206 = vector.extract_strided_slice %114 {offsets = [2, 0], sizes = [1, 32], strides = [1, 1]} : vector<7x32xf32> to vector<1x32xf32>
    %207 = arith.mulf %205, %206 : vector<1x32xf32>
    %208 = arith.addf %201, %207 : vector<1x32xf32>
    %209 = vector.extract_strided_slice %118 {offsets = [2, 0], sizes = [1, 32], strides = [1, 1]} : vector<7x32xf32> to vector<1x32xf32>
    %210 = arith.mulf %209, %183 : vector<1x32xf32>
    %211 = vector.extract_strided_slice %121 {offsets = [2, 0], sizes = [1, 32], strides = [1, 1]} : vector<7x32xf32> to vector<1x32xf32>
    %212 = arith.addf %210, %211 : vector<1x32xf32>
    %213 = vector.extract_strided_slice %124 {offsets = [2, 0], sizes = [1, 32], strides = [1, 1]} : vector<7x32xf32> to vector<1x32xf32>
    %214 = arith.mulf %212, %213 : vector<1x32xf32>
    %215 = arith.addf %208, %214 : vector<1x32xf32>
    %216 = vector.extract_strided_slice %128 {offsets = [2, 0], sizes = [1, 32], strides = [1, 1]} : vector<7x32xf32> to vector<1x32xf32>
    %217 = arith.mulf %216, %190 : vector<1x32xf32>
    %218 = vector.extract_strided_slice %131 {offsets = [2, 0], sizes = [1, 32], strides = [1, 1]} : vector<7x32xf32> to vector<1x32xf32>
    %219 = arith.addf %217, %218 : vector<1x32xf32>
    %220 = vector.extract_strided_slice %134 {offsets = [2, 0], sizes = [1, 32], strides = [1, 1]} : vector<7x32xf32> to vector<1x32xf32>
    %221 = arith.mulf %219, %220 : vector<1x32xf32>
    %222 = arith.addf %215, %221 : vector<1x32xf32>
    %cst_51 = arith.constant 0.000000e+00 : f32
    %223 = vector.broadcast %cst_51 : f32 to vector<1x32xf32>
    %224 = vector.extract_strided_slice %98 {offsets = [3, 0], sizes = [1, 32], strides = [1, 1]} : vector<7x32xf32> to vector<1x32xf32>
    %225 = arith.mulf %224, %198 : vector<1x32xf32>
    %226 = vector.extract_strided_slice %101 {offsets = [3, 0], sizes = [1, 32], strides = [1, 1]} : vector<7x32xf32> to vector<1x32xf32>
    %227 = arith.addf %225, %226 : vector<1x32xf32>
    %228 = vector.extract_strided_slice %104 {offsets = [3, 0], sizes = [1, 32], strides = [1, 1]} : vector<7x32xf32> to vector<1x32xf32>
    %229 = arith.mulf %227, %228 : vector<1x32xf32>
    %230 = arith.addf %223, %229 : vector<1x32xf32>
    %231 = vector.extract_strided_slice %108 {offsets = [3, 0], sizes = [1, 32], strides = [1, 1]} : vector<7x32xf32> to vector<1x32xf32>
    %232 = arith.mulf %231, %205 : vector<1x32xf32>
    %233 = vector.extract_strided_slice %111 {offsets = [3, 0], sizes = [1, 32], strides = [1, 1]} : vector<7x32xf32> to vector<1x32xf32>
    %234 = arith.addf %232, %233 : vector<1x32xf32>
    %235 = vector.extract_strided_slice %114 {offsets = [3, 0], sizes = [1, 32], strides = [1, 1]} : vector<7x32xf32> to vector<1x32xf32>
    %236 = arith.mulf %234, %235 : vector<1x32xf32>
    %237 = arith.addf %230, %236 : vector<1x32xf32>
    %238 = vector.extract_strided_slice %118 {offsets = [3, 0], sizes = [1, 32], strides = [1, 1]} : vector<7x32xf32> to vector<1x32xf32>
    %239 = arith.mulf %238, %212 : vector<1x32xf32>
    %240 = vector.extract_strided_slice %121 {offsets = [3, 0], sizes = [1, 32], strides = [1, 1]} : vector<7x32xf32> to vector<1x32xf32>
    %241 = arith.addf %239, %240 : vector<1x32xf32>
    %242 = vector.extract_strided_slice %124 {offsets = [3, 0], sizes = [1, 32], strides = [1, 1]} : vector<7x32xf32> to vector<1x32xf32>
    %243 = arith.mulf %241, %242 : vector<1x32xf32>
    %244 = arith.addf %237, %243 : vector<1x32xf32>
    %245 = vector.extract_strided_slice %128 {offsets = [3, 0], sizes = [1, 32], strides = [1, 1]} : vector<7x32xf32> to vector<1x32xf32>
    %246 = arith.mulf %245, %219 : vector<1x32xf32>
    %247 = vector.extract_strided_slice %131 {offsets = [3, 0], sizes = [1, 32], strides = [1, 1]} : vector<7x32xf32> to vector<1x32xf32>
    %248 = arith.addf %246, %247 : vector<1x32xf32>
    %249 = vector.extract_strided_slice %134 {offsets = [3, 0], sizes = [1, 32], strides = [1, 1]} : vector<7x32xf32> to vector<1x32xf32>
    %250 = arith.mulf %248, %249 : vector<1x32xf32>
    %251 = arith.addf %244, %250 : vector<1x32xf32>
    %cst_52 = arith.constant 0.000000e+00 : f32
    %252 = vector.broadcast %cst_52 : f32 to vector<1x32xf32>
    %253 = vector.extract_strided_slice %98 {offsets = [4, 0], sizes = [1, 32], strides = [1, 1]} : vector<7x32xf32> to vector<1x32xf32>
    %254 = arith.mulf %253, %227 : vector<1x32xf32>
    %255 = vector.extract_strided_slice %101 {offsets = [4, 0], sizes = [1, 32], strides = [1, 1]} : vector<7x32xf32> to vector<1x32xf32>
    %256 = arith.addf %254, %255 : vector<1x32xf32>
    %257 = vector.extract_strided_slice %104 {offsets = [4, 0], sizes = [1, 32], strides = [1, 1]} : vector<7x32xf32> to vector<1x32xf32>
    %258 = arith.mulf %256, %257 : vector<1x32xf32>
    %259 = arith.addf %252, %258 : vector<1x32xf32>
    %260 = vector.extract_strided_slice %108 {offsets = [4, 0], sizes = [1, 32], strides = [1, 1]} : vector<7x32xf32> to vector<1x32xf32>
    %261 = arith.mulf %260, %234 : vector<1x32xf32>
    %262 = vector.extract_strided_slice %111 {offsets = [4, 0], sizes = [1, 32], strides = [1, 1]} : vector<7x32xf32> to vector<1x32xf32>
    %263 = arith.addf %261, %262 : vector<1x32xf32>
    %264 = vector.extract_strided_slice %114 {offsets = [4, 0], sizes = [1, 32], strides = [1, 1]} : vector<7x32xf32> to vector<1x32xf32>
    %265 = arith.mulf %263, %264 : vector<1x32xf32>
    %266 = arith.addf %259, %265 : vector<1x32xf32>
    %267 = vector.extract_strided_slice %118 {offsets = [4, 0], sizes = [1, 32], strides = [1, 1]} : vector<7x32xf32> to vector<1x32xf32>
    %268 = arith.mulf %267, %241 : vector<1x32xf32>
    %269 = vector.extract_strided_slice %121 {offsets = [4, 0], sizes = [1, 32], strides = [1, 1]} : vector<7x32xf32> to vector<1x32xf32>
    %270 = arith.addf %268, %269 : vector<1x32xf32>
    %271 = vector.extract_strided_slice %124 {offsets = [4, 0], sizes = [1, 32], strides = [1, 1]} : vector<7x32xf32> to vector<1x32xf32>
    %272 = arith.mulf %270, %271 : vector<1x32xf32>
    %273 = arith.addf %266, %272 : vector<1x32xf32>
    %274 = vector.extract_strided_slice %128 {offsets = [4, 0], sizes = [1, 32], strides = [1, 1]} : vector<7x32xf32> to vector<1x32xf32>
    %275 = arith.mulf %274, %248 : vector<1x32xf32>
    %276 = vector.extract_strided_slice %131 {offsets = [4, 0], sizes = [1, 32], strides = [1, 1]} : vector<7x32xf32> to vector<1x32xf32>
    %277 = arith.addf %275, %276 : vector<1x32xf32>
    %278 = vector.extract_strided_slice %134 {offsets = [4, 0], sizes = [1, 32], strides = [1, 1]} : vector<7x32xf32> to vector<1x32xf32>
    %279 = arith.mulf %277, %278 : vector<1x32xf32>
    %280 = arith.addf %273, %279 : vector<1x32xf32>
    %cst_53 = arith.constant 0.000000e+00 : f32
    %281 = vector.broadcast %cst_53 : f32 to vector<1x32xf32>
    %282 = vector.extract_strided_slice %98 {offsets = [5, 0], sizes = [1, 32], strides = [1, 1]} : vector<7x32xf32> to vector<1x32xf32>
    %283 = arith.mulf %282, %256 : vector<1x32xf32>
    %284 = vector.extract_strided_slice %101 {offsets = [5, 0], sizes = [1, 32], strides = [1, 1]} : vector<7x32xf32> to vector<1x32xf32>
    %285 = arith.addf %283, %284 : vector<1x32xf32>
    %286 = vector.extract_strided_slice %104 {offsets = [5, 0], sizes = [1, 32], strides = [1, 1]} : vector<7x32xf32> to vector<1x32xf32>
    %287 = arith.mulf %285, %286 : vector<1x32xf32>
    %288 = arith.addf %281, %287 : vector<1x32xf32>
    %289 = vector.extract_strided_slice %108 {offsets = [5, 0], sizes = [1, 32], strides = [1, 1]} : vector<7x32xf32> to vector<1x32xf32>
    %290 = arith.mulf %289, %263 : vector<1x32xf32>
    %291 = vector.extract_strided_slice %111 {offsets = [5, 0], sizes = [1, 32], strides = [1, 1]} : vector<7x32xf32> to vector<1x32xf32>
    %292 = arith.addf %290, %291 : vector<1x32xf32>
    %293 = vector.extract_strided_slice %114 {offsets = [5, 0], sizes = [1, 32], strides = [1, 1]} : vector<7x32xf32> to vector<1x32xf32>
    %294 = arith.mulf %292, %293 : vector<1x32xf32>
    %295 = arith.addf %288, %294 : vector<1x32xf32>
    %296 = vector.extract_strided_slice %118 {offsets = [5, 0], sizes = [1, 32], strides = [1, 1]} : vector<7x32xf32> to vector<1x32xf32>
    %297 = arith.mulf %296, %270 : vector<1x32xf32>
    %298 = vector.extract_strided_slice %121 {offsets = [5, 0], sizes = [1, 32], strides = [1, 1]} : vector<7x32xf32> to vector<1x32xf32>
    %299 = arith.addf %297, %298 : vector<1x32xf32>
    %300 = vector.extract_strided_slice %124 {offsets = [5, 0], sizes = [1, 32], strides = [1, 1]} : vector<7x32xf32> to vector<1x32xf32>
    %301 = arith.mulf %299, %300 : vector<1x32xf32>
    %302 = arith.addf %295, %301 : vector<1x32xf32>
    %303 = vector.extract_strided_slice %128 {offsets = [5, 0], sizes = [1, 32], strides = [1, 1]} : vector<7x32xf32> to vector<1x32xf32>
    %304 = arith.mulf %303, %277 : vector<1x32xf32>
    %305 = vector.extract_strided_slice %131 {offsets = [5, 0], sizes = [1, 32], strides = [1, 1]} : vector<7x32xf32> to vector<1x32xf32>
    %306 = arith.addf %304, %305 : vector<1x32xf32>
    %307 = vector.extract_strided_slice %134 {offsets = [5, 0], sizes = [1, 32], strides = [1, 1]} : vector<7x32xf32> to vector<1x32xf32>
    %308 = arith.mulf %306, %307 : vector<1x32xf32>
    %309 = arith.addf %302, %308 : vector<1x32xf32>
    %cst_54 = arith.constant 0.000000e+00 : f32
    %310 = vector.broadcast %cst_54 : f32 to vector<1x32xf32>
    %311 = vector.extract_strided_slice %98 {offsets = [6, 0], sizes = [1, 32], strides = [1, 1]} : vector<7x32xf32> to vector<1x32xf32>
    %312 = arith.mulf %311, %285 : vector<1x32xf32>
    %313 = vector.extract_strided_slice %101 {offsets = [6, 0], sizes = [1, 32], strides = [1, 1]} : vector<7x32xf32> to vector<1x32xf32>
    %314 = arith.addf %312, %313 : vector<1x32xf32>
    %315 = vector.extract_strided_slice %104 {offsets = [6, 0], sizes = [1, 32], strides = [1, 1]} : vector<7x32xf32> to vector<1x32xf32>
    %316 = arith.mulf %314, %315 : vector<1x32xf32>
    %317 = arith.addf %310, %316 : vector<1x32xf32>
    %318 = vector.extract_strided_slice %108 {offsets = [6, 0], sizes = [1, 32], strides = [1, 1]} : vector<7x32xf32> to vector<1x32xf32>
    %319 = arith.mulf %318, %292 : vector<1x32xf32>
    %320 = vector.extract_strided_slice %111 {offsets = [6, 0], sizes = [1, 32], strides = [1, 1]} : vector<7x32xf32> to vector<1x32xf32>
    %321 = arith.addf %319, %320 : vector<1x32xf32>
    %322 = vector.extract_strided_slice %114 {offsets = [6, 0], sizes = [1, 32], strides = [1, 1]} : vector<7x32xf32> to vector<1x32xf32>
    %323 = arith.mulf %321, %322 : vector<1x32xf32>
    %324 = arith.addf %317, %323 : vector<1x32xf32>
    %325 = vector.extract_strided_slice %118 {offsets = [6, 0], sizes = [1, 32], strides = [1, 1]} : vector<7x32xf32> to vector<1x32xf32>
    %326 = arith.mulf %325, %299 : vector<1x32xf32>
    %327 = vector.extract_strided_slice %121 {offsets = [6, 0], sizes = [1, 32], strides = [1, 1]} : vector<7x32xf32> to vector<1x32xf32>
    %328 = arith.addf %326, %327 : vector<1x32xf32>
    %329 = vector.extract_strided_slice %124 {offsets = [6, 0], sizes = [1, 32], strides = [1, 1]} : vector<7x32xf32> to vector<1x32xf32>
    %330 = arith.mulf %328, %329 : vector<1x32xf32>
    %331 = arith.addf %324, %330 : vector<1x32xf32>
    %332 = vector.extract_strided_slice %128 {offsets = [6, 0], sizes = [1, 32], strides = [1, 1]} : vector<7x32xf32> to vector<1x32xf32>
    %333 = arith.mulf %332, %306 : vector<1x32xf32>
    %334 = vector.extract_strided_slice %131 {offsets = [6, 0], sizes = [1, 32], strides = [1, 1]} : vector<7x32xf32> to vector<1x32xf32>
    %335 = arith.addf %333, %334 : vector<1x32xf32>
    %336 = vector.extract_strided_slice %134 {offsets = [6, 0], sizes = [1, 32], strides = [1, 1]} : vector<7x32xf32> to vector<1x32xf32>
    %337 = arith.mulf %335, %336 : vector<1x32xf32>
    %338 = arith.addf %331, %337 : vector<1x32xf32>
    %339 = tpu.concatenate %164, %193, %222, %251, %280, %309, %338 in 0 : vector<1x32xf32>, vector<1x32xf32>, vector<1x32xf32>, vector<1x32xf32>, vector<1x32xf32>, vector<1x32xf32>, vector<1x32xf32> -> vector<7x32xf32>
    %c0_55 = arith.constant 0 : index
    %c0_56 = arith.constant 0 : index
    %340 = vector.load %arg14[%c0_55, %c0_56] : memref<1x32xf32, #tpu.memory_space<vmem>>, vector<1x32xf32>
    %341 = vector.broadcast %340 : vector<1x32xf32> to vector<7x32xf32>
    %342 = arith.mulf %70, %341 : vector<7x32xf32>
    %343 = arith.addf %339, %342 : vector<7x32xf32>
    %cst_57 = arith.constant 0.000000e+00 : f32
    %344 = vector.broadcast %cst_57 : f32 to vector<7x32xf32>
    %345 = arith.subf %344, %35 : vector<7x32xf32>
    %346 = math.exp %345 : vector<7x32xf32>
    %cst_58 = arith.constant 1.000000e+00 : f32
    %347 = vector.broadcast %cst_58 : f32 to vector<7x32xf32>
    %348 = arith.addf %347, %346 : vector<7x32xf32>
    %cst_59 = arith.constant 1.000000e+00 : f32
    %349 = vector.broadcast %cst_59 : f32 to vector<7x32xf32>
    %350 = arith.divf %349, %348 : vector<7x32xf32>
    %351 = arith.mulf %35, %350 : vector<7x32xf32>
    %352 = arith.mulf %343, %351 : vector<7x32xf32>
    %c0_60 = arith.constant 0 : index
    %c0_61 = arith.constant 0 : index
    %353 = vector.load %arg15[%c0_60, %c0_61] : memref<32x16xbf16, #tpu.memory_space<vmem>>, vector<32x16xbf16>
    %354 = arith.truncf %352 : vector<7x32xf32> to vector<7x32xbf16>
    %cst_62 = arith.constant dense<0.000000e+00> : vector<7x16xf32>
    %355 = tpu.matmul %354, %353, %cst_62 {dimension_numbers = #tpu.dot_dimension_numbers<[1], [0], [0], [1], [0, 0, 1, 1], [], []>} : vector<7x32xbf16>, vector<32x16xbf16>, vector<7x16xf32> -> vector<7x16xf32>
    %c0_63 = arith.constant 0 : index
    %c0_64 = arith.constant 0 : index
    %c0_65 = arith.constant 0 : index
    %356 = vector.load %arg16[%c0_63, %c0_64, %c0_65] : memref<1x7x16xf32, #tpu.memory_space<vmem>>, vector<1x7x16xf32>
    %357 = vector.shape_cast %356 : vector<1x7x16xf32> to vector<7x16xf32>
    %358 = vector.shape_cast %355 : vector<7x16xf32> to vector<1x7x16xf32>
    tpu.vector_store %arg16[%c0_63, %c0_64, %c0_65], %358 {strides = array<i32>} : memref<1x7x16xf32, #tpu.memory_space<vmem>>, vector<1x7x16xf32>,
    return
  }
  func.func @transform_0(%arg0: i32) -> (i32, i32, i32) {
    %c0_i32 = arith.constant 0 : i32
    %c0_i32_0 = arith.constant 0 : i32
    %c0_i32_1 = arith.constant 0 : i32
    return %arg0, %c0_i32, %c0_i32_0 : i32, i32, i32
  }
  func.func @transform_1(%arg0: i32) -> (i32, i32, i32) {
    %c0_i32 = arith.constant 0 : i32
    %c0_i32_0 = arith.constant 0 : i32
    %c0_i32_1 = arith.constant 0 : i32
    return %arg0, %c0_i32, %c0_i32_0 : i32, i32, i32
  }
  func.func @transform_2(%arg0: i32) -> (i32, i32) {
    %c0_i32 = arith.constant 0 : i32
    %c0_i32_0 = arith.constant 0 : i32
    %c0_i32_1 = arith.constant 0 : i32
    return %c0_i32, %c0_i32_0 : i32, i32
  }
  func.func @transform_3(%arg0: i32) -> (i32, i32) {
    %c0_i32 = arith.constant 0 : i32
    %c0_i32_0 = arith.constant 0 : i32
    %c0_i32_1 = arith.constant 0 : i32
    return %c0_i32, %c0_i32_0 : i32, i32
  }
  func.func @transform_4(%arg0: i32) -> (i32, i32) {
    %c0_i32 = arith.constant 0 : i32
    %c0_i32_0 = arith.constant 0 : i32
    %c0_i32_1 = arith.constant 0 : i32
    return %c0_i32, %c0_i32_0 : i32, i32
  }
  func.func @transform_5(%arg0: i32) -> (i32, i32) {
    %c0_i32 = arith.constant 0 : i32
    %c0_i32_0 = arith.constant 0 : i32
    %c0_i32_1 = arith.constant 0 : i32
    return %c0_i32, %c0_i32_0 : i32, i32
  }
  func.func @transform_6(%arg0: i32) -> (i32, i32) {
    %c0_i32 = arith.constant 0 : i32
    %c0_i32_0 = arith.constant 0 : i32
    %c0_i32_1 = arith.constant 0 : i32
    return %c0_i32, %c0_i32_0 : i32, i32
  }
  func.func @transform_7(%arg0: i32) -> (i32, i32) {
    %c0_i32 = arith.constant 0 : i32
    %c0_i32_0 = arith.constant 0 : i32
    %c0_i32_1 = arith.constant 0 : i32
    return %c0_i32, %c0_i32_0 : i32, i32
  }
  func.func @transform_8(%arg0: i32) -> (i32, i32) {
    %c0_i32 = arith.constant 0 : i32
    %c0_i32_0 = arith.constant 0 : i32
    %c0_i32_1 = arith.constant 0 : i32
    return %c0_i32, %c0_i32_0 : i32, i32
  }
  func.func @transform_9(%arg0: i32) -> (i32, i32) {
    %c0_i32 = arith.constant 0 : i32
    %c0_i32_0 = arith.constant 0 : i32
    %c0_i32_1 = arith.constant 0 : i32
    return %c0_i32, %c0_i32_0 : i32, i32
  }
  func.func @transform_10(%arg0: i32) -> (i32, i32) {
    %c0_i32 = arith.constant 0 : i32
    %c0_i32_0 = arith.constant 0 : i32
    %c0_i32_1 = arith.constant 0 : i32
    return %c0_i32, %c0_i32_0 : i32, i32
  }
  func.func @transform_11(%arg0: i32) -> (i32, i32) {
    %c0_i32 = arith.constant 0 : i32
    %c0_i32_0 = arith.constant 0 : i32
    %c0_i32_1 = arith.constant 0 : i32
    return %c0_i32, %c0_i32_0 : i32, i32
  }
  func.func @transform_12(%arg0: i32) -> (i32, i32) {
    %c0_i32 = arith.constant 0 : i32
    %c0_i32_0 = arith.constant 0 : i32
    %c0_i32_1 = arith.constant 0 : i32
    return %c0_i32, %c0_i32_0 : i32, i32
  }
  func.func @transform_13(%arg0: i32) -> (i32, i32) {
    %c0_i32 = arith.constant 0 : i32
    %c0_i32_0 = arith.constant 0 : i32
    %c0_i32_1 = arith.constant 0 : i32
    return %c0_i32, %c0_i32_0 : i32, i32
  }
  func.func @transform_14(%arg0: i32) -> (i32, i32) {
    %c0_i32 = arith.constant 0 : i32
    %c0_i32_0 = arith.constant 0 : i32
    %c0_i32_1 = arith.constant 0 : i32
    return %c0_i32, %c0_i32_0 : i32, i32
  }
  func.func @transform_15(%arg0: i32) -> (i32, i32, i32) {
    %c0_i32 = arith.constant 0 : i32
    %c0_i32_0 = arith.constant 0 : i32
    %c0_i32_1 = arith.constant 0 : i32
    return %arg0, %c0_i32, %c0_i32_0 : i32, i32, i32
  }
  func.func @transform_16(%arg0: i32) -> (i32, i32, i32) {
    %c0_i32 = arith.constant 0 : i32
    %c0_i32_0 = arith.constant 0 : i32
    %c0_i32_1 = arith.constant 0 : i32
    return %arg0, %c0_i32, %c0_i32_0 : i32, i32, i32
  }
}

module attributes {stable_mosaic.version = 11 : i64} {
  func.func @_decoder_kernel(%arg0: i32, %arg1: memref<1x7x32xf32, #tpu.memory_space<vmem>>, %arg2: memref<1x7x32xf32, #tpu.memory_space<vmem>>, %arg3: memref<32x32xbf16, #tpu.memory_space<vmem>>, %arg4: memref<1x32xf32, #tpu.memory_space<vmem>>, %arg5: memref<32x32xbf16, #tpu.memory_space<vmem>>, %arg6: memref<1x32xf32, #tpu.memory_space<vmem>>, %arg7: memref<4x32x16xbf16, #tpu.memory_space<vmem>>, %arg8: memref<1x16xf32, #tpu.memory_space<vmem>>, %arg9: memref<1x8x16xf32, #tpu.memory_space<vmem>>, %arg10: memref<1x8x16xf32, #tpu.memory_space<vmem>>) attributes {dimension_semantics = [#tpu.dimension_semantics<parallel>], iteration_bounds = array<i64: 2>, scalar_prefetch = 0 : i64, scratch_operands = 0 : i64, tpu.core_type = #tpu.core_type<tc>, window_params = [{transform_indices = @transform_0, window_bounds = array<i64: 1, 7, 32>}, {transform_indices = @transform_1, window_bounds = array<i64: 1, 7, 32>}, {pipeline_mode = #tpu.pipeline_mode<synchronous>, transform_indices = @transform_2, window_bounds = array<i64: 32, 32>}, {pipeline_mode = #tpu.pipeline_mode<synchronous>, transform_indices = @transform_3, window_bounds = array<i64: 1, 32>}, {pipeline_mode = #tpu.pipeline_mode<synchronous>, transform_indices = @transform_4, window_bounds = array<i64: 32, 32>}, {pipeline_mode = #tpu.pipeline_mode<synchronous>, transform_indices = @transform_5, window_bounds = array<i64: 1, 32>}, {pipeline_mode = #tpu.pipeline_mode<synchronous>, transform_indices = @transform_6, window_bounds = array<i64: 4, 32, 16>}, {pipeline_mode = #tpu.pipeline_mode<synchronous>, transform_indices = @transform_7, window_bounds = array<i64: 1, 16>}, {transform_indices = @transform_8, window_bounds = array<i64: 1, 8, 16>}, {transform_indices = @transform_9, window_bounds = array<i64: 1, 8, 16>}]} {
    %c0 = arith.constant 0 : index
    %c0_0 = arith.constant 0 : index
    %c0_1 = arith.constant 0 : index
    %0 = vector.load %arg7[%c0, %c0_0, %c0_1] : memref<4x32x16xbf16, #tpu.memory_space<vmem>>, vector<4x32x16xbf16>
    %c0_2 = arith.constant 0 : index
    %c0_3 = arith.constant 0 : index
    %c0_4 = arith.constant 0 : index
    %1 = vector.load %arg1[%c0_2, %c0_3, %c0_4] : memref<1x7x32xf32, #tpu.memory_space<vmem>>, vector<1x7x32xf32>
    %2 = vector.shape_cast %1 : vector<1x7x32xf32> to vector<7x32xf32>
    %c0_5 = arith.constant 0 : index
    %c0_6 = arith.constant 0 : index
    %c0_7 = arith.constant 0 : index
    %3 = vector.load %arg2[%c0_5, %c0_6, %c0_7] : memref<1x7x32xf32, #tpu.memory_space<vmem>>, vector<1x7x32xf32>
    %4 = vector.shape_cast %3 : vector<1x7x32xf32> to vector<7x32xf32>
    %5 = arith.addf %2, %4 : vector<7x32xf32>
    %c0_8 = arith.constant 0 : index
    %c0_9 = arith.constant 0 : index
    %6 = vector.load %arg3[%c0_8, %c0_9] : memref<32x32xbf16, #tpu.memory_space<vmem>>, vector<32x32xbf16>
    %7 = arith.truncf %5 : vector<7x32xf32> to vector<7x32xbf16>
    %cst = arith.constant dense<0.000000e+00> : vector<7x32xf32>
    %8 = tpu.matmul %7, %6, %cst {dimension_numbers = #tpu.dot_dimension_numbers<[1], [0], [0], [1], [0, 0, 1, 1], [], []>} : vector<7x32xbf16>, vector<32x32xbf16>, vector<7x32xf32> -> vector<7x32xf32>
    %c0_10 = arith.constant 0 : index
    %c0_11 = arith.constant 0 : index
    %9 = vector.load %arg4[%c0_10, %c0_11] : memref<1x32xf32, #tpu.memory_space<vmem>>, vector<1x32xf32>
    %10 = vector.broadcast %9 : vector<1x32xf32> to vector<7x32xf32>
    %11 = arith.addf %8, %10 : vector<7x32xf32>
    %c0_12 = arith.constant 0 : index
    %c0_13 = arith.constant 0 : index
    %12 = vector.load %arg5[%c0_12, %c0_13] : memref<32x32xbf16, #tpu.memory_space<vmem>>, vector<32x32xbf16>
    %13 = arith.truncf %5 : vector<7x32xf32> to vector<7x32xbf16>
    %cst_14 = arith.constant dense<0.000000e+00> : vector<7x32xf32>
    %14 = tpu.matmul %13, %12, %cst_14 {dimension_numbers = #tpu.dot_dimension_numbers<[1], [0], [0], [1], [0, 0, 1, 1], [], []>} : vector<7x32xbf16>, vector<32x32xbf16>, vector<7x32xf32> -> vector<7x32xf32>
    %c0_15 = arith.constant 0 : index
    %c0_16 = arith.constant 0 : index
    %15 = vector.load %arg6[%c0_15, %c0_16] : memref<1x32xf32, #tpu.memory_space<vmem>>, vector<1x32xf32>
    %16 = vector.broadcast %15 : vector<1x32xf32> to vector<7x32xf32>
    %17 = arith.addf %14, %16 : vector<7x32xf32>
    %cst_17 = arith.constant 0.000000e+00 : f32
    %18 = vector.broadcast %cst_17 : f32 to vector<7x32xf32>
    %19 = arith.subf %18, %17 : vector<7x32xf32>
    %20 = math.exp %19 : vector<7x32xf32>
    %cst_18 = arith.constant 1.000000e+00 : f32
    %21 = vector.broadcast %cst_18 : f32 to vector<7x32xf32>
    %22 = arith.addf %21, %20 : vector<7x32xf32>
    %cst_19 = arith.constant 1.000000e+00 : f32
    %23 = vector.broadcast %cst_19 : f32 to vector<7x32xf32>
    %24 = arith.divf %23, %22 : vector<7x32xf32>
    %25 = arith.mulf %11, %24 : vector<7x32xf32>
    %26 = vector.extract_strided_slice %0 {offsets = [0, 0, 0], sizes = [1, 32, 16], strides = [1, 1, 1]} : vector<4x32x16xbf16> to vector<1x32x16xbf16>
    %27 = vector.shape_cast %26 : vector<1x32x16xbf16> to vector<32x16xbf16>
    %28 = arith.truncf %25 : vector<7x32xf32> to vector<7x32xbf16>
    %cst_20 = arith.constant dense<0.000000e+00> : vector<7x16xf32>
    %29 = tpu.matmul %28, %27, %cst_20 {dimension_numbers = #tpu.dot_dimension_numbers<[1], [0], [0], [1], [0, 0, 1, 1], [], []>} : vector<7x32xbf16>, vector<32x16xbf16>, vector<7x16xf32> -> vector<7x16xf32>
    %30 = vector.extract_strided_slice %0 {offsets = [1, 0, 0], sizes = [1, 32, 16], strides = [1, 1, 1]} : vector<4x32x16xbf16> to vector<1x32x16xbf16>
    %31 = vector.shape_cast %30 : vector<1x32x16xbf16> to vector<32x16xbf16>
    %32 = arith.truncf %25 : vector<7x32xf32> to vector<7x32xbf16>
    %cst_21 = arith.constant dense<0.000000e+00> : vector<7x16xf32>
    %33 = tpu.matmul %32, %31, %cst_21 {dimension_numbers = #tpu.dot_dimension_numbers<[1], [0], [0], [1], [0, 0, 1, 1], [], []>} : vector<7x32xbf16>, vector<32x16xbf16>, vector<7x16xf32> -> vector<7x16xf32>
    %34 = vector.extract_strided_slice %0 {offsets = [2, 0, 0], sizes = [1, 32, 16], strides = [1, 1, 1]} : vector<4x32x16xbf16> to vector<1x32x16xbf16>
    %35 = vector.shape_cast %34 : vector<1x32x16xbf16> to vector<32x16xbf16>
    %36 = arith.truncf %25 : vector<7x32xf32> to vector<7x32xbf16>
    %cst_22 = arith.constant dense<0.000000e+00> : vector<7x16xf32>
    %37 = tpu.matmul %36, %35, %cst_22 {dimension_numbers = #tpu.dot_dimension_numbers<[1], [0], [0], [1], [0, 0, 1, 1], [], []>} : vector<7x32xbf16>, vector<32x16xbf16>, vector<7x16xf32> -> vector<7x16xf32>
    %38 = vector.extract_strided_slice %0 {offsets = [3, 0, 0], sizes = [1, 32, 16], strides = [1, 1, 1]} : vector<4x32x16xbf16> to vector<1x32x16xbf16>
    %39 = vector.shape_cast %38 : vector<1x32x16xbf16> to vector<32x16xbf16>
    %40 = arith.truncf %25 : vector<7x32xf32> to vector<7x32xbf16>
    %cst_23 = arith.constant dense<0.000000e+00> : vector<7x16xf32>
    %41 = tpu.matmul %40, %39, %cst_23 {dimension_numbers = #tpu.dot_dimension_numbers<[1], [0], [0], [1], [0, 0, 1, 1], [], []>} : vector<7x32xbf16>, vector<32x16xbf16>, vector<7x16xf32> -> vector<7x16xf32>
    %cst_24 = arith.constant 0.000000e+00 : f32
    %42 = vector.broadcast %cst_24 : f32 to vector<1x16xf32>
    %43 = tpu.concatenate %29, %42 in 0 : vector<7x16xf32>, vector<1x16xf32> -> vector<8x16xf32>
    %cst_25 = arith.constant 0.000000e+00 : f32
    %44 = vector.broadcast %cst_25 : f32 to vector<1x16xf32>
    %45 = tpu.concatenate %44, %37 in 0 : vector<1x16xf32>, vector<7x16xf32> -> vector<8x16xf32>
    %46 = arith.addf %43, %45 : vector<8x16xf32>
    %c0_26 = arith.constant 0 : index
    %c0_27 = arith.constant 0 : index
    %47 = vector.load %arg8[%c0_26, %c0_27] : memref<1x16xf32, #tpu.memory_space<vmem>>, vector<1x16xf32>
    %48 = vector.broadcast %47 : vector<1x16xf32> to vector<8x16xf32>
    %49 = arith.addf %46, %48 : vector<8x16xf32>
    %cst_28 = arith.constant 0.000000e+00 : f32
    %50 = vector.broadcast %cst_28 : f32 to vector<8x16xf32>
    %51 = arith.maximumf %49, %50 : vector<8x16xf32>
    %c0_29 = arith.constant 0 : index
    %c0_30 = arith.constant 0 : index
    %c0_31 = arith.constant 0 : index
    %52 = vector.load %arg9[%c0_29, %c0_30, %c0_31] : memref<1x8x16xf32, #tpu.memory_space<vmem>>, vector<1x8x16xf32>
    %53 = vector.shape_cast %52 : vector<1x8x16xf32> to vector<8x16xf32>
    %54 = vector.shape_cast %51 : vector<8x16xf32> to vector<1x8x16xf32>
    tpu.vector_store %arg9[%c0_29, %c0_30, %c0_31], %54 {strides = array<i32>} : memref<1x8x16xf32, #tpu.memory_space<vmem>>, vector<1x8x16xf32>,
    %cst_32 = arith.constant 0.000000e+00 : f32
    %55 = vector.broadcast %cst_32 : f32 to vector<1x16xf32>
    %56 = tpu.concatenate %33, %55 in 0 : vector<7x16xf32>, vector<1x16xf32> -> vector<8x16xf32>
    %cst_33 = arith.constant 0.000000e+00 : f32
    %57 = vector.broadcast %cst_33 : f32 to vector<1x16xf32>
    %58 = tpu.concatenate %57, %41 in 0 : vector<1x16xf32>, vector<7x16xf32> -> vector<8x16xf32>
    %59 = arith.addf %56, %58 : vector<8x16xf32>
    %c0_34 = arith.constant 0 : index
    %c0_35 = arith.constant 0 : index
    %60 = vector.load %arg8[%c0_34, %c0_35] : memref<1x16xf32, #tpu.memory_space<vmem>>, vector<1x16xf32>
    %61 = vector.broadcast %60 : vector<1x16xf32> to vector<8x16xf32>
    %62 = arith.addf %59, %61 : vector<8x16xf32>
    %cst_36 = arith.constant 0.000000e+00 : f32
    %63 = vector.broadcast %cst_36 : f32 to vector<8x16xf32>
    %64 = arith.maximumf %62, %63 : vector<8x16xf32>
    %c0_37 = arith.constant 0 : index
    %c0_38 = arith.constant 0 : index
    %c0_39 = arith.constant 0 : index
    %65 = vector.load %arg10[%c0_37, %c0_38, %c0_39] : memref<1x8x16xf32, #tpu.memory_space<vmem>>, vector<1x8x16xf32>
    %66 = vector.shape_cast %65 : vector<1x8x16xf32> to vector<8x16xf32>
    %67 = vector.shape_cast %64 : vector<8x16xf32> to vector<1x8x16xf32>
    tpu.vector_store %arg10[%c0_37, %c0_38, %c0_39], %67 {strides = array<i32>} : memref<1x8x16xf32, #tpu.memory_space<vmem>>, vector<1x8x16xf32>,
    return
  }
  func.func @transform_0(%arg0: i32) -> (i32, i32, i32) {
    %c0_i32 = arith.constant 0 : i32
    %c0_i32_0 = arith.constant 0 : i32
    %c0_i32_1 = arith.constant 0 : i32
    return %arg0, %c0_i32, %c0_i32_0 : i32, i32, i32
  }
  func.func @transform_1(%arg0: i32) -> (i32, i32, i32) {
    %c0_i32 = arith.constant 0 : i32
    %c0_i32_0 = arith.constant 0 : i32
    %c0_i32_1 = arith.constant 0 : i32
    return %arg0, %c0_i32, %c0_i32_0 : i32, i32, i32
  }
  func.func @transform_2(%arg0: i32) -> (i32, i32) {
    %c0_i32 = arith.constant 0 : i32
    %c0_i32_0 = arith.constant 0 : i32
    %c0_i32_1 = arith.constant 0 : i32
    return %c0_i32, %c0_i32_0 : i32, i32
  }
  func.func @transform_3(%arg0: i32) -> (i32, i32) {
    %c0_i32 = arith.constant 0 : i32
    %c0_i32_0 = arith.constant 0 : i32
    %c0_i32_1 = arith.constant 0 : i32
    return %c0_i32, %c0_i32_0 : i32, i32
  }
  func.func @transform_4(%arg0: i32) -> (i32, i32) {
    %c0_i32 = arith.constant 0 : i32
    %c0_i32_0 = arith.constant 0 : i32
    %c0_i32_1 = arith.constant 0 : i32
    return %c0_i32, %c0_i32_0 : i32, i32
  }
  func.func @transform_5(%arg0: i32) -> (i32, i32) {
    %c0_i32 = arith.constant 0 : i32
    %c0_i32_0 = arith.constant 0 : i32
    %c0_i32_1 = arith.constant 0 : i32
    return %c0_i32, %c0_i32_0 : i32, i32
  }
  func.func @transform_6(%arg0: i32) -> (i32, i32, i32) {
    %c0_i32 = arith.constant 0 : i32
    %c0_i32_0 = arith.constant 0 : i32
    %c0_i32_1 = arith.constant 0 : i32
    %c0_i32_2 = arith.constant 0 : i32
    return %c0_i32, %c0_i32_0, %c0_i32_1 : i32, i32, i32
  }
  func.func @transform_7(%arg0: i32) -> (i32, i32) {
    %c0_i32 = arith.constant 0 : i32
    %c0_i32_0 = arith.constant 0 : i32
    %c0_i32_1 = arith.constant 0 : i32
    return %c0_i32, %c0_i32_0 : i32, i32
  }
  func.func @transform_8(%arg0: i32) -> (i32, i32, i32) {
    %c0_i32 = arith.constant 0 : i32
    %c0_i32_0 = arith.constant 0 : i32
    %c0_i32_1 = arith.constant 0 : i32
    return %arg0, %c0_i32, %c0_i32_0 : i32, i32, i32
  }
  func.func @transform_9(%arg0: i32) -> (i32, i32, i32) {
    %c0_i32 = arith.constant 0 : i32
    %c0_i32_0 = arith.constant 0 : i32
    %c0_i32_1 = arith.constant 0 : i32
    return %arg0, %c0_i32, %c0_i32_0 : i32, i32, i32
  }
}

module attributes {stable_mosaic.version = 11 : i64} {
  func.func @_decoder_kernel(%arg0: i32, %arg1: memref<1x16x16xf32, #tpu.memory_space<vmem>>, %arg2: memref<1x16x16xf32, #tpu.memory_space<vmem>>, %arg3: memref<16x16xbf16, #tpu.memory_space<vmem>>, %arg4: memref<1x16xf32, #tpu.memory_space<vmem>>, %arg5: memref<16x16xbf16, #tpu.memory_space<vmem>>, %arg6: memref<1x16xf32, #tpu.memory_space<vmem>>, %arg7: memref<4x16x8xbf16, #tpu.memory_space<vmem>>, %arg8: memref<1x8xf32, #tpu.memory_space<vmem>>, %arg9: memref<1x17x8xf32, #tpu.memory_space<vmem>>, %arg10: memref<1x17x8xf32, #tpu.memory_space<vmem>>) attributes {dimension_semantics = [#tpu.dimension_semantics<parallel>], iteration_bounds = array<i64: 2>, scalar_prefetch = 0 : i64, scratch_operands = 0 : i64, tpu.core_type = #tpu.core_type<tc>, window_params = [{transform_indices = @transform_0, window_bounds = array<i64: 1, 16, 16>}, {transform_indices = @transform_1, window_bounds = array<i64: 1, 16, 16>}, {pipeline_mode = #tpu.pipeline_mode<synchronous>, transform_indices = @transform_2, window_bounds = array<i64: 16, 16>}, {pipeline_mode = #tpu.pipeline_mode<synchronous>, transform_indices = @transform_3, window_bounds = array<i64: 1, 16>}, {pipeline_mode = #tpu.pipeline_mode<synchronous>, transform_indices = @transform_4, window_bounds = array<i64: 16, 16>}, {pipeline_mode = #tpu.pipeline_mode<synchronous>, transform_indices = @transform_5, window_bounds = array<i64: 1, 16>}, {pipeline_mode = #tpu.pipeline_mode<synchronous>, transform_indices = @transform_6, window_bounds = array<i64: 4, 16, 8>}, {pipeline_mode = #tpu.pipeline_mode<synchronous>, transform_indices = @transform_7, window_bounds = array<i64: 1, 8>}, {transform_indices = @transform_8, window_bounds = array<i64: 1, 17, 8>}, {transform_indices = @transform_9, window_bounds = array<i64: 1, 17, 8>}]} {
    %c0 = arith.constant 0 : index
    %c0_0 = arith.constant 0 : index
    %c0_1 = arith.constant 0 : index
    %0 = vector.load %arg7[%c0, %c0_0, %c0_1] : memref<4x16x8xbf16, #tpu.memory_space<vmem>>, vector<4x16x8xbf16>
    %c0_2 = arith.constant 0 : index
    %c0_3 = arith.constant 0 : index
    %c0_4 = arith.constant 0 : index
    %1 = vector.load %arg1[%c0_2, %c0_3, %c0_4] : memref<1x16x16xf32, #tpu.memory_space<vmem>>, vector<1x16x16xf32>
    %2 = vector.shape_cast %1 : vector<1x16x16xf32> to vector<16x16xf32>
    %c0_5 = arith.constant 0 : index
    %c0_6 = arith.constant 0 : index
    %c0_7 = arith.constant 0 : index
    %3 = vector.load %arg2[%c0_5, %c0_6, %c0_7] : memref<1x16x16xf32, #tpu.memory_space<vmem>>, vector<1x16x16xf32>
    %4 = vector.shape_cast %3 : vector<1x16x16xf32> to vector<16x16xf32>
    %5 = arith.addf %2, %4 : vector<16x16xf32>
    %c0_8 = arith.constant 0 : index
    %c0_9 = arith.constant 0 : index
    %6 = vector.load %arg3[%c0_8, %c0_9] : memref<16x16xbf16, #tpu.memory_space<vmem>>, vector<16x16xbf16>
    %7 = arith.truncf %5 : vector<16x16xf32> to vector<16x16xbf16>
    %cst = arith.constant dense<0.000000e+00> : vector<16x16xf32>
    %8 = tpu.matmul %7, %6, %cst {dimension_numbers = #tpu.dot_dimension_numbers<[1], [0], [0], [1], [0, 0, 1, 1], [], []>} : vector<16x16xbf16>, vector<16x16xbf16>, vector<16x16xf32> -> vector<16x16xf32>
    %c0_10 = arith.constant 0 : index
    %c0_11 = arith.constant 0 : index
    %9 = vector.load %arg4[%c0_10, %c0_11] : memref<1x16xf32, #tpu.memory_space<vmem>>, vector<1x16xf32>
    %10 = vector.broadcast %9 : vector<1x16xf32> to vector<16x16xf32>
    %11 = arith.addf %8, %10 : vector<16x16xf32>
    %c0_12 = arith.constant 0 : index
    %c0_13 = arith.constant 0 : index
    %12 = vector.load %arg5[%c0_12, %c0_13] : memref<16x16xbf16, #tpu.memory_space<vmem>>, vector<16x16xbf16>
    %13 = arith.truncf %5 : vector<16x16xf32> to vector<16x16xbf16>
    %cst_14 = arith.constant dense<0.000000e+00> : vector<16x16xf32>
    %14 = tpu.matmul %13, %12, %cst_14 {dimension_numbers = #tpu.dot_dimension_numbers<[1], [0], [0], [1], [0, 0, 1, 1], [], []>} : vector<16x16xbf16>, vector<16x16xbf16>, vector<16x16xf32> -> vector<16x16xf32>
    %c0_15 = arith.constant 0 : index
    %c0_16 = arith.constant 0 : index
    %15 = vector.load %arg6[%c0_15, %c0_16] : memref<1x16xf32, #tpu.memory_space<vmem>>, vector<1x16xf32>
    %16 = vector.broadcast %15 : vector<1x16xf32> to vector<16x16xf32>
    %17 = arith.addf %14, %16 : vector<16x16xf32>
    %cst_17 = arith.constant 0.000000e+00 : f32
    %18 = vector.broadcast %cst_17 : f32 to vector<16x16xf32>
    %19 = arith.subf %18, %17 : vector<16x16xf32>
    %20 = math.exp %19 : vector<16x16xf32>
    %cst_18 = arith.constant 1.000000e+00 : f32
    %21 = vector.broadcast %cst_18 : f32 to vector<16x16xf32>
    %22 = arith.addf %21, %20 : vector<16x16xf32>
    %cst_19 = arith.constant 1.000000e+00 : f32
    %23 = vector.broadcast %cst_19 : f32 to vector<16x16xf32>
    %24 = arith.divf %23, %22 : vector<16x16xf32>
    %25 = arith.mulf %11, %24 : vector<16x16xf32>
    %26 = vector.extract_strided_slice %0 {offsets = [0, 0, 0], sizes = [1, 16, 8], strides = [1, 1, 1]} : vector<4x16x8xbf16> to vector<1x16x8xbf16>
    %27 = vector.shape_cast %26 : vector<1x16x8xbf16> to vector<16x8xbf16>
    %28 = arith.truncf %25 : vector<16x16xf32> to vector<16x16xbf16>
    %cst_20 = arith.constant dense<0.000000e+00> : vector<16x8xf32>
    %29 = tpu.matmul %28, %27, %cst_20 {dimension_numbers = #tpu.dot_dimension_numbers<[1], [0], [0], [1], [0, 0, 1, 1], [], []>} : vector<16x16xbf16>, vector<16x8xbf16>, vector<16x8xf32> -> vector<16x8xf32>
    %30 = vector.extract_strided_slice %0 {offsets = [1, 0, 0], sizes = [1, 16, 8], strides = [1, 1, 1]} : vector<4x16x8xbf16> to vector<1x16x8xbf16>
    %31 = vector.shape_cast %30 : vector<1x16x8xbf16> to vector<16x8xbf16>
    %32 = arith.truncf %25 : vector<16x16xf32> to vector<16x16xbf16>
    %cst_21 = arith.constant dense<0.000000e+00> : vector<16x8xf32>
    %33 = tpu.matmul %32, %31, %cst_21 {dimension_numbers = #tpu.dot_dimension_numbers<[1], [0], [0], [1], [0, 0, 1, 1], [], []>} : vector<16x16xbf16>, vector<16x8xbf16>, vector<16x8xf32> -> vector<16x8xf32>
    %34 = vector.extract_strided_slice %0 {offsets = [2, 0, 0], sizes = [1, 16, 8], strides = [1, 1, 1]} : vector<4x16x8xbf16> to vector<1x16x8xbf16>
    %35 = vector.shape_cast %34 : vector<1x16x8xbf16> to vector<16x8xbf16>
    %36 = arith.truncf %25 : vector<16x16xf32> to vector<16x16xbf16>
    %cst_22 = arith.constant dense<0.000000e+00> : vector<16x8xf32>
    %37 = tpu.matmul %36, %35, %cst_22 {dimension_numbers = #tpu.dot_dimension_numbers<[1], [0], [0], [1], [0, 0, 1, 1], [], []>} : vector<16x16xbf16>, vector<16x8xbf16>, vector<16x8xf32> -> vector<16x8xf32>
    %38 = vector.extract_strided_slice %0 {offsets = [3, 0, 0], sizes = [1, 16, 8], strides = [1, 1, 1]} : vector<4x16x8xbf16> to vector<1x16x8xbf16>
    %39 = vector.shape_cast %38 : vector<1x16x8xbf16> to vector<16x8xbf16>
    %40 = arith.truncf %25 : vector<16x16xf32> to vector<16x16xbf16>
    %cst_23 = arith.constant dense<0.000000e+00> : vector<16x8xf32>
    %41 = tpu.matmul %40, %39, %cst_23 {dimension_numbers = #tpu.dot_dimension_numbers<[1], [0], [0], [1], [0, 0, 1, 1], [], []>} : vector<16x16xbf16>, vector<16x8xbf16>, vector<16x8xf32> -> vector<16x8xf32>
    %cst_24 = arith.constant 0.000000e+00 : f32
    %42 = vector.broadcast %cst_24 : f32 to vector<1x8xf32>
    %43 = tpu.concatenate %29, %42 in 0 : vector<16x8xf32>, vector<1x8xf32> -> vector<17x8xf32>
    %cst_25 = arith.constant 0.000000e+00 : f32
    %44 = vector.broadcast %cst_25 : f32 to vector<1x8xf32>
    %45 = tpu.concatenate %44, %37 in 0 : vector<1x8xf32>, vector<16x8xf32> -> vector<17x8xf32>
    %46 = arith.addf %43, %45 : vector<17x8xf32>
    %c0_26 = arith.constant 0 : index
    %c0_27 = arith.constant 0 : index
    %47 = vector.load %arg8[%c0_26, %c0_27] : memref<1x8xf32, #tpu.memory_space<vmem>>, vector<1x8xf32>
    %48 = vector.broadcast %47 : vector<1x8xf32> to vector<17x8xf32>
    %49 = arith.addf %46, %48 : vector<17x8xf32>
    %cst_28 = arith.constant 0.000000e+00 : f32
    %50 = vector.broadcast %cst_28 : f32 to vector<17x8xf32>
    %51 = arith.maximumf %49, %50 : vector<17x8xf32>
    %c0_29 = arith.constant 0 : index
    %c0_30 = arith.constant 0 : index
    %c0_31 = arith.constant 0 : index
    %52 = vector.load %arg9[%c0_29, %c0_30, %c0_31] : memref<1x17x8xf32, #tpu.memory_space<vmem>>, vector<1x17x8xf32>
    %53 = vector.shape_cast %52 : vector<1x17x8xf32> to vector<17x8xf32>
    %54 = vector.shape_cast %51 : vector<17x8xf32> to vector<1x17x8xf32>
    tpu.vector_store %arg9[%c0_29, %c0_30, %c0_31], %54 {strides = array<i32>} : memref<1x17x8xf32, #tpu.memory_space<vmem>>, vector<1x17x8xf32>,
    %cst_32 = arith.constant 0.000000e+00 : f32
    %55 = vector.broadcast %cst_32 : f32 to vector<1x8xf32>
    %56 = tpu.concatenate %33, %55 in 0 : vector<16x8xf32>, vector<1x8xf32> -> vector<17x8xf32>
    %cst_33 = arith.constant 0.000000e+00 : f32
    %57 = vector.broadcast %cst_33 : f32 to vector<1x8xf32>
    %58 = tpu.concatenate %57, %41 in 0 : vector<1x8xf32>, vector<16x8xf32> -> vector<17x8xf32>
    %59 = arith.addf %56, %58 : vector<17x8xf32>
    %c0_34 = arith.constant 0 : index
    %c0_35 = arith.constant 0 : index
    %60 = vector.load %arg8[%c0_34, %c0_35] : memref<1x8xf32, #tpu.memory_space<vmem>>, vector<1x8xf32>
    %61 = vector.broadcast %60 : vector<1x8xf32> to vector<17x8xf32>
    %62 = arith.addf %59, %61 : vector<17x8xf32>
    %cst_36 = arith.constant 0.000000e+00 : f32
    %63 = vector.broadcast %cst_36 : f32 to vector<17x8xf32>
    %64 = arith.maximumf %62, %63 : vector<17x8xf32>
    %c0_37 = arith.constant 0 : index
    %c0_38 = arith.constant 0 : index
    %c0_39 = arith.constant 0 : index
    %65 = vector.load %arg10[%c0_37, %c0_38, %c0_39] : memref<1x17x8xf32, #tpu.memory_space<vmem>>, vector<1x17x8xf32>
    %66 = vector.shape_cast %65 : vector<1x17x8xf32> to vector<17x8xf32>
    %67 = vector.shape_cast %64 : vector<17x8xf32> to vector<1x17x8xf32>
    tpu.vector_store %arg10[%c0_37, %c0_38, %c0_39], %67 {strides = array<i32>} : memref<1x17x8xf32, #tpu.memory_space<vmem>>, vector<1x17x8xf32>,
    return
  }
  func.func @transform_0(%arg0: i32) -> (i32, i32, i32) {
    %c0_i32 = arith.constant 0 : i32
    %c0_i32_0 = arith.constant 0 : i32
    %c0_i32_1 = arith.constant 0 : i32
    return %arg0, %c0_i32, %c0_i32_0 : i32, i32, i32
  }
  func.func @transform_1(%arg0: i32) -> (i32, i32, i32) {
    %c0_i32 = arith.constant 0 : i32
    %c0_i32_0 = arith.constant 0 : i32
    %c0_i32_1 = arith.constant 0 : i32
    return %arg0, %c0_i32, %c0_i32_0 : i32, i32, i32
  }
  func.func @transform_2(%arg0: i32) -> (i32, i32) {
    %c0_i32 = arith.constant 0 : i32
    %c0_i32_0 = arith.constant 0 : i32
    %c0_i32_1 = arith.constant 0 : i32
    return %c0_i32, %c0_i32_0 : i32, i32
  }
  func.func @transform_3(%arg0: i32) -> (i32, i32) {
    %c0_i32 = arith.constant 0 : i32
    %c0_i32_0 = arith.constant 0 : i32
    %c0_i32_1 = arith.constant 0 : i32
    return %c0_i32, %c0_i32_0 : i32, i32
  }
  func.func @transform_4(%arg0: i32) -> (i32, i32) {
    %c0_i32 = arith.constant 0 : i32
    %c0_i32_0 = arith.constant 0 : i32
    %c0_i32_1 = arith.constant 0 : i32
    return %c0_i32, %c0_i32_0 : i32, i32
  }
  func.func @transform_5(%arg0: i32) -> (i32, i32) {
    %c0_i32 = arith.constant 0 : i32
    %c0_i32_0 = arith.constant 0 : i32
    %c0_i32_1 = arith.constant 0 : i32
    return %c0_i32, %c0_i32_0 : i32, i32
  }
  func.func @transform_6(%arg0: i32) -> (i32, i32, i32) {
    %c0_i32 = arith.constant 0 : i32
    %c0_i32_0 = arith.constant 0 : i32
    %c0_i32_1 = arith.constant 0 : i32
    %c0_i32_2 = arith.constant 0 : i32
    return %c0_i32, %c0_i32_0, %c0_i32_1 : i32, i32, i32
  }
  func.func @transform_7(%arg0: i32) -> (i32, i32) {
    %c0_i32 = arith.constant 0 : i32
    %c0_i32_0 = arith.constant 0 : i32
    %c0_i32_1 = arith.constant 0 : i32
    return %c0_i32, %c0_i32_0 : i32, i32
  }
  func.func @transform_8(%arg0: i32) -> (i32, i32, i32) {
    %c0_i32 = arith.constant 0 : i32
    %c0_i32_0 = arith.constant 0 : i32
    %c0_i32_1 = arith.constant 0 : i32
    return %arg0, %c0_i32, %c0_i32_0 : i32, i32, i32
  }
  func.func @transform_9(%arg0: i32) -> (i32, i32, i32) {
    %c0_i32 = arith.constant 0 : i32
    %c0_i32_0 = arith.constant 0 : i32
    %c0_i32_1 = arith.constant 0 : i32
    return %arg0, %c0_i32, %c0_i32_0 : i32, i32, i32
  }
}

module attributes {stable_mosaic.version = 11 : i64} {
  func.func @_decoder_kernel(%arg0: i32, %arg1: memref<1x34x8xf32, #tpu.memory_space<vmem>>, %arg2: memref<1x34x8xf32, #tpu.memory_space<vmem>>, %arg3: memref<8x8xbf16, #tpu.memory_space<vmem>>, %arg4: memref<1x8xf32, #tpu.memory_space<vmem>>, %arg5: memref<8x8xbf16, #tpu.memory_space<vmem>>, %arg6: memref<1x8xf32, #tpu.memory_space<vmem>>, %arg7: memref<4x8x1xbf16, #tpu.memory_space<vmem>>, %arg8: memref<1x1xf32, #tpu.memory_space<vmem>>, %arg9: memref<1x35x1xf32, #tpu.memory_space<vmem>>, %arg10: memref<1x35x1xf32, #tpu.memory_space<vmem>>) attributes {dimension_semantics = [#tpu.dimension_semantics<parallel>], iteration_bounds = array<i64: 2>, scalar_prefetch = 0 : i64, scratch_operands = 0 : i64, tpu.core_type = #tpu.core_type<tc>, window_params = [{transform_indices = @transform_0, window_bounds = array<i64: 1, 34, 8>}, {transform_indices = @transform_1, window_bounds = array<i64: 1, 34, 8>}, {pipeline_mode = #tpu.pipeline_mode<synchronous>, transform_indices = @transform_2, window_bounds = array<i64: 8, 8>}, {pipeline_mode = #tpu.pipeline_mode<synchronous>, transform_indices = @transform_3, window_bounds = array<i64: 1, 8>}, {pipeline_mode = #tpu.pipeline_mode<synchronous>, transform_indices = @transform_4, window_bounds = array<i64: 8, 8>}, {pipeline_mode = #tpu.pipeline_mode<synchronous>, transform_indices = @transform_5, window_bounds = array<i64: 1, 8>}, {pipeline_mode = #tpu.pipeline_mode<synchronous>, transform_indices = @transform_6, window_bounds = array<i64: 4, 8, 1>}, {pipeline_mode = #tpu.pipeline_mode<synchronous>, transform_indices = @transform_7, window_bounds = array<i64: 1, 1>}, {transform_indices = @transform_8, window_bounds = array<i64: 1, 35, 1>}, {transform_indices = @transform_9, window_bounds = array<i64: 1, 35, 1>}]} {
    %c0 = arith.constant 0 : index
    %c0_0 = arith.constant 0 : index
    %c0_1 = arith.constant 0 : index
    %0 = vector.load %arg7[%c0, %c0_0, %c0_1] : memref<4x8x1xbf16, #tpu.memory_space<vmem>>, vector<4x8x1xbf16>
    %c0_2 = arith.constant 0 : index
    %c0_3 = arith.constant 0 : index
    %c0_4 = arith.constant 0 : index
    %1 = vector.load %arg1[%c0_2, %c0_3, %c0_4] : memref<1x34x8xf32, #tpu.memory_space<vmem>>, vector<1x34x8xf32>
    %2 = vector.shape_cast %1 : vector<1x34x8xf32> to vector<34x8xf32>
    %c0_5 = arith.constant 0 : index
    %c0_6 = arith.constant 0 : index
    %c0_7 = arith.constant 0 : index
    %3 = vector.load %arg2[%c0_5, %c0_6, %c0_7] : memref<1x34x8xf32, #tpu.memory_space<vmem>>, vector<1x34x8xf32>
    %4 = vector.shape_cast %3 : vector<1x34x8xf32> to vector<34x8xf32>
    %5 = arith.addf %2, %4 : vector<34x8xf32>
    %c0_8 = arith.constant 0 : index
    %c0_9 = arith.constant 0 : index
    %6 = vector.load %arg3[%c0_8, %c0_9] : memref<8x8xbf16, #tpu.memory_space<vmem>>, vector<8x8xbf16>
    %7 = arith.truncf %5 : vector<34x8xf32> to vector<34x8xbf16>
    %cst = arith.constant dense<0.000000e+00> : vector<34x8xf32>
    %8 = tpu.matmul %7, %6, %cst {dimension_numbers = #tpu.dot_dimension_numbers<[1], [0], [0], [1], [0, 0, 1, 1], [], []>} : vector<34x8xbf16>, vector<8x8xbf16>, vector<34x8xf32> -> vector<34x8xf32>
    %c0_10 = arith.constant 0 : index
    %c0_11 = arith.constant 0 : index
    %9 = vector.load %arg4[%c0_10, %c0_11] : memref<1x8xf32, #tpu.memory_space<vmem>>, vector<1x8xf32>
    %10 = vector.broadcast %9 : vector<1x8xf32> to vector<34x8xf32>
    %11 = arith.addf %8, %10 : vector<34x8xf32>
    %c0_12 = arith.constant 0 : index
    %c0_13 = arith.constant 0 : index
    %12 = vector.load %arg5[%c0_12, %c0_13] : memref<8x8xbf16, #tpu.memory_space<vmem>>, vector<8x8xbf16>
    %13 = arith.truncf %5 : vector<34x8xf32> to vector<34x8xbf16>
    %cst_14 = arith.constant dense<0.000000e+00> : vector<34x8xf32>
    %14 = tpu.matmul %13, %12, %cst_14 {dimension_numbers = #tpu.dot_dimension_numbers<[1], [0], [0], [1], [0, 0, 1, 1], [], []>} : vector<34x8xbf16>, vector<8x8xbf16>, vector<34x8xf32> -> vector<34x8xf32>
    %c0_15 = arith.constant 0 : index
    %c0_16 = arith.constant 0 : index
    %15 = vector.load %arg6[%c0_15, %c0_16] : memref<1x8xf32, #tpu.memory_space<vmem>>, vector<1x8xf32>
    %16 = vector.broadcast %15 : vector<1x8xf32> to vector<34x8xf32>
    %17 = arith.addf %14, %16 : vector<34x8xf32>
    %cst_17 = arith.constant 0.000000e+00 : f32
    %18 = vector.broadcast %cst_17 : f32 to vector<34x8xf32>
    %19 = arith.subf %18, %17 : vector<34x8xf32>
    %20 = math.exp %19 : vector<34x8xf32>
    %cst_18 = arith.constant 1.000000e+00 : f32
    %21 = vector.broadcast %cst_18 : f32 to vector<34x8xf32>
    %22 = arith.addf %21, %20 : vector<34x8xf32>
    %cst_19 = arith.constant 1.000000e+00 : f32
    %23 = vector.broadcast %cst_19 : f32 to vector<34x8xf32>
    %24 = arith.divf %23, %22 : vector<34x8xf32>
    %25 = arith.mulf %11, %24 : vector<34x8xf32>
    %26 = vector.extract_strided_slice %0 {offsets = [0, 0, 0], sizes = [1, 8, 1], strides = [1, 1, 1]} : vector<4x8x1xbf16> to vector<1x8x1xbf16>
    %27 = vector.shape_cast %26 : vector<1x8x1xbf16> to vector<8x1xbf16>
    %28 = arith.truncf %25 : vector<34x8xf32> to vector<34x8xbf16>
    %cst_20 = arith.constant dense<0.000000e+00> : vector<34x1xf32>
    %29 = tpu.matmul %28, %27, %cst_20 {dimension_numbers = #tpu.dot_dimension_numbers<[1], [0], [0], [1], [0, 0, 1, 1], [], []>} : vector<34x8xbf16>, vector<8x1xbf16>, vector<34x1xf32> -> vector<34x1xf32>
    %30 = vector.extract_strided_slice %0 {offsets = [1, 0, 0], sizes = [1, 8, 1], strides = [1, 1, 1]} : vector<4x8x1xbf16> to vector<1x8x1xbf16>
    %31 = vector.shape_cast %30 : vector<1x8x1xbf16> to vector<8x1xbf16>
    %32 = arith.truncf %25 : vector<34x8xf32> to vector<34x8xbf16>
    %cst_21 = arith.constant dense<0.000000e+00> : vector<34x1xf32>
    %33 = tpu.matmul %32, %31, %cst_21 {dimension_numbers = #tpu.dot_dimension_numbers<[1], [0], [0], [1], [0, 0, 1, 1], [], []>} : vector<34x8xbf16>, vector<8x1xbf16>, vector<34x1xf32> -> vector<34x1xf32>
    %34 = vector.extract_strided_slice %0 {offsets = [2, 0, 0], sizes = [1, 8, 1], strides = [1, 1, 1]} : vector<4x8x1xbf16> to vector<1x8x1xbf16>
    %35 = vector.shape_cast %34 : vector<1x8x1xbf16> to vector<8x1xbf16>
    %36 = arith.truncf %25 : vector<34x8xf32> to vector<34x8xbf16>
    %cst_22 = arith.constant dense<0.000000e+00> : vector<34x1xf32>
    %37 = tpu.matmul %36, %35, %cst_22 {dimension_numbers = #tpu.dot_dimension_numbers<[1], [0], [0], [1], [0, 0, 1, 1], [], []>} : vector<34x8xbf16>, vector<8x1xbf16>, vector<34x1xf32> -> vector<34x1xf32>
    %38 = vector.extract_strided_slice %0 {offsets = [3, 0, 0], sizes = [1, 8, 1], strides = [1, 1, 1]} : vector<4x8x1xbf16> to vector<1x8x1xbf16>
    %39 = vector.shape_cast %38 : vector<1x8x1xbf16> to vector<8x1xbf16>
    %40 = arith.truncf %25 : vector<34x8xf32> to vector<34x8xbf16>
    %cst_23 = arith.constant dense<0.000000e+00> : vector<34x1xf32>
    %41 = tpu.matmul %40, %39, %cst_23 {dimension_numbers = #tpu.dot_dimension_numbers<[1], [0], [0], [1], [0, 0, 1, 1], [], []>} : vector<34x8xbf16>, vector<8x1xbf16>, vector<34x1xf32> -> vector<34x1xf32>
    %cst_24 = arith.constant 0.000000e+00 : f32
    %42 = vector.broadcast %cst_24 : f32 to vector<1x1xf32>
    %43 = tpu.concatenate %29, %42 in 0 : vector<34x1xf32>, vector<1x1xf32> -> vector<35x1xf32>
    %cst_25 = arith.constant 0.000000e+00 : f32
    %44 = vector.broadcast %cst_25 : f32 to vector<1x1xf32>
    %45 = tpu.concatenate %44, %37 in 0 : vector<1x1xf32>, vector<34x1xf32> -> vector<35x1xf32>
    %46 = arith.addf %43, %45 : vector<35x1xf32>
    %c0_26 = arith.constant 0 : index
    %c0_27 = arith.constant 0 : index
    %47 = vector.load %arg8[%c0_26, %c0_27] : memref<1x1xf32, #tpu.memory_space<vmem>>, vector<1x1xf32>
    %48 = vector.broadcast %47 : vector<1x1xf32> to vector<35x1xf32>
    %49 = arith.addf %46, %48 : vector<35x1xf32>
    %c0_28 = arith.constant 0 : index
    %c0_29 = arith.constant 0 : index
    %c0_30 = arith.constant 0 : index
    %50 = vector.load %arg9[%c0_28, %c0_29, %c0_30] : memref<1x35x1xf32, #tpu.memory_space<vmem>>, vector<1x35x1xf32>
    %51 = vector.shape_cast %50 : vector<1x35x1xf32> to vector<35x1xf32>
    %52 = vector.shape_cast %49 : vector<35x1xf32> to vector<1x35x1xf32>
    tpu.vector_store %arg9[%c0_28, %c0_29, %c0_30], %52 {strides = array<i32>} : memref<1x35x1xf32, #tpu.memory_space<vmem>>, vector<1x35x1xf32>,
    %cst_31 = arith.constant 0.000000e+00 : f32
    %53 = vector.broadcast %cst_31 : f32 to vector<1x1xf32>
    %54 = tpu.concatenate %33, %53 in 0 : vector<34x1xf32>, vector<1x1xf32> -> vector<35x1xf32>
    %cst_32 = arith.constant 0.000000e+00 : f32
    %55 = vector.broadcast %cst_32 : f32 to vector<1x1xf32>
    %56 = tpu.concatenate %55, %41 in 0 : vector<1x1xf32>, vector<34x1xf32> -> vector<35x1xf32>
    %57 = arith.addf %54, %56 : vector<35x1xf32>
    %c0_33 = arith.constant 0 : index
    %c0_34 = arith.constant 0 : index
    %58 = vector.load %arg8[%c0_33, %c0_34] : memref<1x1xf32, #tpu.memory_space<vmem>>, vector<1x1xf32>
    %59 = vector.broadcast %58 : vector<1x1xf32> to vector<35x1xf32>
    %60 = arith.addf %57, %59 : vector<35x1xf32>
    %c0_35 = arith.constant 0 : index
    %c0_36 = arith.constant 0 : index
    %c0_37 = arith.constant 0 : index
    %61 = vector.load %arg10[%c0_35, %c0_36, %c0_37] : memref<1x35x1xf32, #tpu.memory_space<vmem>>, vector<1x35x1xf32>
    %62 = vector.shape_cast %61 : vector<1x35x1xf32> to vector<35x1xf32>
    %63 = vector.shape_cast %60 : vector<35x1xf32> to vector<1x35x1xf32>
    tpu.vector_store %arg10[%c0_35, %c0_36, %c0_37], %63 {strides = array<i32>} : memref<1x35x1xf32, #tpu.memory_space<vmem>>, vector<1x35x1xf32>,
    return
  }
  func.func @transform_0(%arg0: i32) -> (i32, i32, i32) {
    %c0_i32 = arith.constant 0 : i32
    %c0_i32_0 = arith.constant 0 : i32
    %c0_i32_1 = arith.constant 0 : i32
    return %arg0, %c0_i32, %c0_i32_0 : i32, i32, i32
  }
  func.func @transform_1(%arg0: i32) -> (i32, i32, i32) {
    %c0_i32 = arith.constant 0 : i32
    %c0_i32_0 = arith.constant 0 : i32
    %c0_i32_1 = arith.constant 0 : i32
    return %arg0, %c0_i32, %c0_i32_0 : i32, i32, i32
  }
  func.func @transform_2(%arg0: i32) -> (i32, i32) {
    %c0_i32 = arith.constant 0 : i32
    %c0_i32_0 = arith.constant 0 : i32
    %c0_i32_1 = arith.constant 0 : i32
    return %c0_i32, %c0_i32_0 : i32, i32
  }
  func.func @transform_3(%arg0: i32) -> (i32, i32) {
    %c0_i32 = arith.constant 0 : i32
    %c0_i32_0 = arith.constant 0 : i32
    %c0_i32_1 = arith.constant 0 : i32
    return %c0_i32, %c0_i32_0 : i32, i32
  }
  func.func @transform_4(%arg0: i32) -> (i32, i32) {
    %c0_i32 = arith.constant 0 : i32
    %c0_i32_0 = arith.constant 0 : i32
    %c0_i32_1 = arith.constant 0 : i32
    return %c0_i32, %c0_i32_0 : i32, i32
  }
  func.func @transform_5(%arg0: i32) -> (i32, i32) {
    %c0_i32 = arith.constant 0 : i32
    %c0_i32_0 = arith.constant 0 : i32
    %c0_i32_1 = arith.constant 0 : i32
    return %c0_i32, %c0_i32_0 : i32, i32
  }
  func.func @transform_6(%arg0: i32) -> (i32, i32, i32) {
    %c0_i32 = arith.constant 0 : i32
    %c0_i32_0 = arith.constant 0 : i32
    %c0_i32_1 = arith.constant 0 : i32
    %c0_i32_2 = arith.constant 0 : i32
    return %c0_i32, %c0_i32_0, %c0_i32_1 : i32, i32, i32
  }
  func.func @transform_7(%arg0: i32) -> (i32, i32) {
    %c0_i32 = arith.constant 0 : i32
    %c0_i32_0 = arith.constant 0 : i32
    %c0_i32_1 = arith.constant 0 : i32
    return %c0_i32, %c0_i32_0 : i32, i32
  }
  func.func @transform_8(%arg0: i32) -> (i32, i32, i32) {
    %c0_i32 = arith.constant 0 : i32
    %c0_i32_0 = arith.constant 0 : i32
    %c0_i32_1 = arith.constant 0 : i32
    return %arg0, %c0_i32, %c0_i32_0 : i32, i32, i32
  }
  func.func @transform_9(%arg0: i32) -> (i32, i32, i32) {
    %c0_i32 = arith.constant 0 : i32
    %c0_i32_0 = arith.constant 0 : i32
    %c0_i32_1 = arith.constant 0 : i32
    return %arg0, %c0_i32, %c0_i32_0 : i32, i32, i32
  }
}

</mosaic_0001>

<bundles_post_ra>
// kernel: forward.11
= control target key start
LH: loop header
LB: loop body
LE: loop exit
PB: predicated region body
PF: predicated region fallthrough
CT: control target
= control target key end

     0   :  { %s663_s24 = smov 0   ;;  %s715_s0 = inlined_call_operand.vmem [shape: f32[2,16,32], index: 0, kind: input, shape index: {}]   ;;  %s716_s1 = inlined_call_operand.vmem [shape: bf16[32,16], index: 1, kind: input, shape index: {}]   ;;  %s717_s2 = inlined_call_operand.vmem [shape: f32[1,16], index: 2, kind: input, shape index: {}]   ;;  %s718_s3 = inlined_call_operand.vmem [shape: bf16[16,16], index: 3, kind: input, shape index: {}]   ;;  %s719_s4 = inlined_call_operand.vmem [shape: f32[1,16], index: 4, kind: input, shape index: {}]   ;;  %s720_s5 = inlined_call_operand.vmem [shape: bf16[16,16], index: 5, kind: input, shape index: {}]   ;;  %s721_s6 = inlined_call_operand.vmem [shape: f32[1,16], index: 6, kind: input, shape index: {}]   ;;  %s722_s7 = inlined_call_operand.vmem [shape: f32[2,16,16], index: 7, kind: output, shape index: {}]  }
   0x1 LB: > { %s541_s25 = sadd.s32 4294967295, %s619_s24   ;;  %p545_p0 = scmp.ge.s32.totalorder %s619_s24, 1  ;;  %s619_s24 = sphi %s663_s24, %s17_s24  }
   0x2   : > { %p237_p1 = scmp.lt.s32.totalorder %s619_s24, 3 }
   0x4   : > { %p238_p2 = pnand %p545_p0, %p237_p1 }
   0x5   : > { %p269_p3 = scmp.lt.s32.totalorder (!%p238_p2), %s541_s25, 1 }
   0x6   : > { %241 = sbr.rel (%p238_p2) target bundleno = 467 (0x1d3), region = 48 }
   0xb   : > { %v601_v0 = vld [vmem:[%s716_s1 + $0x8] sm:$0xff]   ;;  %v621_v1 = vmov 0.0   ;;  %v602_v2 = vld [vmem:[%s716_s1] sm:$0xff]   ;;  %vm622_vm0 = vmmov 0   ;;  %s724_s25 = smov (!%p269_p3, %s541_s25), 1  ;;  %vm306_vm1 = vcmask 261120  }
   0xc   : > { %571 = vmatprep.subr.bf16.mxu0 %v621_v1  ;;  %579 = vmatprep.subr.bf16.mxu1 %v621_v1  ;;  %s562_s30 = sshll.u32 %s724_s25, 4  ;;  %v603_v6 = vld [vmem:[%s718_s3] sm:$0xff]   ;;  %vm369_vm2 = vcmask 130048  }
   0xd   : > { %572 = vmatpush3.bf16.msra.mxu0 %v601_v0  ;;  %575 = vmatprep.mubr.msk.bf16.mxu0 %vm622_vm0, %v621_v1  ;;  %s273_s10 = scalar_lea.vmem %s715_s0, %s562_s30  ;;  %v550_v7 = vld [vmem:[%s717_s2] ss:$0 sm:$0xff]  ;;  %s278_s23 = scalar_lea.vmem %s722_s7, %s562_s30 }
   0xe   : > { %573 = vmatprep.subr.bf16.mxu0 %v621_v1  ;;  %581 = vmatprep.mubr.msk.bf16.mxu1 %vm622_vm0, %v621_v1  ;;  %v280_v3 = vld [vmem:[%s273_s10] sm:$0xff]  ;;  %v281_v4 = vld [vmem:[%s273_s10 + $0x8] sm:$0xff] }
   0xf   : > { %v286_v5 = vpack.c.bf16 %v281_v4, %v280_v3  ;;  %580 = vmatpush3.bf16.msra.mxu1 %v603_v6  ;;  %v604_v16 = vld [vmem:[%s720_s5] sm:$0xff]  }
  0x10   : > { %585 = vmatprep.subr.bf16.mxu1 %v621_v1  ;;  %v557_v22 = vld [vmem:[%s721_s6] ss:$0 sm:$0xff] }
  0x11   : > { %574 = vmatpush3.bf16.msra.mxu0 %v602_v2  ;;  %v554_v37 = vld [vmem:[%s719_s4] ss:$0 sm:$0xff] }
  0x14   : > { %576 = vmatmul.mubr.msk.bf16.vlgmr.msra.gmra.mxu0 %vm306_vm1, %v286_v5 }
  0xd4   : > { %v344_v8 = vpop.f32.mrf.mxu0 }
  0xd5   : > { %v345_v10 = vadd.f32 %v550_v7, %v344_v8 }
  0xd6   : > { %v577_v9 = vpop.f32.mrf.mxu0 }
  0xd7   : > { %v351_v14 = vmax.f32 %v345_v10, 0.0 }
  0xd8   : > { %v347_v11 = vpop.f32.mrf.mxu0 }
  0xd9   : > { %v348_v12 = vadd.f32 %v550_v7, %v347_v11 }
  0xda   : > { %v578_v13 = vpop.f32.mrf.mxu0 }
  0xdb   : > { %v352_v15 = vmax.f32 %v348_v12, 0.0 }
  0xdd   : > { %v355_v17 = vpack.c.bf16 %v352_v15, %v351_v14 }
  0xdf   : > { %582 = vmatmul.mubr.msk.bf16.vlgmr.msra.gmra.mxu1 %vm369_vm2, %v355_v17 }
  0xe0   : > { %586 = vmatpush3.bf16.msra.mxu1 %v604_v16  ;;  %587 = vmatprep.mubr.msk.bf16.mxu1 %vm622_vm0, %v621_v1 }
  0xe7   : > { %588 = vmatmul.mubr.msk.bf16.vlgmr.msra.gmra.mxu1 %vm369_vm2, %v355_v17 }
 0x19f   : > { %v407_v18 = vpop.f32.mrf.mxu1 }
 0x1a0   : > { %v408_v38 = vadd.f32 %v554_v37, %v407_v18 }
 0x1a1   : > { %v583_v19 = vpop.f32.mrf.mxu1 }
 0x1a3   : > { %v410_v20 = vpop.f32.mrf.mxu1 }
 0x1a4   : > { %v411_v41 = vadd.f32 %v554_v37, %v410_v20 }
 0x1a5   : > { %v584_v21 = vpop.f32.mrf.mxu1 }
 0x1a7   : > { %v463_v23 = vpop.f32.mrf.mxu1 }
 0x1a8   : > { %v464_v24 = vadd.f32 %v557_v22, %v463_v23 }
 0x1a9   : > { %v589_v25 = vpop.f32.mrf.mxu1 }
 0x1aa   : > { %v470_v26 = vsub.f32 0.0, %v464_v24 }
 0x1ab   : > { %v466_v27 = vpop.f32.mrf.mxu1 }
 0x1ac   : > { %v472_v28 = vmul.f32 1.442695, %v470_v26  ;;  %v467_v29 = vadd.f32 %v557_v22, %v466_v27 }
 0x1ad   : > { %v590_v30 = vpop.f32.mrf.mxu1 }
 0x1ae   : > { %605 = vpow2.f32 %v472_v28  ;;  %v471_v31 = vsub.f32 0.0, %v467_v29 }
 0x1b0   : > { %v474_v32 = vmul.f32 1.442695, %v471_v31 }
 0x1b2   : > { %607 = vpow2.f32 %v474_v32 }
 0x1bb   : > { %v606_v33 = vpop.eup %605 }
 0x1bc   : > { %v476_v34 = vadd.f32 1.0, %v606_v33 }
 0x1be   : > { %609 = vrcp.f32 %v476_v34 }
 0x1bf   : > { %v608_v35 = vpop.eup %607 }
 0x1c0   : > { %v477_v36 = vadd.f32 1.0, %v608_v35 }
 0x1c2   : > { %611 = vrcp.f32 %v477_v36 }
 0x1cb   : > { %v610_v39 = vpop.eup %609 }
 0x1cc   : > { %v482_v40 = vmul.f32 %v610_v39, %v408_v38 }
 0x1ce   : > { %484 = vst.msk [vmem:[%s278_s23] sm:$0xff] %vm369_vm2, %v482_v40 }
 0x1cf   : > { %v612_v42 = vpop.eup %611 }
 0x1d0   : > { %v483_v43 = vmul.f32 %v612_v42, %v411_v41 }
 0x1d2   : > { %485 = vst.msk [vmem:[%s278_s23 + $0x8] sm:$0xff] %vm369_vm2, %v483_v43 }
 0x1d3 PF: > { %s17_s24 = sadd.s32 1, %s619_s24  }
 0x1d4   : > { %p14_p4 = scmp.ge.s32.totalorder %s17_s24, 4  }
 0x1d6   :  { %16 = sbr.rel (!%p14_p4) target bundleno = 1 (0x1), region = 78 }

// kernel: forward.10
= control target key start
LH: loop header
LB: loop body
LE: loop exit
PB: predicated region body
PF: predicated region fallthrough
CT: control target
= control target key end

     0   :  { %s773_s24 = smov 0   ;;  %s847_s0 = inlined_call_operand.vmem [shape: f32[2,34,4], index: 0, kind: input, shape index: {}]   ;;  %s848_s1 = inlined_call_operand.vmem [shape: bf16[4,8], index: 1, kind: input, shape index: {}]   ;;  %s849_s2 = inlined_call_operand.vmem [shape: f32[1,8], index: 2, kind: input, shape index: {}]   ;;  %s850_s3 = inlined_call_operand.vmem [shape: bf16[8,8], index: 3, kind: input, shape index: {}]   ;;  %s851_s4 = inlined_call_operand.vmem [shape: f32[1,8], index: 4, kind: input, shape index: {}]   ;;  %s852_s5 = inlined_call_operand.vmem [shape: bf16[8,8], index: 5, kind: input, shape index: {}]   ;;  %s853_s6 = inlined_call_operand.vmem [shape: f32[1,8], index: 6, kind: input, shape index: {}]   ;;  %s854_s7 = inlined_call_operand.vmem [shape: f32[2,34,8], index: 7, kind: output, shape index: {}]  }
   0x1 LB: > { %s615_s25 = sadd.s32 4294967295, %s729_s24   ;;  %p619_p0 = scmp.ge.s32.totalorder %s729_s24, 1  ;;  %s729_s24 = sphi %s773_s24, %s17_s24  }
   0x2   : > { %p237_p1 = scmp.lt.s32.totalorder %s729_s24, 3 }
   0x4   : > { %p238_p2 = pnand %p619_p0, %p237_p1 }
   0x5   : > { %p269_p3 = scmp.lt.s32.totalorder (!%p238_p2), %s615_s25, 1 }
   0x6   : > { %241 = sbr.rel (%p238_p2) target bundleno = 470 (0x1d6), region = 48 }
   0xb   : > { %v285_v0 = vld [vmem:[%s848_s1] sm:$0x3]  ;;  %vm306_vm0 = vcmask 1041408   ;;  %v731_v1 = vmov 0.0   ;;  %s856_s25 = smov (!%p269_p3, %s615_s25), 1  ;;  %vm732_vm1 = vmmov 0  }
   0xc   : > { %648 = vmatprep.subr.bf16.mxu0 %v731_v1  ;;  %v308_v2 = vsel %vm306_vm0, %v285_v0, 0  ;;  %690 = vmatprep.subr.bf16.mxu1 %v731_v1  ;;  %s692_s28 = smul.u32 40, %s856_s25  ;;  %vm296_vm2 = vcmask 31744   ;;  %vm392_vm3 = vcmask 1043456   ;;  %v452_v11 = vld [vmem:[%s852_s5] sm:$0xf] }
   0xd   : > { %649 = vmatpush3.bf16.msra.mxu0 %v308_v2  ;;  %691 = vmatpush3.bf16.msra.mxu1 %v308_v2  ;;  %v461_v12 = vsel %vm392_vm3, %v452_v11, 0  ;;  %v371_v13 = vld [vmem:[%s850_s3] sm:$0xf]  ;;  %vm382_vm4 = vcmask 64512   ;;  %vm558_vm5 = vcmask 58368  }
   0xe   : > { %650 = vmatprep.mubr.msk.bf16.mxu0 %vm732_vm1, %v731_v1  ;;  %654 = vmatprep.mubr.msk.bf16.mxu1 %vm732_vm1, %v731_v1  ;;  %s273_s8 = scalar_lea.vmem %s847_s0, %s692_s28  ;;  %v394_v14 = vsel %vm392_vm3, %v371_v13, 0  ;;  %v622_v15 = vld [vmem:[%s849_s2] ss:$0 sm:$0xff]  ;;  %s278_s21 = scalar_lea.vmem %s854_s7, %s692_s28 }
   0xf   : > { %676 = vmatprep.subr.bf16.mxu0 %v731_v1  ;;  %662 = vmatprep.subr.bf16.mxu1 %v731_v1  ;;  %v280_v3 = vld [vmem:[%s273_s8] sm:$0xff]  ;;  %v281_v4 = vld [vmem:[%s273_s8 + $0x8] sm:$0xff]  ;;  %v282_v5 = vld [vmem:[%s273_s8 + $0x10] sm:$0xff] }
  0x10   : > { %v286_v6 = vpack.c.bf16 %v281_v4, %v280_v3  ;;  %v283_v7 = vld [vmem:[%s273_s8 + $0x18] sm:$0xff]  ;;  %v284_v9 = vld [vmem:[%s273_s8 + $0x20] sm:$0x3] }
  0x11   : > { %v287_v8 = vpack.c.bf16 %v283_v7, %v282_v5  ;;  %v288_v10 = vpack.c.bf16 %v284_v9, %v284_v9  ;;  %v630_v41 = vld [vmem:[%s853_s6] ss:$0 sm:$0xff] }
  0x12   : > { %651 = vmatmul.mubr.msk.bf16.vlgmr.msra.gmra.mxu0 %vm296_vm2, %v286_v6 }
  0x13   : > { %655 = vmatmul.mubr.msk.bf16.vlgmr.msra.gmra.mxu1 %vm296_vm2, %v287_v8  ;;  %678 = vmatprep.mubr.msk.bf16.mxu0 %vm732_vm1, %v731_v1 }
  0x14   : > { %658 = vmatprep.mubr.msk.bf16.mxu1 %vm732_vm1, %v731_v1  ;;  %677 = vmatpush3.bf16.msra.mxu0 %v461_v12 }
  0x15   : > { %663 = vmatpush3.bf16.msra.mxu1 %v394_v14 }
  0x1b   : > { %659 = vmatmul.mubr.msk.bf16.gmra.mxu1 %vm296_vm2, %v288_v10 }
  0x1c   : > { %664 = vmatprep.mubr.msk.bf16.mxu1 %vm732_vm1, %v731_v1 }
  0xd2   : > { %v344_v16 = vpop.f32.mrf.mxu0 }
  0xd3   : > { %v352_v17 = vpop.f32.mrf.mxu1  ;;  %v345_v19 = vadd.f32 %v622_v15, %v344_v16 }
  0xd4   : > { %v652_v18 = vpop.f32.mrf.mxu0  ;;  %v353_v28 = vadd.f32 %v622_v15, %v352_v17 }
  0xd5   : > { %v656_v20 = vpop.f32.mrf.mxu1  ;;  %v366_v25 = vmax.f32 %v345_v19, 0.0 }
  0xd6   : > { %v347_v21 = vpop.f32.mrf.mxu0  ;;  %v368_v33 = vmax.f32 %v353_v28, 0.0 }
  0xd7   : > { %v348_v22 = vadd.f32 %v622_v15, %v347_v21  ;;  %v355_v23 = vpop.f32.mrf.mxu1 }
  0xd8   : > { %v653_v24 = vpop.f32.mrf.mxu0  ;;  %v356_v30 = vadd.f32 %v622_v15, %v355_v23 }
  0xd9   : > { %v367_v26 = vmax.f32 %v348_v22, 0.0  ;;  %v657_v27 = vpop.f32.mrf.mxu1  ;;  %v626_v24 = vld [vmem:[%s851_s4] ss:$0 sm:$0xff] }
  0xda   : > { %v369_v34 = vmax.f32 %v356_v30, 0.0 }
  0xdb   : > { %v372_v29 = vpack.c.bf16 %v367_v26, %v366_v25  ;;  %v360_v31 = vpop.f32.mrf.mxu1 }
  0xdc   : > { %v361_v36 = vadd.f32 %v622_v15, %v360_v31  ;;  %v373_v38 = vpack.c.bf16 %v369_v34, %v368_v33 }
  0xdd   : > { %665 = vmatmul.mubr.msk.bf16.vlgmr.msra.gmra.mxu1 %vm382_vm4, %v372_v29  ;;  %679 = vmatmul.mubr.msk.bf16.vlgmr.msra.gmra.mxu0 %vm382_vm4, %v372_v29  ;;  %v660_v32 = vpop.f32.mrf.mxu1 }
  0xde   : > { %668 = vmatprep.mubr.msk.bf16.mxu1 %vm732_vm1, %v731_v1  ;;  %682 = vmatprep.mubr.msk.bf16.mxu0 %vm732_vm1, %v731_v1  ;;  %v370_v39 = vmax.f32 %v361_v36, 0.0 }
  0xdf   : > { %v363_v35 = vpop.f32.mrf.mxu1 }
  0xe0   : > { %v374_v40 = vpack.c.bf16 %v370_v39, %v370_v39 }
  0xe1   : > { %v661_v37 = vpop.f32.mrf.mxu1 }
  0xe5   : > { %669 = vmatmul.mubr.msk.bf16.gmra.mxu1 %vm382_vm4, %v373_v38  ;;  %683 = vmatmul.mubr.msk.bf16.gmra.mxu0 %vm382_vm4, %v373_v38 }
  0xe6   : > { %672 = vmatprep.mubr.msk.bf16.mxu1 %vm732_vm1, %v731_v1  ;;  %686 = vmatprep.mubr.msk.bf16.mxu0 %vm732_vm1, %v731_v1 }
  0xed   : > { %673 = vmatmul.mubr.msk.bf16.gmra.mxu1 %vm382_vm4, %v374_v40  ;;  %687 = vmatmul.mubr.msk.bf16.gmra.mxu0 %vm382_vm4, %v374_v40 }
 0x19d   : > { %v430_v42 = vpop.f32.mrf.mxu1  ;;  %v497_v43 = vpop.f32.mrf.mxu0 }
 0x19e   : > { %v498_v44 = vadd.f32 %v630_v41, %v497_v43  ;;  %v431_v26 = vadd.f32 %v626_v24, %v430_v42 }
 0x19f   : > { %v666_v45 = vpop.f32.mrf.mxu1  ;;  %v680_v46 = vpop.f32.mrf.mxu0 }
 0x1a0   : > { %v519_v47 = vsub.f32 0.0, %v498_v44 }
 0x1a1   : > { %v433_v48 = vpop.f32.mrf.mxu1  ;;  %v500_v49 = vpop.f32.mrf.mxu0 }
 0x1a2   : > { %v524_v50 = vmul.f32 1.442695, %v519_v47  ;;  %v501_v51 = vadd.f32 %v630_v41, %v500_v49  ;;  %v434_v31 = vadd.f32 %v626_v24, %v433_v48 }
 0x1a3   : > { %v667_v52 = vpop.f32.mrf.mxu1  ;;  %v681_v53 = vpop.f32.mrf.mxu0 }
 0x1a4   : > { %703 = vpow2.f32 %v524_v50  ;;  %v520_v54 = vsub.f32 0.0, %v501_v51 }
 0x1a5   : > { %v438_v55 = vpop.f32.mrf.mxu1  ;;  %v505_v56 = vpop.f32.mrf.mxu0 }
 0x1a6   : > { %v526_v57 = vmul.f32 1.442695, %v520_v54  ;;  %v506_v58 = vadd.f32 %v630_v41, %v505_v56  ;;  %v439_v34 = vadd.f32 %v626_v24, %v438_v55 }
 0x1a7   : > { %v670_v59 = vpop.f32.mrf.mxu1  ;;  %v684_v60 = vpop.f32.mrf.mxu0 }
 0x1a8   : > { %705 = vpow2.f32 %v526_v57  ;;  %v521_v61 = vsub.f32 0.0, %v506_v58 }
 0x1a9   : > { %v441_v62 = vpop.f32.mrf.mxu1  ;;  %v508_v63 = vpop.f32.mrf.mxu0 }
 0x1aa   : > { %v528_v0 = vmul.f32 1.442695, %v521_v61  ;;  %v509_v1 = vadd.f32 %v630_v41, %v508_v63  ;;  %v442_v37 = vadd.f32 %v626_v24, %v441_v62 }
 0x1ab   : > { %v671_v2 = vpop.f32.mrf.mxu1  ;;  %v685_v3 = vpop.f32.mrf.mxu0 }
 0x1ac   : > { %707 = vpow2.f32 %v528_v0  ;;  %v522_v4 = vsub.f32 0.0, %v509_v1 }
 0x1ad   : > { %v446_v5 = vpop.f32.mrf.mxu1  ;;  %v513_v6 = vpop.f32.mrf.mxu0 }
 0x1ae   : > { %v530_v7 = vmul.f32 1.442695, %v522_v4  ;;  %v514_v8 = vadd.f32 %v630_v41, %v513_v6  ;;  %v447_v40 = vadd.f32 %v626_v24, %v446_v5 }
 0x1af   : > { %v674_v9 = vpop.f32.mrf.mxu1  ;;  %v688_v10 = vpop.f32.mrf.mxu0 }
 0x1b0   : > { %709 = vpow2.f32 %v530_v7  ;;  %v523_v11 = vsub.f32 0.0, %v514_v8 }
 0x1b1   : > { %v704_v12 = vpop.eup %703  ;;  %v449_v13 = vpop.f32.mrf.mxu1 }
 0x1b2   : > { %v516_v14 = vpop.f32.mrf.mxu0  ;;  %v534_v15 = vadd.f32 1.0, %v704_v12  ;;  %v532_v16 = vmul.f32 1.442695, %v523_v11 }
 0x1b3   : > { %v675_v17 = vpop.f32.mrf.mxu1 }
 0x1b4   : > { %v689_v18 = vpop.f32.mrf.mxu0  ;;  %711 = vrcp.f32 %v534_v15 }
 0x1b5   : > { %v706_v19 = vpop.eup %705  ;;  %713 = vpow2.f32 %v532_v16 }
 0x1b6   : > { %v535_v20 = vadd.f32 1.0, %v706_v19 }
 0x1b8   : > { %715 = vrcp.f32 %v535_v20 }
 0x1b9   : > { %v708_v21 = vpop.eup %707 }
 0x1ba   : > { %v536_v22 = vadd.f32 1.0, %v708_v21 }
 0x1bc   : > { %717 = vrcp.f32 %v536_v22 }
 0x1bd   : > { %v710_v23 = vpop.eup %709 }
 0x1be   : > { %v537_v25 = vadd.f32 1.0, %v710_v23 }
 0x1c0   : > { %719 = vrcp.f32 %v537_v25 }
 0x1c1   : > { %v712_v27 = vpop.eup %711 }
 0x1c2   : > { %v714_v28 = vpop.eup %713  ;;  %v549_v29 = vmul.f32 %v712_v27, %v431_v26 }
 0x1c3   : > { %v538_v30 = vadd.f32 1.0, %v714_v28 }
 0x1c4   : > { %554 = vst.msk [vmem:[%s278_s21] sm:$0xff] %vm382_vm4, %v549_v29 }
 0x1c5   : > { %v716_v32 = vpop.eup %715  ;;  %721 = vrcp.f32 %v538_v30 }
 0x1c6   : > { %v550_v33 = vmul.f32 %v716_v32, %v434_v31 }
 0x1c8   : > { %555 = vst.msk [vmem:[%s278_s21 + $0x8] sm:$0xff] %vm382_vm4, %v550_v33 }
 0x1c9   : > { %v718_v35 = vpop.eup %717 }
 0x1ca   : > { %v551_v36 = vmul.f32 %v718_v35, %v439_v34 }
 0x1cc   : > { %556 = vst.msk [vmem:[%s278_s21 + $0x10] sm:$0xff] %vm382_vm4, %v551_v36 }
 0x1cd   : > { %v720_v38 = vpop.eup %719 }
 0x1ce   : > { %v552_v39 = vmul.f32 %v720_v38, %v442_v37 }
 0x1d0   : > { %557 = vst.msk [vmem:[%s278_s21 + $0x18] sm:$0xff] %vm382_vm4, %v552_v39 }
 0x1d2   : > { %v722_v41 = vpop.eup %721 }
 0x1d3   : > { %v553_v42 = vmul.f32 %v722_v41, %v447_v40 }
 0x1d5   : > { %559 = vst.msk [vmem:[%s278_s21 + $0x20] sm:$0x3] %vm558_vm5, %v553_v42 }
 0x1d6 PF: > { %s17_s24 = sadd.s32 1, %s729_s24  }
 0x1d7   : > { %p14_p4 = scmp.ge.s32.totalorder %s17_s24, 4  }
 0x1d9   :  { %16 = sbr.rel (!%p14_p4) target bundleno = 1 (0x1), region = 78 }

// kernel: forward.13
= control target key start
LH: loop header
LB: loop body
LE: loop exit
PB: predicated region body
PF: predicated region fallthrough
CT: control target
= control target key end

     0   :  { %s357_s12 = smov 0   ;;  %s383_s0 = inlined_call_operand.vmem [shape: f32[2,7,32], index: 0, kind: input, shape index: {}]   ;;  %s384_s1 = inlined_call_operand.vmem [shape: bf16[32,16], index: 1, kind: input, shape index: {}]   ;;  %s385_s2 = inlined_call_operand.vmem [shape: f32[1,16], index: 2, kind: input, shape index: {}]   ;;  %s386_s3 = inlined_call_operand.vmem [shape: f32[2,7,16], index: 3, kind: output, shape index: {}]  }
   0x1 LB: > { %s291_s13 = sadd.s32 4294967295, %s333_s12   ;;  %p295_p0 = scmp.ge.s32.totalorder %s333_s12, 1  ;;  %s333_s12 = sphi %s357_s12, %s13_s12  }
   0x2   : > { %p136_p1 = scmp.lt.s32.totalorder %s333_s12, 3 }
   0x4   : > { %p137_p2 = pnand %p295_p0, %p136_p1 }
   0x5   : > { %p158_p3 = scmp.lt.s32.totalorder (!%p137_p2), %s291_s13, 1 }
   0x6   : > { %140 = sbr.rel (%p137_p2) target bundleno = 219 (0xdb), region = 32 }
   0xb   : > { %v325_v0 = vld [vmem:[%s384_s1 + $0x8] sm:$0xff]   ;;  %v335_v1 = vmov 0.0   ;;  %v326_v2 = vld [vmem:[%s384_s1] sm:$0xff]   ;;  %vm336_vm0 = vmmov 0   ;;  %s388_s13 = smov (!%p158_p3, %s291_s13), 1  ;;  %vm192_vm1 = vcmask 261120  }
   0xc   : > { %307 = vmatprep.subr.bf16.mxu0 %v335_v1  ;;  %311 = vmatprep.mubr.msk.bf16.mxu0 %vm336_vm0, %v335_v1  ;;  %s296_s18 = sshll.u32 %s388_s13, 3  ;;  %v298_v5 = vld [vmem:[%s385_s2] ss:$0 sm:$0xff]  ;;  %vm236_vm2 = vcmask 129024  }
   0xd   : > { %308 = vmatpush3.bf16.msra.mxu0 %v325_v0  ;;  %s161_s21 = scalar_lea.vmem %s383_s0, %s296_s18  ;;  %s165_s26 = scalar_lea.vmem %s386_s3, %s296_s18 }
   0xe   : > { %309 = vmatprep.subr.bf16.mxu0 %v335_v1  ;;  %v167_v3 = vld [vmem:[%s161_s21] sm:$0x7f] }
   0xf   : > { %v172_v4 = vpack.c.bf16 %v167_v3, %v167_v3 }
  0x11   : > { %310 = vmatpush3.bf16.msra.mxu0 %v326_v2 }
  0x14   : > { %312 = vmatmul.mubr.msk.bf16.vlgmr.msra.gmra.mxu0 %vm192_vm1, %v172_v4 }
  0xd4   : > { %v230_v6 = vpop.f32.mrf.mxu0 }
  0xd5   : > { %v231_v7 = vadd.f32 %v298_v5, %v230_v6 }
  0xd6   : > { %v313_v8 = vpop.f32.mrf.mxu0 }
  0xd7   : > { %237 = vst.msk [vmem:[%s165_s26] sm:$0x7f] %vm236_vm2, %v231_v7 }
  0xd8   : > { %v233_v9 = vpop.f32.mrf.mxu0 }
  0xda   : > { %v314_v10 = vpop.f32.mrf.mxu0 }
  0xdb PF: > { %s13_s12 = sadd.s32 1, %s333_s12  }
  0xdc   : > { %p10_p4 = scmp.ge.s32.totalorder %s13_s12, 4  }
  0xde   :  { %12 = sbr.rel (!%p10_p4) target bundleno = 1 (0x1), region = 62 }

// kernel: forward.12
= control target key start
LH: loop header
LB: loop body
LE: loop exit
PB: predicated region body
PF: predicated region fallthrough
CT: control target
= control target key end

     0   :  { %s688_s24 = smov 0   ;;  %s748_s0 = inlined_call_operand.vmem [shape: f32[2,7,64], index: 0, kind: input, shape index: {}]   ;;  %s749_s1 = inlined_call_operand.vmem [shape: bf16[64,32], index: 1, kind: input, shape index: {}]   ;;  %s750_s2 = inlined_call_operand.vmem [shape: f32[1,32], index: 2, kind: input, shape index: {}]   ;;  %s751_s3 = inlined_call_operand.vmem [shape: bf16[32,32], index: 3, kind: input, shape index: {}]   ;;  %s752_s4 = inlined_call_operand.vmem [shape: f32[1,32], index: 4, kind: input, shape index: {}]   ;;  %s753_s5 = inlined_call_operand.vmem [shape: bf16[32,32], index: 5, kind: input, shape index: {}]   ;;  %s754_s6 = inlined_call_operand.vmem [shape: f32[1,32], index: 6, kind: input, shape index: {}]   ;;  %s755_s7 = inlined_call_operand.vmem [shape: f32[2,7,32], index: 7, kind: output, shape index: {}]  }
   0x1 LB: > { %s554_s25 = sadd.s32 4294967295, %s644_s24   ;;  %p558_p0 = scmp.ge.s32.totalorder %s644_s24, 1  ;;  %s644_s24 = sphi %s688_s24, %s17_s24  }
   0x2   : > { %p236_p1 = scmp.lt.s32.totalorder %s644_s24, 3 }
   0x4   : > { %p237_p2 = pnand %p558_p0, %p236_p1 }
   0x5   : > { %p266_p3 = scmp.lt.s32.totalorder (!%p237_p2), %s554_s25, 1 }
   0x6   : > { %240 = sbr.rel (%p237_p2) target bundleno = 467 (0x1d3), region = 48 }
   0xb   : > { %v626_v0 = vld [vmem:[%s749_s1 + $0x18] sm:$0xff]   ;;  %v646_v1 = vmov 0.0   ;;  %v627_v2 = vld [vmem:[%s749_s1 + $0x10] sm:$0xff]   ;;  %vm647_vm0 = vmmov 0   ;;  %s757_s25 = smov (!%p266_p3, %s554_s25), 1  ;;  %v630_v3 = vld [vmem:[%s751_s3 + $0x8] sm:$0xff]  }
   0xc   : > { %588 = vmatprep.subr.bf16.mxu0 %v646_v1  ;;  %600 = vmatprep.subr.bf16.mxu1 %v646_v1  ;;  %v628_v4 = vld [vmem:[%s749_s1 + $0x8] sm:$0xff]   ;;  %s559_s11 = sshll.u32 %s757_s25, 3  ;;  %v629_v5 = vld [vmem:[%s749_s1] sm:$0xff]   ;;  %vm316_vm1 = vcmask 523264   ;;  %vm385_vm2 = vcmask 261120   ;;  %vm499_vm3 = vcmask 260096  }
   0xd   : > { %589 = vmatpush3.bf16.msra.mxu0 %v626_v0  ;;  %596 = vmatprep.mubr.msk.bf16.mxu0 %vm647_vm0, %v646_v1  ;;  %s269_s14 = scalar_lea.vmem %s748_s0, %s559_s11  ;;  %v631_v8 = vld [vmem:[%s751_s3] sm:$0xff]   ;;  %v632_v15 = vld [vmem:[%s753_s5 + $0x8] sm:$0xff]   ;;  %s273_s10 = scalar_lea.vmem %s755_s7, %s559_s11 }
   0xe   : > { %590 = vmatprep.subr.bf16.mxu0 %v646_v1  ;;  %604 = vmatprep.mubr.msk.bf16.mxu1 %vm647_vm0, %v646_v1  ;;  %v275_v6 = vld [vmem:[%s269_s14] sm:$0x7f] }
   0xf   : > { %601 = vmatpush3.bf16.msra.mxu1 %v630_v3  ;;  %v284_v7 = vpack.c.bf16 %v275_v6, %v275_v6  ;;  %v561_v9 = vld [vmem:[%s750_s2] ss:$0 sm:$0xff] }
  0x10   : > { %602 = vmatprep.subr.bf16.mxu1 %v646_v1  ;;  %v633_v18 = vld [vmem:[%s753_s5] sm:$0xff]  }
  0x11   : > { %591 = vmatpush3.bf16.msra.mxu0 %v627_v2  ;;  %v571_v23 = vld [vmem:[%s754_s6] ss:$0 sm:$0xff] }
  0x12   : > { %592 = vmatprep.subr.bf16.mxu0 %v646_v1  ;;  %v567_v33 = vld [vmem:[%s752_s4] ss:$0 sm:$0xff] }
  0x13   : > { %603 = vmatpush3.bf16.msra.mxu1 %v631_v8 }
  0x14   : > { %608 = vmatprep.subr.bf16.mxu1 %v646_v1 }
  0x15   : > { %593 = vmatpush3.bf16.msra.mxu0 %v628_v4 }
  0x16   : > { %594 = vmatprep.subr.bf16.mxu0 %v646_v1 }
  0x19   : > { %595 = vmatpush3.bf16.msra.mxu0 %v629_v5 }
  0x1c   : > { %597 = vmatmul.mubr.msk.bf16.vlgmr.msra.gmra.mxu0 %vm316_vm1, %v284_v7 }
  0xdc   : > { %v354_v10 = vpop.f32.mrf.mxu0 }
  0xdd   : > { %v355_v11 = vadd.f32 %v561_v9, %v354_v10 }
  0xde   : > { %v598_v12 = vpop.f32.mrf.mxu0 }
  0xdf   : > { %v360_v13 = vmax.f32 %v355_v11, 0.0 }
  0xe0   : > { %v357_v14 = vpop.f32.mrf.mxu0 }
  0xe1   : > { %v365_v16 = vpack.c.bf16 %v360_v13, %v360_v13 }
  0xe2   : > { %v599_v17 = vpop.f32.mrf.mxu0 }
  0xe3   : > { %605 = vmatmul.mubr.msk.bf16.vlgmr.msra.gmra.mxu1 %vm385_vm2, %v365_v16 }
  0xe4   : > { %609 = vmatpush3.bf16.msra.mxu1 %v632_v15  ;;  %612 = vmatprep.mubr.msk.bf16.mxu1 %vm647_vm0, %v646_v1 }
  0xe5   : > { %610 = vmatprep.subr.bf16.mxu1 %v646_v1 }
  0xe8   : > { %611 = vmatpush3.bf16.msra.mxu1 %v633_v18 }
  0xeb   : > { %613 = vmatmul.mubr.msk.bf16.vlgmr.msra.gmra.mxu1 %vm385_vm2, %v365_v16 }
 0x1a3   : > { %v423_v19 = vpop.f32.mrf.mxu1 }
 0x1a4   : > { %v424_v34 = vadd.f32 %v567_v33, %v423_v19 }
 0x1a5   : > { %v606_v20 = vpop.f32.mrf.mxu1 }
 0x1a7   : > { %v426_v21 = vpop.f32.mrf.mxu1 }
 0x1a9   : > { %v607_v22 = vpop.f32.mrf.mxu1 }
 0x1ab   : > { %v486_v24 = vpop.f32.mrf.mxu1 }
 0x1ac   : > { %v487_v25 = vadd.f32 %v571_v23, %v486_v24 }
 0x1ad   : > { %v614_v26 = vpop.f32.mrf.mxu1 }
 0x1ae   : > { %v492_v27 = vsub.f32 0.0, %v487_v25 }
 0x1af   : > { %v489_v28 = vpop.f32.mrf.mxu1 }
 0x1b0   : > { %v493_v29 = vmul.f32 1.442695, %v492_v27 }
 0x1b1   : > { %v615_v30 = vpop.f32.mrf.mxu1 }
 0x1b2   : > { %634 = vpow2.f32 %v493_v29 }
 0x1bf   : > { %v635_v31 = vpop.eup %634 }
 0x1c0   : > { %v495_v32 = vadd.f32 1.0, %v635_v31 }
 0x1c2   : > { %636 = vrcp.f32 %v495_v32 }
 0x1cf   : > { %v637_v35 = vpop.eup %636 }
 0x1d0   : > { %v498_v36 = vmul.f32 %v637_v35, %v424_v34 }
 0x1d2   : > { %500 = vst.msk [vmem:[%s273_s10] sm:$0x7f] %vm499_vm3, %v498_v36 }
 0x1d3 PF: > { %s17_s24 = sadd.s32 1, %s644_s24  }
 0x1d4   : > { %p14_p4 = scmp.ge.s32.totalorder %s17_s24, 4  }
 0x1d6   :  { %16 = sbr.rel (!%p14_p4) target bundleno = 1 (0x1), region = 78 }

// kernel: forward.16
= control target key start
LH: loop header
LB: loop body
LE: loop exit
PB: predicated region body
PF: predicated region fallthrough
CT: control target
= control target key end

     0   :  { %s507_s21 = smov 0   ;;  %s544_s0 = inlined_call_operand.vmem [shape: f32[2,7,16], index: 0, kind: input, shape index: {}]   ;;  %s545_s1 = inlined_call_operand.vmem [shape: f32[2,7,16], index: 1, kind: input, shape index: {}]   ;;  %s546_s2 = inlined_call_operand.vmem [shape: f32[1,16], index: 2, kind: input, shape index: {}]   ;;  %s547_s3 = inlined_call_operand.vmem [shape: f32[1,16], index: 3, kind: input, shape index: {}]   ;;  %s548_s4 = inlined_call_operand.vmem [shape: bf16[16,32], index: 4, kind: input, shape index: {}]   ;;  %s549_s5 = inlined_call_operand.vmem [shape: f32[1,32], index: 5, kind: input, shape index: {}]   ;;  %s550_s6 = inlined_call_operand.vmem [shape: f32[2,7,32], index: 6, kind: output, shape index: {}]  }
   0x1 LB: > { %s426_s22 = sadd.s32 4294967295, %s468_s21   ;;  %p430_p0 = scmp.ge.s32.totalorder %s468_s21, 1  ;;  %s468_s21 = sphi %s507_s21, %s16_s21  }
   0x2   : > { %p220_p1 = scmp.lt.s32.totalorder %s468_s21, 3 }
   0x4   : > { %p221_p2 = pnand %p430_p0, %p220_p1 }
   0x5   : > { %p252_p3 = scmp.lt.s32.totalorder (!%p221_p2), %s426_s22, 1 }
   0x6   : > { %224 = sbr.rel (%p221_p2) target bundleno = 527 (0x20f), region = 44 }
   0xb   : > { %s552_s22 = smov (!%p252_p3, %s426_s22), 1  ;;  %vm270_vm0 = vcmask 129024   ;;  %v459_v9 = vld [vmem:[%s548_s4] sm:$0xff]   ;;  %v470_v10 = vmov 0.0   ;;  %vm471_vm1 = vmmov 0   ;;  %vm315_vm2 = vcmask 130048  }
   0xc   : > { %s515_s23 = sshll.u32 %s552_s22, 3  ;;  %443 = vmatprep.subr.bf16.mxu0 %v470_v10  ;;  %445 = vmatprep.mubr.msk.bf16.mxu0 %vm471_vm1, %v470_v10  ;;  %v434_v15 = vld [vmem:[%s546_s2] ss:$0 sm:$0xff]  ;;  %vm359_vm3 = vcmask 260096  }
   0xd   : > { %s255_s26 = scalar_lea.vmem %s544_s0, %s515_s23  ;;  %s259_s29 = scalar_lea.vmem %s545_s1, %s515_s23  ;;  %444 = vmatpush3.bf16.msra.mxu0 %v459_v9  ;;  %v435_v17 = vld [vmem:[%s547_s3] ss:$0 sm:$0xff] }
   0xe   : > { %v265_v0 = vld [vmem:[%s255_s26] sm:$0x7f]  ;;  %s263_s16 = scalar_lea.vmem %s550_s6, %s515_s23 }
   0xf   : > { %v266_v1 = vld [vmem:[%s259_s29] sm:$0x7f] }
  0x10   : > { %v267_v2 = vadd.f32 %v266_v1, %v265_v0  ;;  %v436_v21 = vld [vmem:[%s549_s5] ss:$0 sm:$0xff] }
  0x12   : > { %v271_v3 = vsel %vm270_vm0, %v267_v2, 0.0 }
  0x13   : > { %272 = vadd.xlane.f32.xlu0 %v271_v3 }
  0x9c   : > { %v273_v4 = vpop.xlane.xlu0 %272 }
  0x9d   : > { %v275_v5 = vmul.f32 0.0625, %v273_v4 }
  0x9f   : > { %v276_v6 = vsub.f32 %v267_v2, %v275_v5 }
  0xa1   : > { %v277_v7 = vmul.f32 %v276_v6, %v276_v6 }
  0xa3   : > { %v278_v8 = vsel %vm270_vm0, %v277_v7, 0.0 }
  0xa4   : > { %279 = vadd.xlane.f32.xlu0 %v278_v8 }
 0x12d   : > { %v280_v11 = vpop.xlane.xlu0 %279 }
 0x12e   : > { %v281_v12 = vmul.f32 0.0625, %v280_v11 }
 0x130   : > { %v282_v13 = vadd.f32 1e-05, %v281_v12 }
 0x132   : > { %460 = vrsqrt.f32 %v282_v13 }
 0x13f   : > { %v461_v14 = vpop.eup %460 }
 0x140   : > { %v284_v16 = vmul.f32 %v461_v14, %v276_v6 }
 0x142   : > { %v291_v18 = vmul.f32 %v434_v15, %v284_v16 }
 0x144   : > { %v298_v19 = vadd.f32 %v435_v17, %v291_v18 }
 0x146   : > { %v301_v20 = vpack.c.bf16 %v298_v19, %v298_v19 }
 0x148   : > { %446 = vmatmul.mubr.msk.bf16.vlgmr.msra.gmra.mxu0 %vm315_vm2, %v301_v20 }
 0x208   : > { %v353_v22 = vpop.f32.mrf.mxu0 }
 0x209   : > { %v354_v23 = vadd.f32 %v436_v21, %v353_v22 }
 0x20a   : > { %v447_v24 = vpop.f32.mrf.mxu0 }
 0x20b   : > { %360 = vst.msk [vmem:[%s263_s16] sm:$0x7f] %vm359_vm3, %v354_v23 }
 0x20c   : > { %v356_v25 = vpop.f32.mrf.mxu0 }
 0x20e   : > { %v448_v26 = vpop.f32.mrf.mxu0 }
 0x20f PF: > { %s16_s21 = sadd.s32 1, %s468_s21  }
 0x210   : > { %p13_p4 = scmp.ge.s32.totalorder %s16_s21, 4  }
 0x212   :  { %15 = sbr.rel (!%p13_p4) target bundleno = 1 (0x1), region = 77 }

// kernel: forward.17
= control target key start
LH: loop header
LB: loop body
LE: loop exit
PB: predicated region body
PF: predicated region fallthrough
CT: control target
= control target key end

     0   :  { %s1042_s30 = smov 0   ;;  %s1146_s0 = inlined_call_operand.vmem [shape: f32[2,7,32], index: 0, kind: input, shape index: {}]   ;;  %s1147_s1 = inlined_call_operand.vmem [shape: f32[2,7,32], index: 1, kind: input, shape index: {}]   ;;  %s1148_s2 = inlined_call_operand.vmem [shape: bf16[32,32], index: 2, kind: input, shape index: {}]   ;;  %s1149_s3 = inlined_call_operand.vmem [shape: f32[1,32], index: 3, kind: input, shape index: {}]   ;;  %s1150_s4 = inlined_call_operand.vmem [shape: bf16[32,32], index: 4, kind: input, shape index: {}]   ;;  %s1151_s5 = inlined_call_operand.vmem [shape: f32[1,32], index: 5, kind: input, shape index: {}]   ;;  %s1152_s6 = inlined_call_operand.vmem [shape: bf16[4,32,16], index: 6, kind: input, shape index: {}]   ;;  %s1153_s7 = inlined_call_operand.vmem [shape: f32[1,16], index: 7, kind: input, shape index: {}]   ;;  %s1154_s8 = inlined_call_operand.vmem [shape: f32[2,8,16], index: 8, kind: output, shape index: {0}]   ;;  %s1155_s9 = inlined_call_operand.vmem [shape: f32[2,8,16], index: 9, kind: output, shape index: {1}]  }
   0x1 LB: > { %s857_s10 = sadd.s32 4294967295, %s988_s30   ;;  %p861_p0 = scmp.ge.s32.totalorder %s988_s30, 1  ;;  %s988_s30 = sphi %s1042_s30, %s20_s30  }
   0x2   : > { %p298_p1 = scmp.lt.s32.totalorder %s988_s30, 3 }
   0x4   : > { %p299_p2 = pnand %p861_p0, %p298_p1 }
   0x5   : > { %p340_p3 = scmp.lt.s32.totalorder (!%p299_p2), %s857_s10, 1 }
   0x6   : > { %302 = sbr.rel (%p299_p2) target bundleno = 464 (0x1d0), region = 52 }
   0xb   : > { %v966_v0 = vld [vmem:[%s1150_s4 + $0x8] sm:$0xff]   ;;  %v990_v1 = vmov 0.0   ;;  %v967_v2 = vld [vmem:[%s1150_s4] sm:$0xff]   ;;  %vm991_vm0 = vmmov 0   ;;  %s1157_s10 = smov (!%p340_p3, %s857_s10), 1  ;;  %vm400_vm1 = vcmask 261120  }
   0xc   : > { %916 = vmatprep.subr.bf16.mxu1 %v990_v1  ;;  %908 = vmatprep.subr.bf16.mxu0 %v990_v1  ;;  %v968_v3 = vld [vmem:[%s1148_s2 + $0x8] sm:$0xff]   ;;  %v969_v4 = vld [vmem:[%s1148_s2] sm:$0xff]   ;;  %s1069_s19 = sshll.u32 %s1157_s10, 3  ;;  %v971_v10 = vld [vmem:[%s1152_s6 + $0x18] sm:$0xff]   ;;  %vm726_vm2 = vcmask 1046528   ;;  %vm731_vm3 = vcmask 1040384  }
   0xd   : > { %917 = vmatpush3.bf16.msra.mxu1 %v966_v0  ;;  %920 = vmatprep.mubr.msk.bf16.mxu1 %vm991_vm0, %v990_v1  ;;  %s343_s22 = scalar_lea.vmem %s1146_s0, %s1069_s19  ;;  %s347_s25 = scalar_lea.vmem %s1147_s1, %s1069_s19  ;;  %v970_v9 = vld [vmem:[%s1152_s6 + $0x8] sm:$0xff]   ;;  %v972_v11 = vld [vmem:[%s1152_s6] sm:$0xff]   ;;  %v973_v12 = vld [vmem:[%s1152_s6 + $0x10] sm:$0xff]   ;;  %vm743_vm4 = vcmask 130048  }
   0xe   : > { %918 = vmatprep.subr.bf16.mxu1 %v990_v1  ;;  %912 = vmatprep.mubr.msk.bf16.mxu0 %vm991_vm0, %v990_v1  ;;  %v373_v5 = vld [vmem:[%s343_s22] sm:$0x7f]  ;;  %v974_v31 = vld [vmem:[%s1152_s6 + $0x28] sm:$0xff]   ;;  %v975_v32 = vld [vmem:[%s1152_s6 + $0x38] sm:$0xff]   ;;  %s351_s11 = scalar_lea.vmem %s1154_s8, %s1069_s19  ;;  %s355_s14 = scalar_lea.vmem %s1155_s9, %s1069_s19 }
   0xf   : > { %909 = vmatpush3.bf16.msra.mxu0 %v968_v3  ;;  %v374_v6 = vld [vmem:[%s347_s25] sm:$0x7f]  ;;  %v977_v35 = vld [vmem:[%s1152_s6 + $0x30] sm:$0xff]  }
  0x10   : > { %910 = vmatprep.subr.bf16.mxu0 %v990_v1  ;;  %v375_v7 = vadd.f32 %v374_v6, %v373_v5  ;;  %v870_v13 = vld [vmem:[%s1151_s5] ss:$0 sm:$0xff] }
  0x11   : > { %919 = vmatpush3.bf16.msra.mxu1 %v967_v2  ;;  %v866_v27 = vld [vmem:[%s1149_s3] ss:$0 sm:$0xff] }
  0x12   : > { %932 = vmatprep.subr.bf16.mxu1 %v990_v1  ;;  %v380_v8 = vpack.c.bf16 %v375_v7, %v375_v7  ;;  %v976_v34 = vld [vmem:[%s1152_s6 + $0x20] sm:$0xff]  }
  0x13   : > { %911 = vmatpush3.bf16.msra.mxu0 %v969_v4  ;;  %v886_v53 = vld [vmem:[%s1153_s7] ss:$0 sm:$0xff] }
  0x14   : > { %924 = vmatprep.subr.bf16.mxu0 %v990_v1  ;;  %921 = vmatmul.mubr.msk.bf16.vlgmr.msra.gmra.mxu1 %vm400_vm1, %v380_v8 }
  0x15   : > { %936 = vmatprep.mubr.msk.bf16.mxu1 %vm991_vm0, %v990_v1  ;;  %933 = vmatpush3.bf16.msra.mxu1 %v971_v10 }
  0x16   : > { %913 = vmatmul.mubr.msk.bf16.vlgmr.msra.gmra.mxu0 %vm400_vm1, %v380_v8  ;;  %934 = vmatprep.subr.bf16.mxu1 %v990_v1 }
  0x17   : > { %928 = vmatprep.mubr.msk.bf16.mxu0 %vm991_vm0, %v990_v1  ;;  %925 = vmatpush3.bf16.msra.mxu0 %v970_v9 }
  0x18   : > { %926 = vmatprep.subr.bf16.mxu0 %v990_v1 }
  0x19   : > { %935 = vmatpush3.bf16.msra.mxu1 %v973_v12 }
  0x1a   : > { %948 = vmatprep.subr.bf16.mxu1 %v990_v1 }
  0x1b   : > { %927 = vmatpush3.bf16.msra.mxu0 %v972_v11 }
  0x1c   : > { %940 = vmatprep.subr.bf16.mxu0 %v990_v1 }
  0xd4   : > { %v501_v14 = vpop.f32.mrf.mxu1 }
  0xd5   : > { %v502_v16 = vadd.f32 %v870_v13, %v501_v14 }
  0xd6   : > { %v438_v15 = vpop.f32.mrf.mxu0  ;;  %v922_v17 = vpop.f32.mrf.mxu1 }
  0xd7   : > { %v507_v19 = vsub.f32 0.0, %v502_v16  ;;  %v439_v28 = vadd.f32 %v866_v27, %v438_v15 }
  0xd8   : > { %v914_v18 = vpop.f32.mrf.mxu0  ;;  %v504_v20 = vpop.f32.mrf.mxu1 }
  0xd9   : > { %v508_v22 = vmul.f32 1.442695, %v507_v19 }
  0xda   : > { %v441_v21 = vpop.f32.mrf.mxu0  ;;  %v923_v23 = vpop.f32.mrf.mxu1 }
  0xdb   : > { %978 = vpow2.f32 %v508_v22 }
  0xdc   : > { %v915_v24 = vpop.f32.mrf.mxu0 }
  0xe8   : > { %v979_v25 = vpop.eup %978 }
  0xe9   : > { %v510_v26 = vadd.f32 1.0, %v979_v25 }
  0xeb   : > { %980 = vrcp.f32 %v510_v26 }
  0xf8   : > { %v981_v29 = vpop.eup %980 }
  0xf9   : > { %v513_v30 = vmul.f32 %v981_v29, %v439_v28 }
  0xfb   : > { %v514_v33 = vpack.c.bf16 %v513_v30, %v513_v30 }
  0xfd   : > { %929 = vmatmul.mubr.msk.bf16.vlgmr.msra.gmra.mxu0 %vm400_vm1, %v514_v33  ;;  %937 = vmatmul.mubr.msk.bf16.vlgmr.msra.gmra.mxu1 %vm400_vm1, %v514_v33 }
  0xfe   : > { %941 = vmatpush3.bf16.msra.mxu0 %v974_v31  ;;  %949 = vmatpush3.bf16.msra.mxu1 %v975_v32 }
  0xff   : > { %942 = vmatprep.subr.bf16.mxu0 %v990_v1  ;;  %950 = vmatprep.subr.bf16.mxu1 %v990_v1 }
 0x100   : > { %944 = vmatprep.mubr.msk.bf16.mxu0 %vm991_vm0, %v990_v1  ;;  %952 = vmatprep.mubr.msk.bf16.mxu1 %vm991_vm0, %v990_v1 }
 0x102   : > { %943 = vmatpush3.bf16.msra.mxu0 %v976_v34  ;;  %951 = vmatpush3.bf16.msra.mxu1 %v977_v35 }
 0x105   : > { %945 = vmatmul.mubr.msk.bf16.vlgmr.msra.gmra.mxu0 %vm400_vm1, %v514_v33  ;;  %953 = vmatmul.mubr.msk.bf16.vlgmr.msra.gmra.mxu1 %vm400_vm1, %v514_v33 }
 0x1bd   : > { %v564_v36 = vpop.f32.mrf.mxu0  ;;  %v616_v37 = vpop.f32.mrf.mxu1 }
 0x1be   : > { %v727_v50 = vsel %vm726_vm2, %v564_v36, 0.0  ;;  %v745_v51 = vsel %vm726_vm2, %v616_v37, 0.0 }
 0x1bf   : > { %v930_v38 = vpop.f32.mrf.mxu0  ;;  %v938_v39 = vpop.f32.mrf.mxu1 }
 0x1c1   : > { %v567_v40 = vpop.f32.mrf.mxu0  ;;  %v619_v41 = vpop.f32.mrf.mxu1 }
 0x1c3   : > { %v931_v42 = vpop.f32.mrf.mxu0  ;;  %v939_v43 = vpop.f32.mrf.mxu1 }
 0x1c5   : > { %v668_v44 = vpop.f32.mrf.mxu0  ;;  %v720_v45 = vpop.f32.mrf.mxu1 }
 0x1c6   : > { %v729_v46 = vrot.slane %v668_v44, 7  ;;  %v747_v47 = vrot.slane %v720_v45, 7 }
 0x1c7   : > { %v946_v48 = vpop.f32.mrf.mxu0  ;;  %v954_v49 = vpop.f32.mrf.mxu1 }
 0x1c8   : > { %v732_v52 = vsel %vm731_vm3, 0.0, %v729_v46  ;;  %v749_v54 = vsel %vm731_vm3, 0.0, %v747_v47 }
 0x1c9   : > { %v733_v55 = vadd.f32 %v732_v52, %v727_v50  ;;  %v750_v56 = vadd.f32 %v749_v54, %v745_v51  ;;  %v671_v57 = vpop.f32.mrf.mxu0  ;;  %v723_v58 = vpop.f32.mrf.mxu1 }
 0x1cb   : > { %v741_v59 = vadd.f32 %v886_v53, %v733_v55  ;;  %v758_v60 = vadd.f32 %v886_v53, %v750_v56  ;;  %v947_v61 = vpop.f32.mrf.mxu0  ;;  %v955_v62 = vpop.f32.mrf.mxu1 }
 0x1cd   : > { %v742_v63 = vmax.f32 %v741_v59, 0.0  ;;  %v759_v0 = vmax.f32 %v758_v60, 0.0 }
 0x1cf   : > { %744 = vst.msk [vmem:[%s351_s11] sm:$0xff] %vm743_vm4, %v742_v63  ;;  %760 = vst.msk [vmem:[%s355_s14] sm:$0xff] %vm743_vm4, %v759_v0 }
 0x1d0 PF: > { %s20_s30 = sadd.s32 1, %s988_s30  }
 0x1d1   : > { %p17_p4 = scmp.ge.s32.totalorder %s20_s30, 4  }
 0x1d3   :  { %19 = sbr.rel (!%p17_p4) target bundleno = 1 (0x1), region = 97 }

// kernel: forward.18
= control target key start
LH: loop header
LB: loop body
LE: loop exit
PB: predicated region body
PF: predicated region fallthrough
CT: control target
= control target key end

     0   :  { %s1027_s30 = smov 0   ;;  %s1115_s0 = inlined_call_operand.vmem [shape: f32[2,16,16], index: 0, kind: input, shape index: {}]   ;;  %s1116_s1 = inlined_call_operand.vmem [shape: f32[2,16,16], index: 1, kind: input, shape index: {}]   ;;  %s1117_s2 = inlined_call_operand.vmem [shape: bf16[16,16], index: 2, kind: input, shape index: {}]   ;;  %s1118_s3 = inlined_call_operand.vmem [shape: f32[1,16], index: 3, kind: input, shape index: {}]   ;;  %s1119_s4 = inlined_call_operand.vmem [shape: bf16[16,16], index: 4, kind: input, shape index: {}]   ;;  %s1120_s5 = inlined_call_operand.vmem [shape: f32[1,16], index: 5, kind: input, shape index: {}]   ;;  %s1121_s6 = inlined_call_operand.vmem [shape: bf16[4,16,8], index: 6, kind: input, shape index: {}]   ;;  %s1122_s7 = inlined_call_operand.vmem [shape: f32[1,8], index: 7, kind: input, shape index: {}]   ;;  %s1123_s8 = inlined_call_operand.vmem [shape: f32[2,17,8], index: 8, kind: output, shape index: {0}]   ;;  %s1124_s9 = inlined_call_operand.vmem [shape: f32[2,17,8], index: 9, kind: output, shape index: {1}]  }
   0x1 LB: > { %s863_s10 = sadd.s32 4294967295, %s973_s30   ;;  %p867_p0 = scmp.ge.s32.totalorder %s973_s30, 1  ;;  %s973_s30 = sphi %s1027_s30, %s20_s30  }
   0x2   : > { %p300_p1 = scmp.lt.s32.totalorder %s973_s30, 3 }
   0x4   : > { %p301_p2 = pnand %p867_p0, %p300_p1 }
   0x5   : > { %p346_p3 = scmp.lt.s32.totalorder (!%p301_p2), %s863_s10, 1 }
   0x6   : > { %304 = sbr.rel (%p301_p2) target bundleno = 472 (0x1d8), region = 52 }
   0xb   : > { %v953_v0 = vld [vmem:[%s1119_s4] sm:$0xff]   ;;  %v975_v1 = vmov 0.0   ;;  %vm976_vm0 = vmmov 0   ;;  %s1126_s10 = smov (!%p346_p3, %s863_s10), 1  ;;  %vm397_vm1 = vcmask 130048   ;;  %v956_v11 = vld [vmem:[%s1121_s6 + $0x8] sm:$0xff]  }
   0xc   : > { %912 = vmatprep.subr.bf16.mxu1 %v975_v1  ;;  %906 = vmatprep.subr.bf16.mxu0 %v975_v1  ;;  %v954_v2 = vld [vmem:[%s1117_s2] sm:$0xff]   ;;  %s892_s15 = sshll.u32 %s1126_s10, 4  ;;  %v957_v38 = vld [vmem:[%s1121_s6 + $0x10] sm:$0xff]   ;;  %v958_v39 = vld [vmem:[%s1121_s6 + $0x18] sm:$0xff]   ;;  %vm706_vm2 = vcmask 1040384   ;;  %vm730_vm3 = vcmask 64512  }
   0xd   : > { %913 = vmatpush3.bf16.msra.mxu1 %v953_v0  ;;  %914 = vmatprep.mubr.msk.bf16.mxu1 %vm976_vm0, %v975_v1  ;;  %s350_s18 = scalar_lea.vmem %s1115_s0, %s892_s15  ;;  %s355_s21 = scalar_lea.vmem %s1116_s1, %s892_s15  ;;  %v955_v10 = vld [vmem:[%s1121_s6] sm:$0xff]   ;;  %vm733_vm4 = vcmask 57344  }
   0xe   : > { %907 = vmatpush3.bf16.msra.mxu0 %v954_v2  ;;  %908 = vmatprep.mubr.msk.bf16.mxu0 %vm976_vm0, %v975_v1  ;;  %v375_v3 = vld [vmem:[%s350_s18] sm:$0xff]  ;;  %v376_v4 = vld [vmem:[%s350_s18 + $0x8] sm:$0xff]  ;;  %s942_s15 = smul.u32 24, %s1126_s10 }
   0xf   : > { %918 = vmatprep.subr.bf16.mxu0 %v975_v1  ;;  %924 = vmatprep.subr.bf16.mxu1 %v975_v1  ;;  %v377_v5 = vld [vmem:[%s355_s21] sm:$0xff]  ;;  %v378_v6 = vld [vmem:[%s355_s21 + $0x8] sm:$0xff] }
  0x10   : > { %v379_v7 = vadd.f32 %v377_v5, %v375_v3  ;;  %v380_v8 = vadd.f32 %v378_v6, %v376_v4  ;;  %v877_v12 = vld [vmem:[%s1120_s5] ss:$0 sm:$0xff]  ;;  %s360_s10 = scalar_lea.vmem %s1123_s8, %s942_s15  ;;  %s365_s22 = scalar_lea.vmem %s1124_s9, %s942_s15 }
  0x11   : > { %v874_v31 = vld [vmem:[%s1118_s3] ss:$0 sm:$0xff] }
  0x12   : > { %v383_v9 = vpack.c.bf16 %v380_v8, %v379_v7  ;;  %v888_v57 = vld [vmem:[%s1122_s7] ss:$0 sm:$0xff] }
  0x14   : > { %915 = vmatmul.mubr.msk.bf16.vlgmr.msra.gmra.mxu1 %vm397_vm1, %v383_v9  ;;  %909 = vmatmul.mubr.msk.bf16.vlgmr.msra.gmra.mxu0 %vm397_vm1, %v383_v9 }
  0x15   : > { %920 = vmatprep.mubr.msk.bf16.mxu0 %vm976_vm0, %v975_v1  ;;  %926 = vmatprep.mubr.msk.bf16.mxu1 %vm976_vm0, %v975_v1 }
  0x16   : > { %919 = vmatpush3.bf16.msra.mxu0 %v955_v10  ;;  %925 = vmatpush3.bf16.msra.mxu1 %v956_v11 }
  0x17   : > { %930 = vmatprep.subr.bf16.mxu0 %v975_v1  ;;  %936 = vmatprep.subr.bf16.mxu1 %v975_v1 }
  0xd4   : > { %v491_v13 = vpop.f32.mrf.mxu1  ;;  %v435_v14 = vpop.f32.mrf.mxu0 }
  0xd5   : > { %v492_v15 = vadd.f32 %v877_v12, %v491_v13  ;;  %v436_v32 = vadd.f32 %v874_v31, %v435_v14 }
  0xd6   : > { %v916_v16 = vpop.f32.mrf.mxu1  ;;  %v910_v17 = vpop.f32.mrf.mxu0 }
  0xd7   : > { %v498_v18 = vsub.f32 0.0, %v492_v15 }
  0xd8   : > { %v494_v19 = vpop.f32.mrf.mxu1  ;;  %v438_v20 = vpop.f32.mrf.mxu0 }
  0xd9   : > { %v500_v21 = vmul.f32 1.442695, %v498_v18  ;;  %v495_v22 = vadd.f32 %v877_v12, %v494_v19  ;;  %v439_v34 = vadd.f32 %v874_v31, %v438_v20 }
  0xda   : > { %v917_v23 = vpop.f32.mrf.mxu1  ;;  %v911_v24 = vpop.f32.mrf.mxu0 }
  0xdb   : > { %959 = vpow2.f32 %v500_v21  ;;  %v499_v25 = vsub.f32 0.0, %v495_v22 }
  0xdd   : > { %v502_v26 = vmul.f32 1.442695, %v499_v25 }
  0xdf   : > { %961 = vpow2.f32 %v502_v26 }
  0xe8   : > { %v960_v27 = vpop.eup %959 }
  0xe9   : > { %v504_v28 = vadd.f32 1.0, %v960_v27 }
  0xeb   : > { %963 = vrcp.f32 %v504_v28 }
  0xec   : > { %v962_v29 = vpop.eup %961 }
  0xed   : > { %v505_v30 = vadd.f32 1.0, %v962_v29 }
  0xef   : > { %965 = vrcp.f32 %v505_v30 }
  0xf8   : > { %v964_v33 = vpop.eup %963 }
  0xf9   : > { %v510_v36 = vmul.f32 %v964_v33, %v436_v32 }
  0xfc   : > { %v966_v35 = vpop.eup %965 }
  0xfd   : > { %v511_v37 = vmul.f32 %v966_v35, %v439_v34 }
  0xff   : > { %v512_v40 = vpack.c.bf16 %v511_v37, %v510_v36 }
 0x101   : > { %921 = vmatmul.mubr.msk.bf16.vlgmr.msra.gmra.mxu0 %vm397_vm1, %v512_v40  ;;  %927 = vmatmul.mubr.msk.bf16.vlgmr.msra.gmra.mxu1 %vm397_vm1, %v512_v40 }
 0x102   : > { %931 = vmatpush3.bf16.msra.mxu0 %v957_v38  ;;  %937 = vmatpush3.bf16.msra.mxu1 %v958_v39 }
 0x103   : > { %932 = vmatprep.mubr.msk.bf16.mxu0 %vm976_vm0, %v975_v1  ;;  %938 = vmatprep.mubr.msk.bf16.mxu1 %vm976_vm0, %v975_v1 }
 0x109   : > { %933 = vmatmul.mubr.msk.bf16.vlgmr.msra.gmra.mxu0 %vm397_vm1, %v512_v40  ;;  %939 = vmatmul.mubr.msk.bf16.vlgmr.msra.gmra.mxu1 %vm397_vm1, %v512_v40 }
 0x1c1   : > { %v556_v41 = vpop.f32.mrf.mxu0  ;;  %v603_v42 = vpop.f32.mrf.mxu1 }
 0x1c3   : > { %v922_v43 = vpop.f32.mrf.mxu0  ;;  %v928_v44 = vpop.f32.mrf.mxu1 }
 0x1c5   : > { %v559_v45 = vpop.f32.mrf.mxu0  ;;  %v606_v46 = vpop.f32.mrf.mxu1 }
 0x1c7   : > { %v923_v47 = vpop.f32.mrf.mxu0  ;;  %v929_v48 = vpop.f32.mrf.mxu1 }
 0x1c9   : > { %v650_v49 = vpop.f32.mrf.mxu0  ;;  %v697_v50 = vpop.f32.mrf.mxu1 }
 0x1ca   : > { %v707_v51 = vrot.slane %v650_v49, 7  ;;  %v737_v52 = vrot.slane %v697_v50, 7 }
 0x1cb   : > { %v934_v53 = vpop.f32.mrf.mxu0  ;;  %v940_v54 = vpop.f32.mrf.mxu1 }
 0x1cc   : > { %v713_v55 = vsel %vm706_vm2, 0.0, %v707_v51  ;;  %v743_v56 = vsel %vm706_vm2, 0.0, %v737_v52 }
 0x1cd   : > { %v714_v58 = vadd.f32 %v713_v55, %v556_v41  ;;  %v744_v59 = vadd.f32 %v743_v56, %v603_v42  ;;  %v653_v60 = vpop.f32.mrf.mxu0  ;;  %v700_v61 = vpop.f32.mrf.mxu1 }
 0x1ce   : > { %v708_v62 = vrot.slane %v653_v60, 7  ;;  %v738_v63 = vrot.slane %v700_v61, 7 }
 0x1cf   : > { %v724_v0 = vadd.f32 %v888_v57, %v714_v58  ;;  %v754_v1 = vadd.f32 %v888_v57, %v744_v59  ;;  %v935_v2 = vpop.f32.mrf.mxu0  ;;  %v941_v3 = vpop.f32.mrf.mxu1 }
 0x1d0   : > { %v709_v4 = vsel %vm706_vm2, %v707_v51, %v708_v62  ;;  %v726_v5 = vadd.f32 %v888_v57, %v708_v62  ;;  %v739_v6 = vsel %vm706_vm2, %v737_v52, %v738_v63  ;;  %v756_v7 = vadd.f32 %v888_v57, %v738_v63 }
 0x1d1   : > { %v715_v8 = vadd.f32 %v709_v4, %v559_v45  ;;  %v727_v9 = vmax.f32 %v724_v0, 0.0  ;;  %v745_v10 = vadd.f32 %v739_v6, %v606_v46  ;;  %v757_v11 = vmax.f32 %v754_v1, 0.0 }
 0x1d2   : > { %v729_v12 = vmax.f32 %v726_v5, 0.0  ;;  %v759_v13 = vmax.f32 %v756_v7, 0.0 }
 0x1d3   : > { %v725_v14 = vadd.f32 %v888_v57, %v715_v8  ;;  %731 = vst.msk [vmem:[%s360_s10] sm:$0xff] %vm730_vm3, %v727_v9  ;;  %v755_v15 = vadd.f32 %v888_v57, %v745_v10  ;;  %760 = vst.msk [vmem:[%s365_s22] sm:$0xff] %vm730_vm3, %v757_v11 }
 0x1d4   : > { %734 = vst.msk [vmem:[%s360_s10 + $0x10] sm:$0x1] %vm733_vm4, %v729_v12  ;;  %762 = vst.msk [vmem:[%s365_s22 + $0x10] sm:$0x1] %vm733_vm4, %v759_v13 }
 0x1d5   : > { %v728_v16 = vmax.f32 %v725_v14, 0.0  ;;  %v758_v17 = vmax.f32 %v755_v15, 0.0 }
 0x1d7   : > { %732 = vst.msk [vmem:[%s360_s10 + $0x8] sm:$0xff] %vm730_vm3, %v728_v16  ;;  %761 = vst.msk [vmem:[%s365_s22 + $0x8] sm:$0xff] %vm730_vm3, %v758_v17 }
 0x1d8 PF: > { %s20_s30 = sadd.s32 1, %s973_s30  }
 0x1d9   : > { %p17_p4 = scmp.ge.s32.totalorder %s20_s30, 4  }
 0x1db   :  { %19 = sbr.rel (!%p17_p4) target bundleno = 1 (0x1), region = 97 }

// kernel: forward.14
= control target key start
LH: loop header
LB: loop body
LE: loop exit
PB: predicated region body
PF: predicated region fallthrough
CT: control target
= control target key end

     0   :  { %s1616_s21 = smov 0   ;;  %s1882_s0 = inlined_call_operand.vmem [shape: f32[2,7,16], index: 0, kind: input, shape index: {}]   ;;  %s1883_s1 = inlined_call_operand.vmem [shape: f32[2,7,16], index: 1, kind: input, shape index: {}]   ;;  %s1884_s2 = inlined_call_operand.vmem [shape: f32[1,16], index: 2, kind: input, shape index: {}]   ;;  %s1885_s3 = inlined_call_operand.vmem [shape: f32[1,16], index: 3, kind: input, shape index: {}]   ;;  %s1886_s4 = inlined_call_operand.vmem [shape: bf16[16,32], index: 4, kind: input, shape index: {}]   ;;  %s1887_s5 = inlined_call_operand.vmem [shape: bf16[16,32], index: 5, kind: input, shape index: {}]   ;;  %s1888_s6 = inlined_call_operand.vmem [shape: f32[4,32], index: 6, kind: input, shape index: {}]   ;;  %s1889_s7 = inlined_call_operand.vmem [shape: f32[1,32], index: 7, kind: input, shape index: {}]   ;;  %s1890_s8 = inlined_call_operand.vmem [shape: bf16[32,32], index: 8, kind: input, shape index: {}]   ;;  %s1891_s9 = inlined_call_operand.vmem [shape: bf16[32,4], index: 9, kind: input, shape index: {}]   ;;  %s1892_s10 = inlined_call_operand.vmem [shape: bf16[32,4], index: 10, kind: input, shape index: {}]   ;;  %s1893_s11 = inlined_call_operand.vmem [shape: f32[1,32], index: 11, kind: input, shape index: {}]   ;;  %s1894_s12 = inlined_call_operand.vmem [shape: f32[4,32], index: 12, kind: input, shape index: {}]   ;;  %s1895_s13 = inlined_call_operand.vmem [shape: f32[1,32], index: 13, kind: input, shape index: {}]   ;;  %s1896_s14 = inlined_call_operand.vmem [shape: bf16[32,16], index: 14, kind: input, shape index: {}]   ;;  %s1897_s15 = inlined_call_operand.vmem [shape: f32[2,7,16], index: 15, kind: output, shape index: {0}]   ;;  %s1898_s16 = inlined_call_operand.vmem [shape: f32[2,7,16], index: 16, kind: output, shape index: {1}]  }
   0x1   :  { %1899 = sst [smem:[#allocation2_spill]] %s1882_s0 }
   0x2 LB: > { %s1370_s22 = sadd.s32 4294967295, %s1523_s21   ;;  %p1374_p0 = scmp.ge.s32.totalorder %s1523_s21, 1  ;;  %s1523_s21 = sphi %s1616_s21, %s27_s21  }
   0x3   : > { %p473_p1 = scmp.lt.s32.totalorder %s1523_s21, 3 }
   0x5   : > { %p474_p2 = pnand %p1374_p0, %p473_p1 }
   0x6   : > { %p529_p3 = scmp.lt.s32.totalorder (!%p474_p2), %s1370_s22, 1  ;;  %s1900_s26 = sld [smem:[#allocation2_spill]] (!%p474_p2) }
   0x7   : > { %477 = sbr.rel (%p474_p2) target bundleno = 1153 (0x481), region = 80 }
   0xc   : > { %s1902_s22 = smov (!%p529_p3, %s1370_s22), 1  ;;  %vm549_vm0 = vcmask 129024   ;;  %v1485_v9 = vld [vmem:[%s1886_s4] sm:$0xff]   ;;  %v1525_v11 = vmov 0.0   ;;  %vm1526_vm1 = vmmov 0   ;;  %vm590_vm2 = vcmask 130048  }
   0xd   : > { %s1624_s23 = sshll.u32 %s1902_s22, 3  ;;  %v1486_v10 = vld [vmem:[%s1887_s5] sm:$0xff]   ;;  %1418 = vmatprep.subr.bf16.mxu0 %v1525_v11  ;;  %1424 = vmatprep.subr.bf16.mxu1 %v1525_v11  ;;  %v1487_v22 = vld [vmem:[%s1891_s9 + $0x8] sm:$0xff]   ;;  %v1527_v26 = vmov 2   ;;  %v1528_v27 = vmov 0   ;;  %v696_v28 = vlaneseq  ;;  %vm686_vm3 = vcmask 1042432  }
   0xe   : > { %s532_s27 = scalar_lea.vmem %s1900_s26, %s1624_s23  ;;  %s536_s30 = scalar_lea.vmem %s1883_s1, %s1624_s23  ;;  %1419 = vmatpush3.bf16.msra.mxu0 %v1485_v9  ;;  %1425 = vmatpush3.bf16.msra.mxu1 %v1486_v10  ;;  %v1379_v16 = vld [vmem:[%s1884_s2] ss:$0 sm:$0xff]  ;;  %v1488_v23 = vld [vmem:[%s1890_s8 + $0x8] sm:$0xff]   ;;  %vm719_vm4 = vcmask 1045504   ;;  %vm733_vm5 = vcmask 1044480   ;;  %vm770_vm6 = vcmask 261120  }
   0xf   : > { %s544_s18 = scalar_lea.vmem %s1898_s16, %s1624_s23  ;;  %v546_v0 = vld [vmem:[%s532_s27] sm:$0x7f]  ;;  %1420 = vmatprep.mubr.msk.bf16.mxu0 %vm1526_vm1, %v1525_v11  ;;  %1426 = vmatprep.mubr.msk.bf16.mxu1 %vm1526_vm1, %v1525_v11  ;;  %v1683_v29 = vshrl.u32 %v696_v28, 7  ;;  %v1491_v9 = vld [vmem:[%s1892_s10 + $0x8] sm:$0xff]   ;;  %vm1187_vm7 = vcmask 1040384   ;;  %vm1189_vm8 = vcmask 1041408   ;;  %s540_s0 = scalar_lea.vmem %s1897_s15, %s1624_s23 }
  0x10   : > { %v547_v1 = vld [vmem:[%s536_s30] sm:$0x7f]  ;;  %1438 = vmatprep.subr.bf16.mxu1 %v1525_v11  ;;  %1430 = vmatprep.subr.bf16.mxu0 %v1525_v11  ;;  %vm1192_vm9 = vcmask 1043456  }
  0x11   : > { %v548_v2 = vadd.f32 %v547_v1, %v546_v0  ;;  %v1380_v18 = vld [vmem:[%s1885_s3] ss:$0 sm:$0xff]  ;;  %1478 = vset.pattern.permute.xlu0 %v1527_v26  ;;  %1476 = vset.pattern.permute.xlu1 %v1528_v27  ;;  %v713_v30 = vsub.s32 2, %v1683_v29  ;;  %v727_v31 = vsub.s32 3, %v1683_v29  ;;  %v698_v33 = vsub.s32 0, %v1683_v29 }
  0x12   : > { %v1489_v24 = vld [vmem:[%s1891_s9] sm:$0xff]   ;;  %v704_v34 = vsub.s32 1, %v1683_v29 }
  0x13   : > { %v553_v3 = vsel %vm549_vm0, %v548_v2, 0.0  ;;  %550 = vst.msk [vmem:[%s544_s18] sm:$0x7f] %vm549_vm0, %v548_v2  ;;  %v1490_v25 = vld [vmem:[%s1890_s8] sm:$0xff]  }
  0x14   : > { %554 = vadd.xlane.f32.xlu0 %v553_v3  ;;  %v682_v32 = vld [vmem:[%s1888_s6] sm:$0xf] }
  0x15   : > { %v714_v35 = vrot.slane %v682_v32, %v713_v30  ;;  %v728_v36 = vrot.slane %v682_v32, %v727_v31  ;;  %v699_v38 = vrot.slane %v682_v32, %v698_v33  ;;  %v705_v39 = vrot.slane %v682_v32, %v704_v34  ;;  %v1385_v45 = vld [vmem:[%s1889_s7] ss:$0 sm:$0xff] }
  0x9d   : > { %v555_v4 = vpop.xlane.xlu0 %554 }
  0x9e   : > { %v557_v5 = vmul.f32 0.0625, %v555_v4 }
  0xa0   : > { %v558_v6 = vsub.f32 %v548_v2, %v557_v5 }
  0xa2   : > { %v559_v7 = vmul.f32 %v558_v6, %v558_v6 }
  0xa4   : > { %v560_v8 = vsel %vm549_vm0, %v559_v7, 0.0 }
  0xa5   : > { %561 = vadd.xlane.f32.xlu0 %v560_v8 }
 0x12e   : > { %v562_v12 = vpop.xlane.xlu0 %561 }
 0x12f   : > { %v563_v13 = vmul.f32 0.0625, %v562_v12  ;;  %v1492_v12 = vld [vmem:[%s1892_s10] sm:$0xff]  }
 0x131   : > { %v564_v14 = vadd.f32 1e-05, %v563_v13  ;;  %v1386_v13 = vld [vmem:[%s1893_s11] ss:$0 sm:$0xff] }
 0x133   : > { %1495 = vrsqrt.f32 %v564_v14 }
 0x140   : > { %v1496_v15 = vpop.eup %1495 }
 0x141   : > { %v566_v17 = vmul.f32 %v1496_v15, %v558_v6 }
 0x143   : > { %v573_v19 = vmul.f32 %v1379_v16, %v566_v17 }
 0x145   : > { %v580_v20 = vadd.f32 %v1380_v18, %v573_v19 }
 0x147   : > { %v583_v21 = vpack.c.bf16 %v580_v20, %v580_v20 }
 0x149   : > { %1421 = vmatmul.mubr.msk.bf16.vlgmr.msra.gmra.mxu0 %vm590_vm2, %v583_v21  ;;  %1427 = vmatmul.mubr.msk.bf16.vlgmr.msra.gmra.mxu1 %vm590_vm2, %v583_v21 }
 0x14a   : > { %1434 = vmatprep.mubr.msk.bf16.mxu0 %vm1526_vm1, %v1525_v11  ;;  %1442 = vmatprep.mubr.msk.bf16.mxu1 %vm1526_vm1, %v1525_v11 }
 0x14b   : > { %1439 = vmatpush3.bf16.msra.mxu1 %v1487_v22  ;;  %1431 = vmatpush3.bf16.msra.mxu0 %v1488_v23  ;;  %v1529_v23 = vmov 1  }
 0x14c   : > { %1440 = vmatprep.subr.bf16.mxu1 %v1525_v11  ;;  %1432 = vmatprep.subr.bf16.mxu0 %v1525_v11 }
 0x14f   : > { %1441 = vmatpush3.bf16.msra.mxu1 %v1489_v24  ;;  %1433 = vmatpush3.bf16.msra.mxu0 %v1490_v25  ;;  %v1530_v24 = vmov 3  }
 0x150   : > { %1454 = vmatprep.subr.bf16.mxu1 %v1525_v11  ;;  %1446 = vmatprep.subr.bf16.mxu0 %v1525_v11 }
 0x209   : > { %v628_v37 = vpop.f32.mrf.mxu0  ;;  %v1700_v40 = vpop.f32.mrf.mxu1 }
 0x20a   : > { %v684_v41 = vrot.slane %v628_v37, 5 }
 0x20b   : > { %v1422_v42 = vpop.f32.mrf.mxu0  ;;  %v1428_v43 = vpop.f32.mrf.mxu1 }
 0x20c   : > { %v687_v44 = vsel %vm686_vm3, 0.0, %v684_v41  ;;  %v716_v46 = vmul.f32 %v714_v35, %v684_v41  ;;  %v730_v47 = vmul.f32 %v728_v36, %v684_v41  ;;  %v935_v42 = vld [vmem:[%s1894_s12] sm:$0xf] }
 0x20d   : > { %v700_v48 = vmul.f32 %v699_v38, %v687_v44  ;;  %v706_v49 = vmul.f32 %v705_v39, %v687_v44  ;;  %v715_v50 = vmul.f32 %v714_v35, %v687_v44  ;;  %v729_v51 = vmul.f32 %v728_v36, %v687_v44  ;;  %v631_v52 = vpop.f32.mrf.mxu0  ;;  %v679_v53 = vpop.f32.mrf.mxu1 }
 0x20e   : > { %v721_v54 = vrot.slane %v716_v46, 2  ;;  %v735_v61 = vrot.slane %v730_v47, 3  ;;  %v940_v44 = vrot.slane %v935_v42, %v698_v33  ;;  %v1493_v33 = vld [vmem:[%s1896_s14 + $0x8] sm:$0xff]  }
 0x20f   : > { %v701_v55 = vadd.f32 %v1385_v45, %v700_v48  ;;  %v708_v56 = vrot.slane %v706_v49, 1  ;;  %v720_v57 = vrot.slane %v715_v50, 2  ;;  %v1423_v58 = vpop.f32.mrf.mxu0  ;;  %v1429_v59 = vpop.f32.mrf.mxu1  ;;  %v734_v60 = vrot.slane %v729_v51, 3 }
 0x210   : > { %v965_v45 = vrot.slane %v935_v42, %v713_v30 }
 0x211   : > { %v710_v62 = vadd.f32 %v708_v56, %v701_v55  ;;  %v722_v63 = vsel %vm719_vm4, %v720_v57, %v721_v54  ;;  %v736_v1 = vsel %vm733_vm5, %v734_v60, %v735_v61 }
 0x213   : > { %v724_v0 = vadd.f32 %v722_v63, %v710_v62 }
 0x215   : > { %v738_v2 = vadd.f32 %v736_v1, %v724_v0 }
 0x217   : > { %v739_v3 = vsub.f32 0.0, %v738_v2 }
 0x219   : > { %v740_v4 = vmul.f32 1.442695, %v739_v3 }
 0x21b   : > { %1497 = vpow2.f32 %v740_v4 }
 0x228   : > { %v1498_v5 = vpop.eup %1497 }
 0x229   : > { %v742_v6 = vadd.f32 1.0, %v1498_v5 }
 0x22b   : > { %1499 = vrcp.f32 %v742_v6 }
 0x238   : > { %v1500_v7 = vpop.eup %1499 }
 0x239   : > { %v1708_v8 = vmul.f32 %v1500_v7, %v738_v2 }
 0x23b   : > { %v750_v10 = vpack.c.bf16 %v1708_v8, %v1708_v8 }
 0x23d   : > { %1435 = vmatmul.mubr.msk.bf16.vlgmr.msra.gmra.mxu0 %vm770_vm6, %v750_v10  ;;  %1443 = vmatmul.mubr.msk.bf16.vlgmr.msra.gmra.mxu1 %vm770_vm6, %v750_v10 }
 0x23e   : > { %1447 = vmatpush3.bf16.msra.mxu0 %v1491_v9  ;;  %1450 = vmatprep.mubr.msk.bf16.mxu0 %vm1526_vm1, %v1525_v11 }
 0x23f   : > { %1448 = vmatprep.subr.bf16.mxu0 %v1525_v11  ;;  %1458 = vmatprep.mubr.msk.bf16.mxu1 %vm1526_vm1, %v1525_v11 }
 0x240   : > { %1455 = vmatpush3.bf16.msra.mxu1 %v1493_v33 }
 0x241   : > { %1456 = vmatprep.subr.bf16.mxu1 %v1525_v11 }
 0x242   : > { %1449 = vmatpush3.bf16.msra.mxu0 %v1492_v12 }
 0x245   : > { %1451 = vmatmul.mubr.msk.bf16.vlgmr.msra.gmra.mxu0 %vm770_vm6, %v750_v10 }
 0x2fd   : > { %v808_v14 = vpop.f32.mrf.mxu0  ;;  %v873_v15 = vpop.f32.mrf.mxu1 }
 0x2fe   : > { %v809_v16 = vadd.f32 %v1386_v13, %v808_v14  ;;  %970 = vperm.xlu0 %1478, %v873_v15   ;;  %946 = vperm.xlu1 %1476, %v873_v15  }
 0x2ff   : > { %v1436_v17 = vpop.f32.mrf.mxu0  ;;  %v1444_v18 = vpop.f32.mrf.mxu1 }
 0x300   : > { %v815_v19 = vand.u32 2147483647, %v809_v16  ;;  %v814_v46 = vmax.f32 %v809_v16, 0.0 }
 0x301   : > { %v811_v20 = vpop.f32.mrf.mxu0  ;;  %v876_v21 = vpop.f32.mrf.mxu1 }
 0x302   : > { %v816_v22 = vsub.f32 0.0, %v815_v19  ;;  %1477 = vset.pattern.permute.xlu1 %v1529_v23  ;;  %1484 = vset.pattern.permute.xlu0 %v1530_v24 }
 0x303   : > { %958 = vperm.xlu1 %1477, %v873_v15   ;;  %v1437_v25 = vpop.f32.mrf.mxu0  ;;  %v1445_v28 = vpop.f32.mrf.mxu1 }
 0x304   : > { %v817_v32 = vmul.f32 1.442695, %v816_v22  ;;  %v1205_v25 = vsub.f32 0.0, %v1700_v40 }
 0x305   : > { %v929_v35 = vpop.f32.mrf.mxu0 }
 0x306   : > { %1501 = vpow2.f32 %v817_v32 }
 0x307   : > { %1479 = vset.pattern.permute.xlu1 %v1530_v24  ;;  %v1452_v36 = vpop.f32.mrf.mxu0 }
 0x308   : > { %982 = vperm.xlu1 %1479, %v873_v15  }
 0x309   : > { %v932_v37 = vpop.f32.mrf.mxu0 }
 0x30b   : > { %v1453_v38 = vpop.f32.mrf.mxu0 }
 0x30c   : > { %1480 = vset.pattern.permute.xlu1 %v1528_v27  ;;  %v953_v27 = vrot.slane %v935_v42, %v704_v34  ;;  %v1494_v34 = vld [vmem:[%s1896_s14] sm:$0xff]  }
 0x30d   : > { %990 = vperm.xlu1 %1480, %v929_v35   ;;  %1457 = vmatpush3.bf16.msra.mxu1 %v1494_v34 }
 0x311   : > { %1481 = vset.pattern.permute.xlu1 %v1529_v23 }
 0x312   : > { %998 = vperm.xlu1 %1481, %v929_v35  }
 0x313   : > { %v1502_v39 = vpop.eup %1501 }
 0x314   : > { %v819_v41 = vadd.f32 1.0, %v1502_v39 }
 0x316   : > { %1503 = vlog2.f32 %v819_v41  ;;  %1482 = vset.pattern.permute.xlu1 %v1527_v26  ;;  %v977_v26 = vrot.slane %v935_v42, %v727_v31 }
 0x317   : > { %1006 = vperm.xlu1 %1482, %v929_v35  }
 0x31b   : > { %1483 = vset.pattern.permute.xlu1 %v1530_v24 }
 0x31c   : > { %1014 = vperm.xlu1 %1483, %v929_v35  }
 0x323   : > { %v1504_v43 = vpop.eup %1503 }
 0x324   : > { %v821_v47 = vmul.f32 0.6931472, %v1504_v43  ;;  %v1206_v43 = vmul.f32 1.442695, %v1205_v25 }
 0x326   : > { %v822_v48 = vadd.f32 %v821_v47, %v814_v46 }
 0x328   : > { %v941_v49 = vmul.f32 %v940_v44, %v822_v48  ;;  %v954_v50 = vmul.f32 %v953_v27, %v822_v48  ;;  %v966_v51 = vmul.f32 %v965_v45, %v822_v48  ;;  %v978_v52 = vmul.f32 %v977_v26, %v822_v48 }
 0x329   : > { %v936_v56 = vmul.f32 %v822_v48, %v1708_v8 }
 0x32a   : > { %v942_v29 = vmul.f32 1.442695, %v941_v49  ;;  %v967_v30 = vmul.f32 1.442695, %v966_v51  ;;  %v955_v31 = vmul.f32 1.442695, %v954_v50 }
 0x32b   : > { %v979_v53 = vmul.f32 1.442695, %v978_v52 }
 0x32c   : > { %1505 = vpow2.f32 %v942_v29 }
 0x32d   : > { %1507 = vpow2.f32 %v967_v30 }
 0x32e   : > { %1509 = vpow2.f32 %v955_v31 }
 0x32f   : > { %1511 = vpow2.f32 %v979_v53 }
 0x330   : > { %1513 = vpow2.f32 %v1206_v43 }
 0x339   : > { %v1749_v54 = vpop.eup %1505 }
 0x33a   : > { %v1751_v55 = vpop.eup %1507  ;;  %v986_v60 = vmul.f32 0.0, %v1749_v54 }
 0x33b   : > { %v1003_v61 = vmul.f32 0.0, %v1751_v55  ;;  %v1760_v62 = vpop.eup %1509 }
 0x33c   : > { %v995_v5 = vmul.f32 0.0, %v1760_v62  ;;  %v1769_v9 = vpop.eup %1511 }
 0x33d   : > { %v1011_v19 = vmul.f32 0.0, %v1769_v9 }
 0x379   : > { %v971_v57 = vpop.permute.xlu0 %970  ;;  %v947_v58 = vpop.permute.xlu1 %946 }
 0x37a   : > { %v1754_v59 = vmul.f32 %v971_v57, %v936_v56  ;;  %v1756_v11 = vmul.f32 %v947_v58, %v936_v56 }
 0x37c   : > { %v987_v63 = vadd.f32 %v986_v60, %v1756_v11  ;;  %v1004_v0 = vadd.f32 %v1003_v61, %v1754_v59 }
 0x37e   : > { %v959_v1 = vpop.permute.xlu1 %958  ;;  %v1020_v2 = vrot.slane %v987_v63, 7  ;;  %v1034_v3 = vrot.slane %v1004_v0, 7 }
 0x37f   : > { %v1764_v4 = vmul.f32 %v959_v1, %v936_v56 }
 0x380   : > { %v1022_v6 = vmul.f32 %v1749_v54, %v1020_v2  ;;  %v1036_v7 = vmul.f32 %v1751_v55, %v1034_v3 }
 0x381   : > { %v996_v10 = vadd.f32 %v995_v5, %v1764_v4 }
 0x382   : > { %v1023_v12 = vadd.f32 %v1022_v6, %v1756_v11  ;;  %v1037_v13 = vadd.f32 %v1036_v7, %v1754_v59 }
 0x383   : > { %v983_v14 = vpop.permute.xlu1 %982  ;;  %v1027_v15 = vrot.slane %v996_v10, 7 }
 0x384   : > { %v1774_v16 = vmul.f32 %v983_v14, %v936_v56  ;;  %v1048_v17 = vrot.slane %v1023_v12, 7  ;;  %v1062_v18 = vrot.slane %v1037_v13, 7 }
 0x385   : > { %v1029_v20 = vmul.f32 %v1760_v62, %v1027_v15 }
 0x386   : > { %v1050_v21 = vmul.f32 %v1749_v54, %v1048_v17  ;;  %v1064_v22 = vmul.f32 %v1751_v55, %v1062_v18  ;;  %v1781_v23 = vadd.f32 %v1011_v19, %v1774_v16 }
 0x387   : > { %v1030_v24 = vadd.f32 %v1029_v20, %v1764_v4 }
 0x388   : > { %v1051_v28 = vadd.f32 %v1050_v21, %v1756_v11  ;;  %v1786_v32 = vpop.permute.xlu1 %990  ;;  %v1065_v35 = vadd.f32 %v1064_v22, %v1754_v59  ;;  %v1041_v36 = vrot.slane %v1781_v23, 7 }
 0x389   : > { %v1055_v37 = vrot.slane %v1030_v24, 7  ;;  %v993_v26 = vmul.f32 %v1786_v32, %v987_v63  ;;  %v1024_v46 = vmul.f32 %v1023_v12, %v1786_v32 }
 0x38a   : > { %v1076_v38 = vrot.slane %v1051_v28, 7  ;;  %v1090_v39 = vrot.slane %v1065_v35, 7  ;;  %v1043_v41 = vmul.f32 %v1769_v9, %v1041_v36  ;;  %v1052_v33 = vmul.f32 %v1051_v28, %v1786_v32 }
 0x38b   : > { %v1057_v42 = vmul.f32 %v1760_v62, %v1055_v37 }
 0x38c   : > { %v1078_v44 = vmul.f32 %v1749_v54, %v1076_v38  ;;  %v1092_v27 = vmul.f32 %v1751_v55, %v1090_v39  ;;  %v1044_v45 = vadd.f32 %v1043_v41, %v1774_v16 }
 0x38d   : > { %v1058_v47 = vadd.f32 %v1057_v42, %v1764_v4  ;;  %v1798_v48 = vpop.permute.xlu1 %998 }
 0x38e   : > { %v1079_v49 = vadd.f32 %v1078_v44, %v1756_v11  ;;  %v1001_v50 = vmul.f32 %v1798_v48, %v996_v10  ;;  %v1031_v51 = vmul.f32 %v1030_v24, %v1798_v48  ;;  %v1093_v52 = vadd.f32 %v1092_v27, %v1754_v59 }
 0x38f   : > { %v1083_v34 = vrot.slane %v1058_v47, 7  ;;  %v1059_v29 = vmul.f32 %v1058_v47, %v1798_v48  ;;  %v1069_v30 = vrot.slane %v1044_v45, 7 }
 0x390   : > { %v1104_v31 = vrot.slane %v1079_v49, 7  ;;  %v1002_v53 = vadd.f32 %v1001_v50, %v993_v26  ;;  %v1032_v56 = vadd.f32 %v1031_v51, %v1024_v46  ;;  %v1118_v60 = vrot.slane %v1093_v52, 7 }
 0x391   : > { %v1085_v57 = vmul.f32 %v1760_v62, %v1083_v34  ;;  %v1060_v58 = vadd.f32 %v1059_v29, %v1052_v33  ;;  %v1071_v61 = vmul.f32 %v1769_v9, %v1069_v30  ;;  %v1080_v10 = vmul.f32 %v1079_v49, %v1786_v32  ;;  %v1514_v34 = vpop.eup %1513 }
 0x392   : > { %v1106_v63 = vmul.f32 %v1749_v54, %v1104_v31  ;;  %v1809_v1 = vpop.permute.xlu1 %1006  ;;  %v1120_v3 = vmul.f32 %v1751_v55, %v1118_v60 }
 0x393   : > { %v1086_v2 = vadd.f32 %v1085_v57, %v1764_v4  ;;  %v1009_v5 = vmul.f32 %v1809_v1, %v1004_v0  ;;  %v1038_v6 = vmul.f32 %v1037_v13, %v1809_v1  ;;  %v1066_v12 = vmul.f32 %v1065_v35, %v1809_v1 }
 0x394   : > { %v1107_v7 = vadd.f32 %v1106_v63, %v1756_v11  ;;  %v1072_v14 = vadd.f32 %v1071_v61, %v1774_v16  ;;  %v1121_v18 = vadd.f32 %v1120_v3, %v1754_v59  ;;  %v1094_v0 = vmul.f32 %v1093_v52, %v1809_v1 }
 0x395   : > { %v1111_v15 = vrot.slane %v1086_v2, 7  ;;  %v1087_v17 = vmul.f32 %v1086_v2, %v1798_v48  ;;  %v1010_v19 = vadd.f32 %v1009_v5, %v1002_v53  ;;  %v1039_v21 = vadd.f32 %v1038_v6, %v1032_v56 }
 0x396   : > { %v1132_v20 = vrot.slane %v1107_v7, 7  ;;  %v1067_v13 = vadd.f32 %v1066_v12, %v1060_v58  ;;  %v1108_v22 = vmul.f32 %v1107_v7, %v1786_v32  ;;  %v1146_v28 = vrot.slane %v1121_v18, 7 }
 0x397   : > { %v1113_v24 = vmul.f32 %v1760_v62, %v1111_v15  ;;  %v1088_v25 = vadd.f32 %v1087_v17, %v1080_v10  ;;  %v1824_v35 = vpop.permute.xlu1 %1014  ;;  %v1097_v37 = vrot.slane %v1072_v14, 7  ;;  %v1122_v53 = vmul.f32 %v1121_v18, %v1809_v1 }
 0x398   : > { %v1134_v36 = vmul.f32 %v1749_v54, %v1132_v20  ;;  %v1017_v38 = vmul.f32 %v1824_v35, %v1781_v23  ;;  %v1045_v39 = vmul.f32 %v1044_v45, %v1824_v35  ;;  %v1148_v42 = vmul.f32 %v1751_v55, %v1146_v28 }
 0x399   : > { %v1114_v41 = vadd.f32 %v1113_v24, %v1764_v4  ;;  %v1095_v43 = vadd.f32 %v1094_v0, %v1088_v25  ;;  %v1073_v44 = vmul.f32 %v1072_v14, %v1824_v35  ;;  %v1099_v26 = vmul.f32 %v1769_v9, %v1097_v37 }
 0x39a   : > { %v1135_v27 = vadd.f32 %v1134_v36, %v1756_v11  ;;  %v1018_v46 = vadd.f32 %v1017_v38, %v1010_v19  ;;  %v1046_v47 = vadd.f32 %v1045_v39, %v1039_v21  ;;  %v1149_v23 = vadd.f32 %v1148_v42, %v1754_v59 }
 0x39b   : > { %v1139_v49 = vrot.slane %v1114_v41, 7  ;;  %v1115_v50 = vmul.f32 %v1114_v41, %v1798_v48  ;;  %v1074_v51 = vadd.f32 %v1073_v44, %v1067_v13  ;;  %v1100_v52 = vadd.f32 %v1099_v26, %v1774_v16 }
 0x39c   : > { %v1160_v45 = vrot.slane %v1135_v27, 7  ;;  %v1188_v33 = vsel %vm1187_vm7, %v1018_v46, %v1046_v47  ;;  %v1174_v31 = vrot.slane %v1149_v23, 7  ;;  %v1208_v3 = vadd.f32 1.0, %v1514_v34 }
 0x39d   : > { %v1141_v29 = vmul.f32 %v1760_v62, %v1139_v49  ;;  %v1116_v30 = vadd.f32 %v1115_v50, %v1108_v22  ;;  %v1125_v57 = vrot.slane %v1100_v52, 7  ;;  %v1101_v58 = vmul.f32 %v1100_v52, %v1824_v35 }
 0x39e   : > { %v1162_v56 = vmul.f32 %v1749_v54, %v1160_v45  ;;  %v1190_v60 = vsel %vm1189_vm8, %v1188_v33, %v1074_v51  ;;  %v1176_v63 = vmul.f32 %v1751_v55, %v1174_v31  ;;  %v1136_v10 = vmul.f32 %v1135_v27, %v1786_v32 }
 0x39f   : > { %v1142_v61 = vadd.f32 %v1141_v29, %v1764_v4  ;;  %v1123_v2 = vadd.f32 %v1122_v53, %v1116_v30  ;;  %v1127_v6 = vmul.f32 %v1769_v9, %v1125_v57  ;;  %v1102_v7 = vadd.f32 %v1101_v58, %v1095_v43  ;;  %v1396_v43 = vld [vmem:[%s1895_s13] ss:$0 sm:$0xff] }
 0x3a0   : > { %v1163_v5 = vadd.f32 %v1162_v56, %v1756_v11  ;;  %v1177_v14 = vadd.f32 %v1176_v63, %v1754_v59  ;;  %v1150_v19 = vmul.f32 %v1149_v23, %v1809_v1  ;;  %1515 = vrcp.f32 %v1208_v3 }
 0x3a1   : > { %v1167_v12 = vrot.slane %v1142_v61, 7  ;;  %v1143_v54 = vmul.f32 %v1142_v61, %v1798_v48  ;;  %v1128_v15 = vadd.f32 %v1127_v6, %v1774_v16  ;;  %v1191_v17 = vsel %vm686_vm3, %v1190_v60, %v1102_v7 }
 0x3a2   : > { %v1164_v22 = vmul.f32 %v1163_v5, %v1786_v32  ;;  %v1178_v36 = vmul.f32 %v1177_v14, %v1809_v1  ;;  %v1203_v27 = vmul.f32 %v1396_v43, %v1708_v8 }
 0x3a3   : > { %v1169_v55 = vmul.f32 %v1760_v62, %v1167_v12  ;;  %v1144_v18 = vadd.f32 %v1143_v54, %v1136_v10  ;;  %v1153_v11 = vrot.slane %v1128_v15, 7  ;;  %v1129_v20 = vmul.f32 %v1128_v15, %v1824_v35 }
 0x3a5   : > { %v1170_v0 = vadd.f32 %v1169_v55, %v1764_v4  ;;  %v1151_v21 = vadd.f32 %v1150_v19, %v1144_v18  ;;  %v1155_v13 = vmul.f32 %v1769_v9, %v1153_v11  ;;  %v1130_v59 = vadd.f32 %v1129_v20, %v1123_v2 }
 0x3a7   : > { %v1171_v24 = vmul.f32 %v1170_v0, %v1798_v48  ;;  %v1156_v62 = vadd.f32 %v1155_v13, %v1774_v16  ;;  %v1193_v25 = vsel %vm1192_vm9, %v1191_v17, %v1130_v59 }
 0x3a9   : > { %v1172_v28 = vadd.f32 %v1171_v24, %v1164_v22  ;;  %v1181_v37 = vrot.slane %v1156_v62, 7  ;;  %v1157_v38 = vmul.f32 %v1156_v62, %v1824_v35 }
 0x3ab   : > { %v1179_v39 = vadd.f32 %v1178_v36, %v1172_v28  ;;  %v1183_v4 = vmul.f32 %v1769_v9, %v1181_v37  ;;  %v1158_v41 = vadd.f32 %v1157_v38, %v1151_v21 }
 0x3ad   : > { %v1184_v42 = vadd.f32 %v1183_v4, %v1774_v16  ;;  %v1194_v32 = vsel %vm733_vm5, %v1193_v25, %v1158_v41  ;;  %v1516_v44 = vpop.eup %1515 }
 0x3ae   : > { %v1211_v46 = vmul.f32 %v1516_v44, %v1700_v40 }
 0x3af   : > { %v1185_v48 = vmul.f32 %v1184_v42, %v1824_v35 }
 0x3b1   : > { %v1186_v1 = vadd.f32 %v1185_v48, %v1179_v39 }
 0x3b3   : > { %v1195_v26 = vsel %vm719_vm4, %v1194_v32, %v1186_v1 }
 0x3b4   : > { %v1204_v9 = vadd.f32 %v1203_v27, %v1195_v26 }
 0x3b6   : > { %v1212_v47 = vmul.f32 %v1211_v46, %v1204_v9 }
 0x3b8   : > { %v1217_v49 = vpack.c.bf16 %v1212_v47, %v1212_v47 }
 0x3ba   : > { %1459 = vmatmul.mubr.msk.bf16.vlgmr.msra.gmra.mxu1 %vm770_vm6, %v1217_v49 }
 0x47a   : > { %v1267_v16 = vpop.f32.mrf.mxu1 }
 0x47b   : > { %1273 = vst.msk [vmem:[%s540_s0] sm:$0x7f] %vm549_vm0, %v1267_v16 }
 0x47c   : > { %v1460_v35 = vpop.f32.mrf.mxu1 }
 0x47e   : > { %v1270_v50 = vpop.f32.mrf.mxu1 }
 0x480   : > { %v1461_v23 = vpop.f32.mrf.mxu1 }
 0x481 PF: > { %s27_s21 = sadd.s32 1, %s1523_s21  }
 0x482   : > { %p24_p4 = scmp.ge.s32.totalorder %s27_s21, 4  }
 0x484   :  { %26 = sbr.rel (!%p24_p4) target bundleno = 2 (0x2), region = 125 }

// kernel: forward.19
= control target key start
LH: loop header
LB: loop body
LE: loop exit
PB: predicated region body
PF: predicated region fallthrough
CT: control target
= control target key end

     0   :  { %s1244_s11 = smov 0   ;;  %s1419_s0 = inlined_call_operand.vmem [shape: f32[2,34,8], index: 0, kind: input, shape index: {}]   ;;  %s1420_s1 = inlined_call_operand.vmem [shape: f32[2,34,8], index: 1, kind: input, shape index: {}]   ;;  %s1421_s2 = inlined_call_operand.vmem [shape: bf16[8,8], index: 2, kind: input, shape index: {}]   ;;  %s1422_s3 = inlined_call_operand.vmem [shape: f32[1,8], index: 3, kind: input, shape index: {}]   ;;  %s1423_s4 = inlined_call_operand.vmem [shape: bf16[8,8], index: 4, kind: input, shape index: {}]   ;;  %s1424_s5 = inlined_call_operand.vmem [shape: f32[1,8], index: 5, kind: input, shape index: {}]   ;;  %s1425_s6 = inlined_call_operand.vmem [shape: bf16[4,8,1], index: 6, kind: input, shape index: {}]   ;;  %s1426_s7 = inlined_call_operand.<no memory space> [shape: f32[1,1], index: 7, kind: input, shape index: {}]   ;;  %s1427_s8 = inlined_call_operand.vmem [shape: f32[2,35,1], index: 8, kind: output, shape index: {0}]   ;;  %s1428_s9 = inlined_call_operand.vmem [shape: f32[2,35,1], index: 9, kind: output, shape index: {1}]  }
   0x1   :  { %v15_v0 = vstv %s1426_s7 }
   0x2   :  { %16 = vst [vmem:[#allocation2] sm:$0x1] %v15_v0 }
   0x3 LB: > { %s1009_s12 = sadd.s32 4294967295, %s1187_s11   ;;  %p1013_p0 = scmp.ge.s32.totalorder %s1187_s11, 1  ;;  %s1187_s11 = sphi %s1244_s11, %s22_s11  }
   0x4   : > { %p302_p1 = scmp.lt.s32.totalorder %s1187_s11, 3 }
   0x6   : > { %p303_p2 = pnand %p1013_p0, %p302_p1 }
   0x7   : > { %p348_p3 = scmp.lt.s32.totalorder (!%p303_p2), %s1009_s12, 1 }
   0x8   : > { %306 = sbr.rel (%p303_p2) target bundleno = 501 (0x1f5), region = 52 }
   0xd   : > { %vm409_vm0 = vcmask 1043456   ;;  %v469_v1 = vld [vmem:[%s1423_s4] sm:$0xf]  ;;  %v1189_v2 = vmov 0.0   ;;  %vm1190_vm1 = vmmov 0   ;;  %s1430_s12 = smov (!%p348_p3, %s1009_s12), 1 }
   0xe   : > { %1080 = vmatprep.subr.bf16.mxu1 %v1189_v2  ;;  %v478_v3 = vsel %vm409_vm0, %v469_v1, 0  ;;  %1082 = vmatprep.mubr.msk.bf16.mxu1 %vm1190_vm1, %v1189_v2  ;;  %v388_v4 = vld [vmem:[%s1421_s2] sm:$0xf]  ;;  %s1266_s16 = smul.u32 40, %s1430_s12  ;;  %vm399_vm2 = vcmask 64512   ;;  %vm826_vm3 = vcmask 1040384  }
   0xf   : > { %1081 = vmatpush3.bf16.msra.mxu1 %v478_v3  ;;  %1066 = vmatprep.subr.bf16.mxu0 %v1189_v2  ;;  %v411_v5 = vsel %vm409_vm0, %v388_v4, 0  ;;  %v369_v24 = vld [vmem:[%s1425_s6] sm:$0xf]  ;;  %v370_v25 = vld [vmem:[%s1425_s6 + $0x4] sm:$0xf]  ;;  %vm859_vm4 = vcmask 7168  }
  0x10   : > { %1067 = vmatpush3.bf16.msra.mxu0 %v411_v5  ;;  %1068 = vmatprep.mubr.msk.bf16.mxu0 %vm1190_vm1, %v1189_v2  ;;  %s352_s19 = scalar_lea.vmem %s1419_s0, %s1266_s16  ;;  %s357_s22 = scalar_lea.vmem %s1420_s1, %s1266_s16  ;;  %v584_v26 = vsel %vm409_vm0, %v369_v24, 0  ;;  %v643_v27 = vsel %vm409_vm0, %v370_v25, 0  ;;  %v1022_v28 = vld [vmem:[%s1424_s5] ss:$0 sm:$0xff]  ;;  %vm819_vm5 = vcmask 1041408   ;;  %vm864_vm6 = vcmask 2048  }
  0x11   : > { %1094 = vmatprep.subr.bf16.mxu0 %v1189_v2  ;;  %1108 = vmatprep.subr.bf16.mxu1 %v1189_v2  ;;  %v373_v6 = vld [vmem:[%s352_s19] sm:$0xff]  ;;  %v374_v7 = vld [vmem:[%s352_s19 + $0x8] sm:$0xff]  ;;  %v375_v12 = vld [vmem:[%s352_s19 + $0x10] sm:$0xff]  ;;  %s1368_s17 = scalar_lea.vmem %s1427_s8, %s1266_s16  ;;  %s1374_s20 = scalar_lea.vmem %s1428_s9, %s1266_s16 }
  0x12   : > { %v378_v8 = vld [vmem:[%s357_s22] sm:$0xff]  ;;  %v379_v9 = vld [vmem:[%s357_s22 + $0x8] sm:$0xff]  ;;  %v376_v13 = vld [vmem:[%s352_s19 + $0x18] sm:$0xff] }
  0x13   : > { %v383_v10 = vadd.f32 %v378_v8, %v373_v6  ;;  %v384_v11 = vadd.f32 %v379_v9, %v374_v7  ;;  %v380_v14 = vld [vmem:[%s357_s22 + $0x10] sm:$0xff]  ;;  %v381_v15 = vld [vmem:[%s357_s22 + $0x18] sm:$0xff]  ;;  %v377_v20 = vld [vmem:[%s352_s19 + $0x20] sm:$0x3] }
  0x14   : > { %v385_v17 = vadd.f32 %v380_v14, %v375_v12  ;;  %v386_v18 = vadd.f32 %v381_v15, %v376_v13  ;;  %v382_v21 = vld [vmem:[%s357_s22 + $0x20] sm:$0x3] }
  0x15   : > { %v389_v16 = vpack.c.bf16 %v384_v11, %v383_v10  ;;  %v387_v22 = vadd.f32 %v382_v21, %v377_v20  ;;  %v1018_v13 = vld [vmem:[%s1422_s3] ss:$0 sm:$0xff]  ;;  %v371_v20 = vld [vmem:[%s1425_s6 + $0x8] sm:$0xf]  ;;  %v372_v21 = vld [vmem:[%s1425_s6 + $0xc] sm:$0xf] }
  0x16   : > { %v390_v19 = vpack.c.bf16 %v386_v18, %v385_v17  ;;  %v702_v25 = vsel %vm409_vm0, %v371_v20, 0 }
  0x17   : > { %1083 = vmatmul.mubr.msk.bf16.vlgmr.msra.gmra.mxu1 %vm399_vm2, %v389_v16  ;;  %1069 = vmatmul.mubr.msk.bf16.vlgmr.msra.gmra.mxu0 %vm399_vm2, %v389_v16  ;;  %v391_v23 = vpack.c.bf16 %v387_v22, %v387_v22 }
  0x18   : > { %1086 = vmatprep.mubr.msk.bf16.mxu1 %vm1190_vm1, %v1189_v2  ;;  %1072 = vmatprep.mubr.msk.bf16.mxu0 %vm1190_vm1, %v1189_v2 }
  0x19   : > { %1095 = vmatpush3.bf16.msra.mxu0 %v584_v26  ;;  %1109 = vmatpush3.bf16.msra.mxu1 %v643_v27  ;;  %v761_v26 = vsel %vm409_vm0, %v372_v21, 0 }
  0x1a   : > { %1122 = vmatprep.subr.bf16.mxu0 %v1189_v2  ;;  %1136 = vmatprep.subr.bf16.mxu1 %v1189_v2 }
  0x1f   : > { %1087 = vmatmul.mubr.msk.bf16.gmra.mxu1 %vm399_vm2, %v390_v19  ;;  %1073 = vmatmul.mubr.msk.bf16.gmra.mxu0 %vm399_vm2, %v390_v19 }
  0x20   : > { %1090 = vmatprep.mubr.msk.bf16.mxu1 %vm1190_vm1, %v1189_v2  ;;  %1076 = vmatprep.mubr.msk.bf16.mxu0 %vm1190_vm1, %v1189_v2 }
  0x27   : > { %1091 = vmatmul.mubr.msk.bf16.gmra.mxu1 %vm399_vm2, %v391_v23  ;;  %1077 = vmatmul.mubr.msk.bf16.gmra.mxu0 %vm399_vm2, %v391_v23 }
  0x28   : > { %1096 = vmatprep.mubr.msk.bf16.mxu0 %vm1190_vm1, %v1189_v2  ;;  %1110 = vmatprep.mubr.msk.bf16.mxu1 %vm1190_vm1, %v1189_v2 }
  0xd7   : > { %v514_v29 = vpop.f32.mrf.mxu1  ;;  %v447_v30 = vpop.f32.mrf.mxu0 }
  0xd8   : > { %v515_v31 = vadd.f32 %v1022_v28, %v514_v29  ;;  %v448_v15 = vadd.f32 %v1018_v13, %v447_v30 }
  0xd9   : > { %v1084_v32 = vpop.f32.mrf.mxu1  ;;  %v1070_v33 = vpop.f32.mrf.mxu0 }
  0xda   : > { %v536_v34 = vsub.f32 0.0, %v515_v31 }
  0xdb   : > { %v517_v35 = vpop.f32.mrf.mxu1  ;;  %v450_v36 = vpop.f32.mrf.mxu0 }
  0xdc   : > { %v541_v37 = vmul.f32 1.442695, %v536_v34  ;;  %v518_v38 = vadd.f32 %v1022_v28, %v517_v35  ;;  %v451_v18 = vadd.f32 %v1018_v13, %v450_v36 }
  0xdd   : > { %v1085_v39 = vpop.f32.mrf.mxu1  ;;  %v1071_v40 = vpop.f32.mrf.mxu0 }
  0xde   : > { %1161 = vpow2.f32 %v541_v37  ;;  %v537_v41 = vsub.f32 0.0, %v518_v38 }
  0xdf   : > { %v522_v42 = vpop.f32.mrf.mxu1  ;;  %v455_v43 = vpop.f32.mrf.mxu0 }
  0xe0   : > { %v543_v44 = vmul.f32 1.442695, %v537_v41  ;;  %v523_v45 = vadd.f32 %v1022_v28, %v522_v42  ;;  %v456_v27 = vadd.f32 %v1018_v13, %v455_v43 }
  0xe1   : > { %v1088_v46 = vpop.f32.mrf.mxu1  ;;  %v1074_v47 = vpop.f32.mrf.mxu0 }
  0xe2   : > { %1163 = vpow2.f32 %v543_v44  ;;  %v538_v48 = vsub.f32 0.0, %v523_v45 }
  0xe3   : > { %v525_v49 = vpop.f32.mrf.mxu1  ;;  %v458_v50 = vpop.f32.mrf.mxu0 }
  0xe4   : > { %v545_v51 = vmul.f32 1.442695, %v538_v48  ;;  %v526_v52 = vadd.f32 %v1022_v28, %v525_v49  ;;  %v459_v29 = vadd.f32 %v1018_v13, %v458_v50 }
  0xe5   : > { %v1089_v53 = vpop.f32.mrf.mxu1  ;;  %v1075_v54 = vpop.f32.mrf.mxu0 }
  0xe6   : > { %1165 = vpow2.f32 %v545_v51  ;;  %v539_v55 = vsub.f32 0.0, %v526_v52 }
  0xe7   : > { %v530_v56 = vpop.f32.mrf.mxu1  ;;  %v463_v57 = vpop.f32.mrf.mxu0 }
  0xe8   : > { %v547_v58 = vmul.f32 1.442695, %v539_v55  ;;  %v531_v59 = vadd.f32 %v1022_v28, %v530_v56  ;;  %v464_v33 = vadd.f32 %v1018_v13, %v463_v57 }
  0xe9   : > { %v1092_v60 = vpop.f32.mrf.mxu1  ;;  %v1078_v61 = vpop.f32.mrf.mxu0 }
  0xea   : > { %1167 = vpow2.f32 %v547_v58  ;;  %v540_v62 = vsub.f32 0.0, %v531_v59 }
  0xeb   : > { %v1162_v63 = vpop.eup %1161  ;;  %v533_v0 = vpop.f32.mrf.mxu1 }
  0xec   : > { %v466_v1 = vpop.f32.mrf.mxu0  ;;  %v551_v3 = vadd.f32 1.0, %v1162_v63  ;;  %v549_v4 = vmul.f32 1.442695, %v540_v62 }
  0xed   : > { %v1093_v5 = vpop.f32.mrf.mxu1 }
  0xee   : > { %v1079_v6 = vpop.f32.mrf.mxu0  ;;  %1169 = vpow2.f32 %v549_v4  ;;  %v1361_v5 = vld [vmem:[#allocation2] ss:$0 sm:$0xff] }
  0xef   : > { %v1164_v7 = vpop.eup %1163  ;;  %1171 = vrcp.f32 %v551_v3 }
  0xf0   : > { %v552_v8 = vadd.f32 1.0, %v1164_v7 }
  0xf2   : > { %1173 = vrcp.f32 %v552_v8 }
  0xf3   : > { %v1166_v9 = vpop.eup %1165 }
  0xf4   : > { %v553_v10 = vadd.f32 1.0, %v1166_v9 }
  0xf6   : > { %1175 = vrcp.f32 %v553_v10 }
  0xf7   : > { %v1168_v11 = vpop.eup %1167 }
  0xf8   : > { %v554_v12 = vadd.f32 1.0, %v1168_v11 }
  0xfa   : > { %1177 = vrcp.f32 %v554_v12 }
  0xfb   : > { %v1170_v14 = vpop.eup %1169 }
  0xfc   : > { %v1172_v16 = vpop.eup %1171  ;;  %v555_v17 = vadd.f32 1.0, %v1170_v14 }
  0xfd   : > { %v566_v22 = vmul.f32 %v1172_v16, %v448_v15 }
  0xfe   : > { %1179 = vrcp.f32 %v555_v17 }
  0xff   : > { %v1174_v19 = vpop.eup %1173 }
 0x100   : > { %v567_v23 = vmul.f32 %v1174_v19, %v451_v18 }
 0x102   : > { %v571_v24 = vpack.c.bf16 %v567_v23, %v566_v22 }
 0x103   : > { %v1176_v28 = vpop.eup %1175 }
 0x104   : > { %1097 = vmatmul.mubr.msk.bf16.vlgmr.msra.gmra.mxu0 %vm399_vm2, %v571_v24  ;;  %1111 = vmatmul.mubr.msk.bf16.vlgmr.msra.gmra.mxu1 %vm399_vm2, %v571_v24  ;;  %v568_v31 = vmul.f32 %v1176_v28, %v456_v27 }
 0x105   : > { %1123 = vmatpush3.bf16.msra.mxu0 %v702_v25  ;;  %1137 = vmatpush3.bf16.msra.mxu1 %v761_v26 }
 0x106   : > { %1100 = vmatprep.mubr.msk.bf16.mxu0 %vm1190_vm1, %v1189_v2  ;;  %1114 = vmatprep.mubr.msk.bf16.mxu1 %vm1190_vm1, %v1189_v2 }
 0x107   : > { %v1178_v30 = vpop.eup %1177 }
 0x108   : > { %v569_v32 = vmul.f32 %v1178_v30, %v459_v29 }
 0x10a   : > { %v572_v34 = vpack.c.bf16 %v569_v32, %v568_v31 }
 0x10b   : > { %v1180_v35 = vpop.eup %1179 }
 0x10c   : > { %1101 = vmatmul.mubr.msk.bf16.gmra.mxu0 %vm399_vm2, %v572_v34  ;;  %1115 = vmatmul.mubr.msk.bf16.gmra.mxu1 %vm399_vm2, %v572_v34  ;;  %v570_v36 = vmul.f32 %v1180_v35, %v464_v33 }
 0x10d   : > { %1104 = vmatprep.mubr.msk.bf16.mxu0 %vm1190_vm1, %v1189_v2  ;;  %1118 = vmatprep.mubr.msk.bf16.mxu1 %vm1190_vm1, %v1189_v2 }
 0x10e   : > { %v573_v37 = vpack.c.bf16 %v570_v36, %v570_v36 }
 0x114   : > { %1105 = vmatmul.mubr.msk.bf16.gmra.mxu0 %vm399_vm2, %v573_v37  ;;  %1119 = vmatmul.mubr.msk.bf16.gmra.mxu1 %vm399_vm2, %v573_v37 }
 0x115   : > { %1124 = vmatprep.mubr.msk.bf16.mxu0 %vm1190_vm1, %v1189_v2  ;;  %1138 = vmatprep.mubr.msk.bf16.mxu1 %vm1190_vm1, %v1189_v2 }
 0x11c   : > { %1125 = vmatmul.mubr.msk.bf16.vlgmr.msra.gmra.mxu0 %vm399_vm2, %v571_v24  ;;  %1139 = vmatmul.mubr.msk.bf16.vlgmr.msra.gmra.mxu1 %vm399_vm2, %v571_v24 }
 0x11d   : > { %1128 = vmatprep.mubr.msk.bf16.mxu0 %vm1190_vm1, %v1189_v2  ;;  %1142 = vmatprep.mubr.msk.bf16.mxu1 %vm1190_vm1, %v1189_v2 }
 0x124   : > { %1129 = vmatmul.mubr.msk.bf16.gmra.mxu0 %vm399_vm2, %v572_v34  ;;  %1143 = vmatmul.mubr.msk.bf16.gmra.mxu1 %vm399_vm2, %v572_v34 }
 0x125   : > { %1132 = vmatprep.mubr.msk.bf16.mxu0 %vm1190_vm1, %v1189_v2  ;;  %1146 = vmatprep.mubr.msk.bf16.mxu1 %vm1190_vm1, %v1189_v2 }
 0x12c   : > { %1133 = vmatmul.mubr.msk.bf16.gmra.mxu0 %vm399_vm2, %v573_v37  ;;  %1147 = vmatmul.mubr.msk.bf16.gmra.mxu1 %vm399_vm2, %v573_v37 }
 0x1c4   : > { %v620_v38 = vpop.f32.mrf.mxu0  ;;  %v679_v39 = vpop.f32.mrf.mxu1 }
 0x1c6   : > { %v1098_v40 = vpop.f32.mrf.mxu0  ;;  %v1112_v41 = vpop.f32.mrf.mxu1 }
 0x1c8   : > { %v623_v42 = vpop.f32.mrf.mxu0  ;;  %v682_v43 = vpop.f32.mrf.mxu1 }
 0x1ca   : > { %v1099_v44 = vpop.f32.mrf.mxu0  ;;  %v1113_v45 = vpop.f32.mrf.mxu1 }
 0x1cc   : > { %v628_v46 = vpop.f32.mrf.mxu0  ;;  %v687_v47 = vpop.f32.mrf.mxu1 }
 0x1ce   : > { %v1102_v48 = vpop.f32.mrf.mxu0  ;;  %v1116_v49 = vpop.f32.mrf.mxu1 }
 0x1d0   : > { %v1352_v50 = vpop.f32.mrf.mxu0  ;;  %v1354_v51 = vpop.f32.mrf.mxu1 }
 0x1d2   : > { %v1103_v2 = vpop.f32.mrf.mxu0  ;;  %v1117_v52 = vpop.f32.mrf.mxu1 }
 0x1d4   : > { %v1356_v53 = vpop.f32.mrf.mxu0  ;;  %v1358_v54 = vpop.f32.mrf.mxu1 }
 0x1d6   : > { %v1106_v55 = vpop.f32.mrf.mxu0  ;;  %v1120_v56 = vpop.f32.mrf.mxu1 }
 0x1d7   : > { %v820_v56 = vsel %vm819_vm5, %v1356_v53, 0.0 }
 0x1d8   : > { %v639_v57 = vpop.f32.mrf.mxu0  ;;  %v698_v58 = vpop.f32.mrf.mxu1 }
 0x1d9   : > { %v866_v57 = vsel %vm819_vm5, %v1358_v54, 0.0 }
 0x1da   : > { %v1107_v59 = vpop.f32.mrf.mxu0  ;;  %v1121_v60 = vpop.f32.mrf.mxu1 }
 0x1dc   : > { %v738_v61 = vpop.f32.mrf.mxu0  ;;  %v797_v62 = vpop.f32.mrf.mxu1 }
 0x1dd   : > { %v827_v63 = vrot.slane %v738_v61, 7  ;;  %v872_v0 = vrot.slane %v797_v62, 7 }
 0x1de   : > { %v1126_v1 = vpop.f32.mrf.mxu0  ;;  %v1140_v3 = vpop.f32.mrf.mxu1 }
 0x1df   : > { %v841_v4 = vsel %vm826_vm3, 0.0, %v827_v63  ;;  %v886_v6 = vsel %vm826_vm3, 0.0, %v872_v0 }
 0x1e0   : > { %v842_v7 = vadd.f32 %v841_v4, %v620_v38  ;;  %v887_v8 = vadd.f32 %v886_v6, %v679_v39  ;;  %v741_v9 = vpop.f32.mrf.mxu0  ;;  %v800_v10 = vpop.f32.mrf.mxu1 }
 0x1e1   : > { %v828_v11 = vrot.slane %v741_v9, 7  ;;  %v873_v12 = vrot.slane %v800_v10, 7 }
 0x1e2   : > { %v854_v13 = vadd.f32 %v1361_v5, %v842_v7  ;;  %v899_v14 = vadd.f32 %v1361_v5, %v887_v8  ;;  %v1127_v15 = vpop.f32.mrf.mxu0  ;;  %v1141_v16 = vpop.f32.mrf.mxu1 }
 0x1e3   : > { %v829_v17 = vsel %vm826_vm3, %v827_v63, %v828_v11  ;;  %v874_v18 = vsel %vm826_vm3, %v872_v0, %v873_v12 }
 0x1e4   : > { %860 = vst.msk [vmem:[%s1368_s17] sm:$0xff] %vm859_vm4, %v854_v13  ;;  %904 = vst.msk [vmem:[%s1374_s20] sm:$0xff] %vm859_vm4, %v899_v14  ;;  %v843_v19 = vadd.f32 %v829_v17, %v623_v42  ;;  %v888_v20 = vadd.f32 %v874_v18, %v682_v43  ;;  %v746_v21 = vpop.f32.mrf.mxu0  ;;  %v805_v22 = vpop.f32.mrf.mxu1 }
 0x1e5   : > { %v830_v23 = vrot.slane %v746_v21, 7  ;;  %v875_v24 = vrot.slane %v805_v22, 7 }
 0x1e6   : > { %v855_v25 = vadd.f32 %v1361_v5, %v843_v19  ;;  %v900_v26 = vadd.f32 %v1361_v5, %v888_v20  ;;  %v1130_v27 = vpop.f32.mrf.mxu0  ;;  %v1144_v28 = vpop.f32.mrf.mxu1 }
 0x1e7   : > { %v831_v29 = vsel %vm826_vm3, %v828_v11, %v830_v23  ;;  %v876_v30 = vsel %vm826_vm3, %v873_v12, %v875_v24 }
 0x1e8   : > { %861 = vst.msk [vmem:[%s1368_s17 + $0x8] sm:$0xff] %vm859_vm4, %v855_v25  ;;  %905 = vst.msk [vmem:[%s1374_s20 + $0x8] sm:$0xff] %vm859_vm4, %v900_v26  ;;  %v844_v31 = vadd.f32 %v831_v29, %v628_v46  ;;  %v889_v32 = vadd.f32 %v876_v30, %v687_v47  ;;  %v749_v33 = vpop.f32.mrf.mxu0  ;;  %v808_v34 = vpop.f32.mrf.mxu1 }
 0x1e9   : > { %v832_v35 = vrot.slane %v749_v33, 7  ;;  %v877_v36 = vrot.slane %v808_v34, 7 }
 0x1ea   : > { %v856_v37 = vadd.f32 %v1361_v5, %v844_v31  ;;  %v901_v38 = vadd.f32 %v1361_v5, %v889_v32  ;;  %v1131_v39 = vpop.f32.mrf.mxu0  ;;  %v1145_v40 = vpop.f32.mrf.mxu1 }
 0x1eb   : > { %v833_v41 = vsel %vm826_vm3, %v830_v23, %v832_v35  ;;  %v878_v42 = vsel %vm826_vm3, %v875_v24, %v877_v36 }
 0x1ec   : > { %862 = vst.msk [vmem:[%s1368_s17 + $0x10] sm:$0xff] %vm859_vm4, %v856_v37  ;;  %906 = vst.msk [vmem:[%s1374_s20 + $0x10] sm:$0xff] %vm859_vm4, %v901_v38  ;;  %v845_v43 = vadd.f32 %v833_v41, %v1352_v50  ;;  %v890_v44 = vadd.f32 %v878_v42, %v1354_v51  ;;  %v754_v45 = vpop.f32.mrf.mxu0  ;;  %v813_v46 = vpop.f32.mrf.mxu1 }
 0x1ed   : > { %v834_v47 = vrot.slane %v754_v45, 7  ;;  %v879_v48 = vrot.slane %v813_v46, 7 }
 0x1ee   : > { %v857_v49 = vadd.f32 %v1361_v5, %v845_v43  ;;  %v902_v2 = vadd.f32 %v1361_v5, %v890_v44  ;;  %v1134_v52 = vpop.f32.mrf.mxu0  ;;  %v1148_v55 = vpop.f32.mrf.mxu1 }
 0x1ef   : > { %v835_v50 = vsel %vm826_vm3, %v832_v35, %v834_v47  ;;  %v880_v51 = vsel %vm826_vm3, %v877_v36, %v879_v48 }
 0x1f0   : > { %863 = vst.msk [vmem:[%s1368_s17 + $0x18] sm:$0xff] %vm859_vm4, %v857_v49  ;;  %907 = vst.msk [vmem:[%s1374_s20 + $0x18] sm:$0xff] %vm859_vm4, %v902_v2  ;;  %v846_v58 = vadd.f32 %v835_v50, %v820_v56  ;;  %v891_v59 = vadd.f32 %v880_v51, %v866_v57  ;;  %v757_v60 = vpop.f32.mrf.mxu0  ;;  %v816_v61 = vpop.f32.mrf.mxu1 }
 0x1f2   : > { %v858_v62 = vadd.f32 %v1361_v5, %v846_v58  ;;  %v903_v53 = vadd.f32 %v1361_v5, %v891_v59  ;;  %v1135_v63 = vpop.f32.mrf.mxu0  ;;  %v1149_v0 = vpop.f32.mrf.mxu1 }
 0x1f4   : > { %865 = vst.msk [vmem:[%s1368_s17 + $0x20] sm:$0x7] %vm864_vm6, %v858_v62  ;;  %908 = vst.msk [vmem:[%s1374_s20 + $0x20] sm:$0x7] %vm864_vm6, %v903_v53 }
 0x1f5 PF: > { %s22_s11 = sadd.s32 1, %s1187_s11  }
 0x1f6   : > { %p19_p4 = scmp.ge.s32.totalorder %s22_s11, 4  }
 0x1f8   :  { %21 = sbr.rel (!%p19_p4) target bundleno = 3 (0x3), region = 97 }

</bundles_post_ra>
